<compile_context>
chip_gen: v7x
topology: tpu7x:2x2x1
jax: 0.10.0
libtpu: 0.0.40
codegen_flags: <defaults>
</compile_context>

<pallas_src>
import jax
import jax.numpy as jnp
from jax.experimental import pallas as pl
from jax.experimental.pallas import tpu as pltpu


def bn_relu_conv_kernel(x_ref, scale_ref, shift_ref, w_ref, o_ref):
    # x_ref:     (C_in, HW)     one sample's activations, native NCHW order (f32)
    # scale_ref: (C_in, 1)      folded BN scale = gamma / sqrt(var + eps)
    # shift_ref: (C_in, 1)      folded BN shift = beta - mean * scale
    # w_ref:     (C_blk, C_in)  slice of the 1x1 conv weight (bf16)
    # o_ref:     (C_blk, HW)    output slice (f32)
    h = jnp.maximum(x_ref[...] * scale_ref[...] + shift_ref[...], 0.0)      # BN + ReLU (f32, VPU)
    o_ref[...] = jnp.dot(w_ref[...], h.astype(jnp.bfloat16),
                         preferred_element_type=jnp.float32)                 # 1x1 conv (bf16 MXU, f32 acc)


def bn_relu_conv2d_1x1(x_nchw, gamma, beta, running_mean, running_var, weight_oi,
                       eps=1e-5, cout_block=96):
    """x_nchw: (N, C_in, H, W) f32; weight_oi: (C_out, C_in) (PyTorch 1x1 conv weight squeezed)."""
    N, C_in, H, W = x_nchw.shape
    C_out = weight_oi.shape[0]
    HW = H * W

    # Fold eval-mode BatchNorm into per-channel scale/shift (column vectors for (C,1) broadcast).
    scale = (gamma / jnp.sqrt(running_var + eps)).astype(jnp.float32)
    shift = (beta - running_mean * scale).astype(jnp.float32)
    scale_col = scale.reshape(C_in, 1)
    shift_col = shift.reshape(C_in, 1)

    # Native NCHW orientation: pure reshape, no transpose, no pad.
    x3d = x_nchw.reshape(N, C_in, HW)
    w_bf16 = weight_oi.astype(jnp.bfloat16)              # (C_out, C_in), halves weight DMA

    assert C_out % cout_block == 0, (C_out, cout_block)
    n_cout = C_out // cout_block
    grid = (N, n_cout)

    cost = pl.CostEstimate(
        flops=2 * N * HW * C_in * C_out,
        transcendentals=0,
        bytes_accessed=(x3d.size * 4 + w_bf16.size * 2 + N * C_out * HW * 4 + 2 * C_in * 4),
    )

    out3d = pl.pallas_call(
        bn_relu_conv_kernel,
        out_shape=jax.ShapeDtypeStruct((N, C_out, HW), jnp.float32),
        grid_spec=pltpu.PrefetchScalarGridSpec(
            num_scalar_prefetch=0,
            grid=grid,
            in_specs=[
                # x: one full sample per grid point; constant across the C_out axis
                pl.BlockSpec((None, C_in, HW), lambda n, i: (n, 0, 0)),
                # folded BN scale / shift: constant blocks
                pl.BlockSpec((C_in, 1), lambda n, i: (0, 0)),
                pl.BlockSpec((C_in, 1), lambda n, i: (0, 0)),
                # weight: split over C_out so the two v7x TensorCores each take half
                pl.BlockSpec((cout_block, C_in), lambda n, i: (i, 0)),
            ],
            out_specs=pl.BlockSpec((None, cout_block, HW), lambda n, i: (n, i, 0)),
        ),
        compiler_params=pltpu.CompilerParams(
            dimension_semantics=("parallel", "parallel"),
        ),
        cost_estimate=cost,
    )(x3d, scale_col, shift_col, w_bf16)

    # (N, C_out, HW) -> (N, C_out, H, W): pure reshape, no transpose.
    return out3d.reshape(N, C_out, H, W)


def reference(x_nchw, gamma, beta, running_mean, running_var, weight_oi, eps=1e-5):
    # Pure-JAX (f32) reference matching eval-mode BN -> ReLU -> 1x1 conv.
    scale = gamma / jnp.sqrt(running_var + eps)
    shift = beta - running_mean * scale
    h = jnp.maximum(x_nchw * scale[None, :, None, None] + shift[None, :, None, None], 0.0)
    return jnp.einsum('nchw,oc->nohw', h, weight_oi)


if __name__ == "__main__":
    key = jax.random.PRNGKey(0)
    k_x, k_g, k_b, k_m, k_v, k_w = jax.random.split(key, 6)

    # Shapes implied by the module's forward: x267 = (1, 1248, 14, 14), conv to 192 channels.
    N, C_in, H, W = 1, 1248, 14, 14
    C_out = 192

    x = jax.random.normal(k_x, (N, C_in, H, W), dtype=jnp.float32)

    # Deterministic synthetic parameters (BatchNorm2d(1248) affine + running stats,
    # Conv2d(1248, 192, 1, bias=False) weight squeezed to (C_out, C_in)).
    gamma = 1.0 + 0.1 * jax.random.normal(k_g, (C_in,), dtype=jnp.float32)
    beta = 0.1 * jax.random.normal(k_b, (C_in,), dtype=jnp.float32)
    running_mean = 0.05 * jax.random.normal(k_m, (C_in,), dtype=jnp.float32)
    running_var = 1.0 + 0.1 * jax.nn.softplus(jax.random.normal(k_v, (C_in,), dtype=jnp.float32))
    weight = 0.02 * jax.random.normal(k_w, (C_out, C_in), dtype=jnp.float32)

    out = bn_relu_conv2d_1x1(x, gamma, beta, running_mean, running_var, weight)
    out = jax.block_until_ready(out)

    ref = reference(x, gamma, beta, running_mean, running_var, weight)
    assert out.shape == (N, C_out, H, W), out.shape
    # bf16 MXU with f32 accumulation over K=1248: 1e-2 tolerance is comfortably sufficient.
    err = float(jnp.max(jnp.abs(out - ref)))
    assert jnp.allclose(out, ref, atol=1e-2, rtol=1e-2), err

    print("KERNEL_OK")
</pallas_src>

<mosaic_0001>
module attributes {stable_mosaic.version = 11 : i64} {
  func.func @bn_relu_conv_kernel(%arg0: i32, %arg1: i32, %arg2: memref<1x1248x196xf32, #tpu.memory_space<vmem>>, %arg3: memref<1248x1xf32, #tpu.memory_space<vmem>>, %arg4: memref<1248x1xf32, #tpu.memory_space<vmem>>, %arg5: memref<96x1248xbf16, #tpu.memory_space<vmem>>, %arg6: memref<1x96x196xf32, #tpu.memory_space<vmem>>) attributes {dimension_semantics = [#tpu.dimension_semantics<parallel>, #tpu.dimension_semantics<parallel>], iteration_bounds = array<i64: 1, 2>, scalar_prefetch = 0 : i64, scratch_operands = 0 : i64, tpu.core_type = #tpu.core_type<tc>, window_params = [{transform_indices = @transform_0, window_bounds = array<i64: 1, 1248, 196>}, {pipeline_mode = #tpu.pipeline_mode<synchronous>, transform_indices = @transform_1, window_bounds = array<i64: 1248, 1>}, {pipeline_mode = #tpu.pipeline_mode<synchronous>, transform_indices = @transform_2, window_bounds = array<i64: 1248, 1>}, {transform_indices = @transform_3, window_bounds = array<i64: 96, 1248>}, {transform_indices = @transform_4, window_bounds = array<i64: 1, 96, 196>}]} {
    %c0 = arith.constant 0 : index
    %c0_0 = arith.constant 0 : index
    %c0_1 = arith.constant 0 : index
    %0 = vector.load %arg2[%c0, %c0_0, %c0_1] : memref<1x1248x196xf32, #tpu.memory_space<vmem>>, vector<1x1248x196xf32>
    %1 = vector.shape_cast %0 : vector<1x1248x196xf32> to vector<1248x196xf32>
    %c0_2 = arith.constant 0 : index
    %c0_3 = arith.constant 0 : index
    %2 = vector.load %arg3[%c0_2, %c0_3] : memref<1248x1xf32, #tpu.memory_space<vmem>>, vector<1248x1xf32>
    %3 = vector.broadcast %2 : vector<1248x1xf32> to vector<1248x196xf32>
    %4 = arith.mulf %1, %3 : vector<1248x196xf32>
    %c0_4 = arith.constant 0 : index
    %c0_5 = arith.constant 0 : index
    %5 = vector.load %arg4[%c0_4, %c0_5] : memref<1248x1xf32, #tpu.memory_space<vmem>>, vector<1248x1xf32>
    %6 = vector.broadcast %5 : vector<1248x1xf32> to vector<1248x196xf32>
    %7 = arith.addf %4, %6 : vector<1248x196xf32>
    %cst = arith.constant 0.000000e+00 : f32
    %8 = vector.broadcast %cst : f32 to vector<1248x196xf32>
    %9 = arith.maximumf %7, %8 : vector<1248x196xf32>
    %c0_6 = arith.constant 0 : index
    %c0_7 = arith.constant 0 : index
    %10 = vector.load %arg5[%c0_6, %c0_7] : memref<96x1248xbf16, #tpu.memory_space<vmem>>, vector<96x1248xbf16>
    %11 = arith.truncf %9 : vector<1248x196xf32> to vector<1248x196xbf16>
    %cst_8 = arith.constant dense<0.000000e+00> : vector<96x196xf32>
    %12 = tpu.matmul %10, %11, %cst_8 {dimension_numbers = #tpu.dot_dimension_numbers<[1], [0], [0], [1], [0, 0, 1, 1], [], []>} : vector<96x1248xbf16>, vector<1248x196xbf16>, vector<96x196xf32> -> vector<96x196xf32>
    %c0_9 = arith.constant 0 : index
    %c0_10 = arith.constant 0 : index
    %c0_11 = arith.constant 0 : index
    %13 = vector.load %arg6[%c0_9, %c0_10, %c0_11] : memref<1x96x196xf32, #tpu.memory_space<vmem>>, vector<1x96x196xf32>
    %14 = vector.shape_cast %13 : vector<1x96x196xf32> to vector<96x196xf32>
    %15 = vector.shape_cast %12 : vector<96x196xf32> to vector<1x96x196xf32>
    tpu.vector_store %arg6[%c0_9, %c0_10, %c0_11], %15 {strides = array<i32>} : memref<1x96x196xf32, #tpu.memory_space<vmem>>, vector<1x96x196xf32>,
    return
  }
  func.func @transform_0(%arg0: i32, %arg1: i32) -> (i32, i32, i32) {
    %c0_i32 = arith.constant 0 : i32
    %c0_i32_0 = arith.constant 0 : i32
    %c0_i32_1 = arith.constant 0 : i32
    return %arg0, %c0_i32, %c0_i32_0 : i32, i32, i32
  }
  func.func @transform_1(%arg0: i32, %arg1: i32) -> (i32, i32) {
    %c0_i32 = arith.constant 0 : i32
    %c0_i32_0 = arith.constant 0 : i32
    %c0_i32_1 = arith.constant 0 : i32
    return %c0_i32, %c0_i32_0 : i32, i32
  }
  func.func @transform_2(%arg0: i32, %arg1: i32) -> (i32, i32) {
    %c0_i32 = arith.constant 0 : i32
    %c0_i32_0 = arith.constant 0 : i32
    %c0_i32_1 = arith.constant 0 : i32
    return %c0_i32, %c0_i32_0 : i32, i32
  }
  func.func @transform_3(%arg0: i32, %arg1: i32) -> (i32, i32) {
    %c0_i32 = arith.constant 0 : i32
    %c0_i32_0 = arith.constant 0 : i32
    return %arg1, %c0_i32 : i32, i32
  }
  func.func @transform_4(%arg0: i32, %arg1: i32) -> (i32, i32, i32) {
    %c0_i32 = arith.constant 0 : i32
    %c0_i32_0 = arith.constant 0 : i32
    return %arg0, %arg1, %c0_i32 : i32, i32, i32
  }
}

</mosaic_0001>

<bundles_post_ra>
// kernel: tpu_custom_call.1
= control target key start
LH: loop header
LB: loop body
LE: loop exit
PB: predicated region body
PF: predicated region fallthrough
CT: control target
= control target key end

     0   :  { %9 = vsyncpa [#allocation3], 0  ;;  %s7706_s0 = inlined_call_operand.vmem [shape: f32[1,1248,196], index: 0, kind: input, shape index: {}]   ;;  %s7707_s1 = inlined_call_operand.vmem [shape: f32[1248,1], index: 1, kind: input, shape index: {}]   ;;  %s7708_s2 = inlined_call_operand.vmem [shape: f32[1248,1], index: 2, kind: input, shape index: {}]   ;;  %s7709_s3 = inlined_call_operand.vmem [shape: bf16[192,1248], index: 3, kind: input, shape index: {}]   ;;  %s7710_s4 = inlined_call_operand.hbm [shape: f32[1,192,196], index: 4, kind: output, shape index: {}]  }
   0x1   :  { %11 = vsyncpa [#allocation3 + $0x1], 0  ;;  %s4946_s15 = smov 0   ;;  %s4948_s16 = smov 0  }
   0x2   :  { %s4950_s17 = smov 0   ;;  %s4952_s18 = smov 0  }
   0x3   :  { %s4954_s19 = smov 0   ;;  %s4956_s20 = smov 0  }
   0x4 LB: > { %s4481_s21 = sadd.s32 4294967295, %s4915_s20   ;;  %s4482_s22 = sadd.s32 4294967294, %s4915_s20   ;;  %s4915_s20 = sphi %s4956_s20, %s17_s20   ;;  %s4911_s19 = sphi %s4954_s19, %s8062_s19   ;;  %s4907_s18 = sphi %s4952_s18, %s8061_s18   ;;  %s4903_s17 = sphi %s4950_s17, %s8060_s17   ;;  %s4899_s16 = sphi %s4948_s16, %s8059_s16   ;;  %s4895_s15 = sphi %s4946_s15, %s8058_s15  }
   0x5   : > { %s26_s23 = sadd.s32 1, %s4911_s19  ;;  %s132_s24 = sadd.s32 1, %s4903_s17 }
   0x6   : > { %p27_p0 = scmp.ge.s32.totalorder %s26_s23, 2  ;;  %p142_p1 = scmp.ne.s32.totalorder %s4903_s17, %s4899_s16 }
   0x7   : > { %p143_p2 = scmp.eq.s32.totalorder %s4481_s21, 1  ;;  %p148_p3 = scmp.ne.s32.totalorder %s4899_s16, %s4895_s15 }
   0x8   : > { %s8064_s23 = smov (%p27_p0, %s26_s23), 0  ;;  %p149_p5 = scmp.eq.s32.totalorder %s4482_s22, 1 }
   0x9   : > { %p4986_p4 = por %p143_p2, %p142_p1  ;;  %s128_s26 = ssub.s32 %s4911_s19, %s8064_s23 }
   0xa   : > { %p4486_p6 = scmp.ge.s32.totalorder %s4915_s20, 1  ;;  %p130_p7 = scmp.eq.s32.totalorder %s128_s26, 0 }
   0xb   : > { %p4993_p8 = por %p149_p5, %p148_p3  ;;  %p191_p9 = scmp.lt.s32.totalorder %s4915_s20, 3 }
   0xc   : > { %s4999_s28 = scalar_select %p130_p7, %s4903_s17, %s132_s24  }
   0xd   : > { %p192_p10 = pnand %p4486_p6, %p191_p9 }
   0xf   : > { %195 = sbr.rel (%p192_p10) target bundleno = 1032 (0x408), region = 36 }
  0x16   : > { %v551_v0 = vld [vmem:[%s7707_s1 + $0x10] sm:$0xff]  ;;  %v549_v1 = vld [vmem:[%s7707_s1] sm:$0xff]  ;;  %v4917_v2 = vmov 0   ;;  %v552_v3 = vld [vmem:[%s7707_s1 + $0x18] sm:$0xff]  ;;  %s228_s11 = smul.u32 12, %s4907_s18  ;;  %vm3867_vm0 = vcmask 785408  }
  0x17   : > { %4746 = vset.pattern.permute.xlu1 %v4917_v2  ;;  %4745 = vset.pattern.permute.xlu0 %v4917_v2  ;;  %v550_v4 = vld [vmem:[%s7707_s1 + $0x8] sm:$0xff]  ;;  %v553_v6 = vld [vmem:[%s7707_s1 + $0x20] sm:$0xff]  ;;  %v556_v7 = vld [vmem:[%s7707_s1 + $0x38] sm:$0xff]  ;;  %vm4352_vm1 = vcmask 556032   ;;  %s4560_s29 = smul.u32 3072, %s4907_s18  ;;  %s4918_s10 = smov [#allocation2]  }
  0x18   : > { %717 = vperm.xlu1 %4746, %v551_v0   ;;  %707 = vperm.xlu0 %4745, %v549_v1   ;;  %v554_v5 = vld [vmem:[%s7707_s1 + $0x28] sm:$0xff]  ;;  %v555_v8 = vld [vmem:[%s7707_s1 + $0x30] sm:$0xff]  ;;  %v557_v10 = vld [vmem:[%s7707_s1 + $0x40] sm:$0xff]  ;;  %p229_p11 = scmp.lt.s32.totalorder %s228_s11, 23  ;;  %s4841_s12 = sshll.u32 %s4918_s10, 4  ;;  %s4842_s12 = int_to_ptr.vmem [resolvable:$false] %s4841_s12 }
  0x19   : > { %v558_v9 = vld [vmem:[%s7707_s1 + $0x48] sm:$0xff]  ;;  %v560_v11 = vld [vmem:[%s7707_s1 + $0x58] sm:$0xff]  ;;  %v559_v12 = vld [vmem:[%s7707_s1 + $0x50] sm:$0xff]  ;;  %s7645_s6 = scalar_lea.hbm %s7710_s4, %s4560_s29 }
  0x1a   : > { %v562_v13 = vld [vmem:[%s7707_s1 + $0x68] sm:$0xff]  ;;  %v561_v14 = vld [vmem:[%s7707_s1 + $0x60] sm:$0xff]  ;;  %v564_v15 = vld [vmem:[%s7707_s1 + $0x78] sm:$0xff]  ;;  %s8066_s11 = smov (!%p229_p11, %s228_s11), 23 }
  0x1b   : > { %v563_v16 = vld [vmem:[%s7707_s1 + $0x70] sm:$0xff]  ;;  %v566_v17 = vld [vmem:[%s7707_s1 + $0x88] sm:$0xff]  ;;  %v565_v18 = vld [vmem:[%s7707_s1 + $0x80] sm:$0xff]  ;;  %s4686_s30 = smul.u32 40, %s8066_s11  ;;  %s4843_s11 = scalar_lea.vmem %s4842_s12, 6144 }
  0x1c   : > { %722 = vperm.xlu1 %4746, %v552_v3   ;;  %712 = vperm.xlu0 %4745, %v550_v4   ;;  %v568_v19 = vld [vmem:[%s7707_s1 + $0x98] sm:$0xff]  ;;  %v567_v20 = vld [vmem:[%s7707_s1 + $0x90] sm:$0xff]  ;;  %v570_v21 = vld [vmem:[%s7707_s1 + $0xa8] sm:$0xff] }
  0x1d   : > { %v569_v22 = vld [vmem:[%s7707_s1 + $0xa0] sm:$0xff]  ;;  %v572_v23 = vld [vmem:[%s7707_s1 + $0xb8] sm:$0xff]  ;;  %v571_v24 = vld [vmem:[%s7707_s1 + $0xb0] sm:$0xff]  ;;  %s5840_s9 = scalar_lea.vmem %s7709_s3, %s4686_s30 }
  0x1e   : > { %v574_v25 = vld [vmem:[%s7707_s1 + $0xc8] sm:$0xff]  ;;  %v573_v26 = vld [vmem:[%s7707_s1 + $0xc0] sm:$0xff]  ;;  %v576_v27 = vld [vmem:[%s7707_s1 + $0xd8] sm:$0xff] }
  0x1f   : > { %v575_v28 = vld [vmem:[%s7707_s1 + $0xd0] sm:$0xff]  ;;  %v578_v29 = vld [vmem:[%s7707_s1 + $0xe8] sm:$0xff]  ;;  %v577_v30 = vld [vmem:[%s7707_s1 + $0xe0] sm:$0xff] }
  0x20   : > { %732 = vperm.xlu1 %4746, %v554_v5   ;;  %727 = vperm.xlu0 %4745, %v553_v6   ;;  %v580_v31 = vld [vmem:[%s7707_s1 + $0xf8] sm:$0xff]  ;;  %v579_v32 = vld [vmem:[%s7707_s1 + $0xf0] sm:$0xff]  ;;  %v582_v33 = vld [vmem:[%s7707_s1 + $0x108] sm:$0xff] }
  0x21   : > { %v581_v34 = vld [vmem:[%s7707_s1 + $0x100] sm:$0xff]  ;;  %v584_v35 = vld [vmem:[%s7707_s1 + $0x118] sm:$0xff]  ;;  %v583_v36 = vld [vmem:[%s7707_s1 + $0x110] sm:$0xff] }
  0x22   : > { %v586_v37 = vld [vmem:[%s7707_s1 + $0x128] sm:$0xff]  ;;  %v585_v38 = vld [vmem:[%s7707_s1 + $0x120] sm:$0xff]  ;;  %v588_v39 = vld [vmem:[%s7707_s1 + $0x138] sm:$0xff] }
  0x23   : > { %v587_v40 = vld [vmem:[%s7707_s1 + $0x130] sm:$0xff]  ;;  %v590_v41 = vld [vmem:[%s7707_s1 + $0x148] sm:$0xff]  ;;  %v589_v42 = vld [vmem:[%s7707_s1 + $0x140] sm:$0xff] }
  0x24   : > { %742 = vperm.xlu1 %4746, %v556_v7   ;;  %737 = vperm.xlu0 %4745, %v555_v8   ;;  %v592_v43 = vld [vmem:[%s7707_s1 + $0x158] sm:$0xff]  ;;  %v591_v44 = vld [vmem:[%s7707_s1 + $0x150] sm:$0xff]  ;;  %v594_v45 = vld [vmem:[%s7707_s1 + $0x168] sm:$0xff] }
  0x25   : > { %v593_v46 = vld [vmem:[%s7707_s1 + $0x160] sm:$0xff]  ;;  %v596_v47 = vld [vmem:[%s7707_s1 + $0x178] sm:$0xff]  ;;  %v595_v48 = vld [vmem:[%s7707_s1 + $0x170] sm:$0xff] }
  0x26   : > { %v598_v49 = vld [vmem:[%s7707_s1 + $0x188] sm:$0xff]  ;;  %v597_v50 = vld [vmem:[%s7707_s1 + $0x180] sm:$0xff]  ;;  %v600_v51 = vld [vmem:[%s7707_s1 + $0x198] sm:$0xff] }
  0x27   : > { %v599_v52 = vld [vmem:[%s7707_s1 + $0x190] sm:$0xff]  ;;  %v602_v53 = vld [vmem:[%s7707_s1 + $0x1a8] sm:$0xff]  ;;  %v601_v54 = vld [vmem:[%s7707_s1 + $0x1a0] sm:$0xff] }
  0x28   : > { %752 = vperm.xlu1 %4746, %v558_v9   ;;  %747 = vperm.xlu0 %4745, %v557_v10   ;;  %v604_v55 = vld [vmem:[%s7707_s1 + $0x1b8] sm:$0xff]  ;;  %v603_v56 = vld [vmem:[%s7707_s1 + $0x1b0] sm:$0xff]  ;;  %v606_v57 = vld [vmem:[%s7707_s1 + $0x1c8] sm:$0xff] }
  0x29   : > { %v605_v58 = vld [vmem:[%s7707_s1 + $0x1c0] sm:$0xff]  ;;  %v608_v59 = vld [vmem:[%s7707_s1 + $0x1d8] sm:$0xff]  ;;  %v607_v60 = vld [vmem:[%s7707_s1 + $0x1d0] sm:$0xff] }
  0x2a   : > { %v610_v61 = vld [vmem:[%s7707_s1 + $0x1e8] sm:$0xff]  ;;  %v609_v62 = vld [vmem:[%s7707_s1 + $0x1e0] sm:$0xff]  ;;  %v612_v63 = vld [vmem:[%s7707_s1 + $0x1f8] sm:$0xff] }
  0x2b   : > { %v611_v0 = vld [vmem:[%s7707_s1 + $0x1f0] sm:$0xff]  ;;  %v614_v1 = vld [vmem:[%s7707_s1 + $0x208] sm:$0xff]  ;;  %v613_v2 = vld [vmem:[%s7707_s1 + $0x200] sm:$0xff] }
  0x2c   : > { %762 = vperm.xlu1 %4746, %v560_v11   ;;  %757 = vperm.xlu0 %4745, %v559_v12   ;;  %v616_v5 = vld [vmem:[%s7707_s1 + $0x218] sm:$0xff]  ;;  %v615_v6 = vld [vmem:[%s7707_s1 + $0x210] sm:$0xff]  ;;  %v618_v9 = vld [vmem:[%s7707_s1 + $0x228] sm:$0xff] }
  0x2d   : > { %v617_v10 = vld [vmem:[%s7707_s1 + $0x220] sm:$0xff] }
  0x30   : > { %772 = vperm.xlu1 %4746, %v562_v13   ;;  %767 = vperm.xlu0 %4745, %v561_v14   ;;  %v620_v13 = vld [vmem:[%s7707_s1 + $0x238] sm:$0xff]  ;;  %v619_v14 = vld [vmem:[%s7707_s1 + $0x230] sm:$0xff] }
  0x34   : > { %782 = vperm.xlu1 %4746, %v564_v15   ;;  %777 = vperm.xlu0 %4745, %v563_v16  }
  0x38   : > { %792 = vperm.xlu1 %4746, %v566_v17   ;;  %787 = vperm.xlu0 %4745, %v565_v18   ;;  %v622_v17 = vld [vmem:[%s7707_s1 + $0x248] sm:$0xff]  ;;  %v621_v18 = vld [vmem:[%s7707_s1 + $0x240] sm:$0xff] }
  0x3c   : > { %802 = vperm.xlu1 %4746, %v568_v19   ;;  %797 = vperm.xlu0 %4745, %v567_v20  }
  0x40   : > { %812 = vperm.xlu1 %4746, %v570_v21   ;;  %807 = vperm.xlu0 %4745, %v569_v22   ;;  %v624_v21 = vld [vmem:[%s7707_s1 + $0x258] sm:$0xff]  ;;  %v623_v22 = vld [vmem:[%s7707_s1 + $0x250] sm:$0xff] }
  0x44   : > { %822 = vperm.xlu1 %4746, %v572_v23   ;;  %817 = vperm.xlu0 %4745, %v571_v24  }
  0x48   : > { %832 = vperm.xlu1 %4746, %v574_v25   ;;  %827 = vperm.xlu0 %4745, %v573_v26   ;;  %v626_v25 = vld [vmem:[%s7707_s1 + $0x268] sm:$0xff]  ;;  %v625_v26 = vld [vmem:[%s7707_s1 + $0x260] sm:$0xff] }
  0x4c   : > { %842 = vperm.xlu1 %4746, %v576_v27   ;;  %837 = vperm.xlu0 %4745, %v575_v28  }
  0x50   : > { %852 = vperm.xlu1 %4746, %v578_v29   ;;  %847 = vperm.xlu0 %4745, %v577_v30   ;;  %v628_v29 = vld [vmem:[%s7707_s1 + $0x278] sm:$0xff]  ;;  %v627_v30 = vld [vmem:[%s7707_s1 + $0x270] sm:$0xff] }
  0x54   : > { %862 = vperm.xlu1 %4746, %v580_v31   ;;  %857 = vperm.xlu0 %4745, %v579_v32  }
  0x58   : > { %872 = vperm.xlu1 %4746, %v582_v33   ;;  %867 = vperm.xlu0 %4745, %v581_v34   ;;  %v630_v33 = vld [vmem:[%s7707_s1 + $0x288] sm:$0xff]  ;;  %v629_v34 = vld [vmem:[%s7707_s1 + $0x280] sm:$0xff] }
  0x5c   : > { %882 = vperm.xlu1 %4746, %v584_v35   ;;  %877 = vperm.xlu0 %4745, %v583_v36  }
  0x60   : > { %892 = vperm.xlu1 %4746, %v586_v37   ;;  %887 = vperm.xlu0 %4745, %v585_v38   ;;  %v632_v37 = vld [vmem:[%s7707_s1 + $0x298] sm:$0xff]  ;;  %v631_v38 = vld [vmem:[%s7707_s1 + $0x290] sm:$0xff] }
  0x64   : > { %902 = vperm.xlu1 %4746, %v588_v39   ;;  %897 = vperm.xlu0 %4745, %v587_v40  }
  0x68   : > { %912 = vperm.xlu1 %4746, %v590_v41   ;;  %907 = vperm.xlu0 %4745, %v589_v42   ;;  %v634_v41 = vld [vmem:[%s7707_s1 + $0x2a8] sm:$0xff]  ;;  %v633_v42 = vld [vmem:[%s7707_s1 + $0x2a0] sm:$0xff] }
  0x6c   : > { %922 = vperm.xlu1 %4746, %v592_v43   ;;  %917 = vperm.xlu0 %4745, %v591_v44  }
  0x70   : > { %932 = vperm.xlu1 %4746, %v594_v45   ;;  %927 = vperm.xlu0 %4745, %v593_v46   ;;  %v636_v45 = vld [vmem:[%s7707_s1 + $0x2b8] sm:$0xff]  ;;  %v635_v46 = vld [vmem:[%s7707_s1 + $0x2b0] sm:$0xff] }
  0x74   : > { %942 = vperm.xlu1 %4746, %v596_v47   ;;  %937 = vperm.xlu0 %4745, %v595_v48  }
  0x78   : > { %952 = vperm.xlu1 %4746, %v598_v49   ;;  %947 = vperm.xlu0 %4745, %v597_v50   ;;  %v638_v49 = vld [vmem:[%s7707_s1 + $0x2c8] sm:$0xff]  ;;  %v637_v50 = vld [vmem:[%s7707_s1 + $0x2c0] sm:$0xff] }
  0x7c   : > { %962 = vperm.xlu1 %4746, %v600_v51   ;;  %957 = vperm.xlu0 %4745, %v599_v52  }
  0x80   : > { %972 = vperm.xlu1 %4746, %v602_v53   ;;  %967 = vperm.xlu0 %4745, %v601_v54   ;;  %v640_v53 = vld [vmem:[%s7707_s1 + $0x2d8] sm:$0xff]  ;;  %v639_v54 = vld [vmem:[%s7707_s1 + $0x2d0] sm:$0xff] }
  0x84   : > { %982 = vperm.xlu1 %4746, %v604_v55   ;;  %977 = vperm.xlu0 %4745, %v603_v56  }
  0x88   : > { %992 = vperm.xlu1 %4746, %v606_v57   ;;  %987 = vperm.xlu0 %4745, %v605_v58   ;;  %v642_v57 = vld [vmem:[%s7707_s1 + $0x2e8] sm:$0xff]  ;;  %v641_v58 = vld [vmem:[%s7707_s1 + $0x2e0] sm:$0xff] }
  0x8c   : > { %1002 = vperm.xlu1 %4746, %v608_v59   ;;  %997 = vperm.xlu0 %4745, %v607_v60  }
  0x90   : > { %1012 = vperm.xlu1 %4746, %v610_v61   ;;  %1007 = vperm.xlu0 %4745, %v609_v62   ;;  %v644_v61 = vld [vmem:[%s7707_s1 + $0x2f8] sm:$0xff]  ;;  %v643_v62 = vld [vmem:[%s7707_s1 + $0x2f0] sm:$0xff] }
  0x94   : > { %1022 = vperm.xlu1 %4746, %v612_v63   ;;  %1017 = vperm.xlu0 %4745, %v611_v0  }
  0x97   : > { %v5199_v3 = vpop.permute.xlu1 %717  ;;  %v5201_v4 = vpop.permute.xlu0 %707 }
  0x98   : > { %1032 = vperm.xlu1 %4746, %v614_v1   ;;  %1027 = vperm.xlu0 %4745, %v613_v2   ;;  %v646_v1 = vld [vmem:[%s7707_s1 + $0x308] sm:$0xff]  ;;  %v645_v2 = vld [vmem:[%s7707_s1 + $0x300] sm:$0xff] }
  0x9b   : > { %v5209_v7 = vpop.permute.xlu1 %722  ;;  %v5211_v8 = vpop.permute.xlu0 %712 }
  0x9c   : > { %1042 = vperm.xlu1 %4746, %v616_v5   ;;  %1037 = vperm.xlu0 %4745, %v615_v6  }
  0x9f   : > { %v5219_v11 = vpop.permute.xlu1 %732  ;;  %v5221_v12 = vpop.permute.xlu0 %727 }
  0xa0   : > { %1052 = vperm.xlu1 %4746, %v618_v9   ;;  %1047 = vperm.xlu0 %4745, %v617_v10   ;;  %v648_v9 = vld [vmem:[%s7707_s1 + $0x318] sm:$0xff]  ;;  %v647_v10 = vld [vmem:[%s7707_s1 + $0x310] sm:$0xff] }
  0xa3   : > { %v5229_v15 = vpop.permute.xlu1 %742  ;;  %v5231_v16 = vpop.permute.xlu0 %737 }
  0xa4   : > { %1062 = vperm.xlu1 %4746, %v620_v13   ;;  %1057 = vperm.xlu0 %4745, %v619_v14  }
  0xa7   : > { %v5239_v19 = vpop.permute.xlu1 %752  ;;  %v5241_v20 = vpop.permute.xlu0 %747 }
  0xa8   : > { %1072 = vperm.xlu1 %4746, %v622_v17   ;;  %1067 = vperm.xlu0 %4745, %v621_v18   ;;  %v650_v17 = vld [vmem:[%s7707_s1 + $0x328] sm:$0xff]  ;;  %v649_v18 = vld [vmem:[%s7707_s1 + $0x320] sm:$0xff] }
  0xab   : > { %v5249_v23 = vpop.permute.xlu1 %762  ;;  %v5251_v24 = vpop.permute.xlu0 %757 }
  0xac   : > { %1082 = vperm.xlu1 %4746, %v624_v21   ;;  %1077 = vperm.xlu0 %4745, %v623_v22  }
  0xaf   : > { %v5259_v27 = vpop.permute.xlu1 %772  ;;  %v5261_v28 = vpop.permute.xlu0 %767 }
  0xb0   : > { %1092 = vperm.xlu1 %4746, %v626_v25   ;;  %1087 = vperm.xlu0 %4745, %v625_v26   ;;  %v652_v25 = vld [vmem:[%s7707_s1 + $0x338] sm:$0xff]  ;;  %v651_v26 = vld [vmem:[%s7707_s1 + $0x330] sm:$0xff] }
  0xb3   : > { %v5269_v31 = vpop.permute.xlu1 %782  ;;  %v5271_v32 = vpop.permute.xlu0 %777 }
  0xb4   : > { %1102 = vperm.xlu1 %4746, %v628_v29   ;;  %1097 = vperm.xlu0 %4745, %v627_v30  }
  0xb7   : > { %v5279_v35 = vpop.permute.xlu1 %792  ;;  %v5281_v36 = vpop.permute.xlu0 %787 }
  0xb8   : > { %1112 = vperm.xlu1 %4746, %v630_v33   ;;  %1107 = vperm.xlu0 %4745, %v629_v34   ;;  %v654_v33 = vld [vmem:[%s7707_s1 + $0x348] sm:$0xff]  ;;  %v653_v34 = vld [vmem:[%s7707_s1 + $0x340] sm:$0xff] }
  0xbb   : > { %v5289_v39 = vpop.permute.xlu1 %802  ;;  %v5291_v40 = vpop.permute.xlu0 %797 }
  0xbc   : > { %1122 = vperm.xlu1 %4746, %v632_v37   ;;  %1117 = vperm.xlu0 %4745, %v631_v38  }
  0xbf   : > { %v5299_v43 = vpop.permute.xlu1 %812  ;;  %v5301_v44 = vpop.permute.xlu0 %807 }
  0xc0   : > { %1132 = vperm.xlu1 %4746, %v634_v41   ;;  %1127 = vperm.xlu0 %4745, %v633_v42   ;;  %v656_v41 = vld [vmem:[%s7707_s1 + $0x358] sm:$0xff]  ;;  %v655_v42 = vld [vmem:[%s7707_s1 + $0x350] sm:$0xff] }
  0xc3   : > { %v5309_v47 = vpop.permute.xlu1 %822  ;;  %v5311_v48 = vpop.permute.xlu0 %817 }
  0xc4   : > { %1142 = vperm.xlu1 %4746, %v636_v45   ;;  %1137 = vperm.xlu0 %4745, %v635_v46  }
  0xc7   : > { %v5319_v51 = vpop.permute.xlu1 %832  ;;  %v5321_v52 = vpop.permute.xlu0 %827 }
  0xc8   : > { %1152 = vperm.xlu1 %4746, %v638_v49   ;;  %1147 = vperm.xlu0 %4745, %v637_v50   ;;  %v658_v49 = vld [vmem:[%s7707_s1 + $0x368] sm:$0xff]  ;;  %v657_v50 = vld [vmem:[%s7707_s1 + $0x360] sm:$0xff] }
  0xcb   : > { %v5329_v55 = vpop.permute.xlu1 %842  ;;  %v5331_v56 = vpop.permute.xlu0 %837 }
  0xcc   : > { %1162 = vperm.xlu1 %4746, %v640_v53   ;;  %1157 = vperm.xlu0 %4745, %v639_v54  }
  0xcf   : > { %v5339_v59 = vpop.permute.xlu1 %852  ;;  %v5341_v60 = vpop.permute.xlu0 %847 }
  0xd0   : > { %1172 = vperm.xlu1 %4746, %v642_v57   ;;  %1167 = vperm.xlu0 %4745, %v641_v58   ;;  %v660_v57 = vld [vmem:[%s7707_s1 + $0x378] sm:$0xff]  ;;  %v659_v58 = vld [vmem:[%s7707_s1 + $0x370] sm:$0xff] }
  0xd3   : > { %v5349_v63 = vpop.permute.xlu1 %862  ;;  %v5351_v0 = vpop.permute.xlu0 %857 }
  0xd4   : > { %1182 = vperm.xlu1 %4746, %v644_v61   ;;  %1177 = vperm.xlu0 %4745, %v643_v62  }
  0xd7   : > { %v5359_v5 = vpop.permute.xlu1 %872  ;;  %v5361_v6 = vpop.permute.xlu0 %867 }
  0xd8   : > { %1192 = vperm.xlu1 %4746, %v646_v1   ;;  %1187 = vperm.xlu0 %4745, %v645_v2   ;;  %v662_v1 = vld [vmem:[%s7707_s1 + $0x388] sm:$0xff]  ;;  %v661_v2 = vld [vmem:[%s7707_s1 + $0x380] sm:$0xff] }
  0xdb   : > { %v5369_v13 = vpop.permute.xlu1 %882  ;;  %v5371_v14 = vpop.permute.xlu0 %877 }
  0xdc   : > { %7828 = vst [vmem:[#allocation5_spill] sm:$0xff] %v5369_v13  ;;  %7829 = vst [vmem:[#allocation6_spill] sm:$0xff] %v5371_v14  ;;  %1202 = vperm.xlu1 %4746, %v648_v9   ;;  %1197 = vperm.xlu0 %4745, %v647_v10   ;;  %v702_v14 = vld [vmem:[%s7707_s1 + $0x4c8] sm:$0xff] }
  0xdf   : > { %v5379_v21 = vpop.permute.xlu1 %892  ;;  %v5381_v22 = vpop.permute.xlu0 %887 }
  0xe0   : > { %7830 = vst [vmem:[#allocation7_spill] sm:$0xff] %v5379_v21  ;;  %7831 = vst [vmem:[#allocation8_spill] sm:$0xff] %v5381_v22  ;;  %1212 = vperm.xlu1 %4746, %v650_v17   ;;  %1207 = vperm.xlu0 %4745, %v649_v18   ;;  %v664_v17 = vld [vmem:[%s7707_s1 + $0x398] sm:$0xff]  ;;  %v663_v18 = vld [vmem:[%s7707_s1 + $0x390] sm:$0xff] }
  0xe1   : > { %v700_v22 = vld [vmem:[%s7707_s1 + $0x4b8] sm:$0xff] }
  0xe3   : > { %v5389_v29 = vpop.permute.xlu1 %902  ;;  %v5391_v30 = vpop.permute.xlu0 %897 }
  0xe4   : > { %7832 = vst [vmem:[#allocation9_spill] sm:$0xff] %v5389_v29  ;;  %7833 = vst [vmem:[#allocation10_spill] sm:$0xff] %v5391_v30  ;;  %1222 = vperm.xlu1 %4746, %v652_v25   ;;  %1217 = vperm.xlu0 %4745, %v651_v26   ;;  %v698_v30 = vld [vmem:[%s7707_s1 + $0x4a8] sm:$0xff] }
  0xe7   : > { %v5399_v37 = vpop.permute.xlu1 %912  ;;  %v5401_v38 = vpop.permute.xlu0 %907 }
  0xe8   : > { %7834 = vst [vmem:[#allocation11_spill] sm:$0xff] %v5399_v37  ;;  %7835 = vst [vmem:[#allocation12_spill] sm:$0xff] %v5401_v38  ;;  %1232 = vperm.xlu1 %4746, %v654_v33   ;;  %1227 = vperm.xlu0 %4745, %v653_v34   ;;  %v666_v33 = vld [vmem:[%s7707_s1 + $0x3a8] sm:$0xff]  ;;  %v665_v34 = vld [vmem:[%s7707_s1 + $0x3a0] sm:$0xff] }
  0xe9   : > { %v696_v38 = vld [vmem:[%s7707_s1 + $0x498] sm:$0xff] }
  0xeb   : > { %v5409_v45 = vpop.permute.xlu1 %922  ;;  %v5411_v46 = vpop.permute.xlu0 %917 }
  0xec   : > { %7836 = vst [vmem:[#allocation13_spill] sm:$0xff] %v5409_v45  ;;  %7837 = vst [vmem:[#allocation14_spill] sm:$0xff] %v5411_v46  ;;  %1242 = vperm.xlu1 %4746, %v656_v41   ;;  %1237 = vperm.xlu0 %4745, %v655_v42   ;;  %v694_v46 = vld [vmem:[%s7707_s1 + $0x488] sm:$0xff] }
  0xef   : > { %v5419_v53 = vpop.permute.xlu1 %932  ;;  %v5421_v54 = vpop.permute.xlu0 %927 }
  0xf0   : > { %7838 = vst [vmem:[#allocation15_spill] sm:$0xff] %v5419_v53  ;;  %7839 = vst [vmem:[#allocation16_spill] sm:$0xff] %v5421_v54  ;;  %1252 = vperm.xlu1 %4746, %v658_v49   ;;  %1247 = vperm.xlu0 %4745, %v657_v50   ;;  %v668_v49 = vld [vmem:[%s7707_s1 + $0x3b8] sm:$0xff]  ;;  %v667_v50 = vld [vmem:[%s7707_s1 + $0x3b0] sm:$0xff] }
  0xf1   : > { %v692_v54 = vld [vmem:[%s7707_s1 + $0x478] sm:$0xff] }
  0xf3   : > { %v5429_v61 = vpop.permute.xlu1 %942  ;;  %v5431_v62 = vpop.permute.xlu0 %937 }
  0xf4   : > { %7840 = vst [vmem:[#allocation17_spill] sm:$0xff] %v5429_v61  ;;  %7841 = vst [vmem:[#allocation18_spill] sm:$0xff] %v5431_v62  ;;  %1262 = vperm.xlu1 %4746, %v660_v57   ;;  %1257 = vperm.xlu0 %4745, %v659_v58   ;;  %v690_v62 = vld [vmem:[%s7707_s1 + $0x468] sm:$0xff] }
  0xf7   : > { %v5439_v9 = vpop.permute.xlu1 %952  ;;  %v5441_v10 = vpop.permute.xlu0 %947 }
  0xf8   : > { %7842 = vst [vmem:[#allocation19_spill] sm:$0xff] %v5439_v9  ;;  %7843 = vst [vmem:[#allocation20_spill] sm:$0xff] %v5441_v10  ;;  %1272 = vperm.xlu1 %4746, %v662_v1   ;;  %1267 = vperm.xlu0 %4745, %v661_v2   ;;  %v670_v1 = vld [vmem:[%s7707_s1 + $0x3c8] sm:$0xff]  ;;  %v669_v2 = vld [vmem:[%s7707_s1 + $0x3c0] sm:$0xff] }
  0xf9   : > { %v688_v10 = vld [vmem:[%s7707_s1 + $0x458] sm:$0xff] }
  0xfb   : > { %v5449_v25 = vpop.permute.xlu1 %962  ;;  %v5451_v26 = vpop.permute.xlu0 %957 }
  0xfc   : > { %7844 = vst [vmem:[#allocation21_spill] sm:$0xff] %v5449_v25  ;;  %7845 = vst [vmem:[#allocation22_spill] sm:$0xff] %v5451_v26  ;;  %1282 = vperm.xlu1 %4746, %v664_v17   ;;  %1277 = vperm.xlu0 %4745, %v663_v18   ;;  %v686_v26 = vld [vmem:[%s7707_s1 + $0x448] sm:$0xff] }
  0xff   : > { %v5459_v41 = vpop.permute.xlu1 %972  ;;  %v5461_v42 = vpop.permute.xlu0 %967 }
 0x100   : > { %7846 = vst [vmem:[#allocation23_spill] sm:$0xff] %v5459_v41  ;;  %7847 = vst [vmem:[#allocation24_spill] sm:$0xff] %v5461_v42  ;;  %1292 = vperm.xlu1 %4746, %v666_v33   ;;  %1287 = vperm.xlu0 %4745, %v665_v34   ;;  %v672_v33 = vld [vmem:[%s7707_s1 + $0x3d8] sm:$0xff]  ;;  %v671_v34 = vld [vmem:[%s7707_s1 + $0x3d0] sm:$0xff] }
 0x101   : > { %v684_v42 = vld [vmem:[%s7707_s1 + $0x438] sm:$0xff] }
 0x103   : > { %v5469_v57 = vpop.permute.xlu1 %982  ;;  %v5471_v58 = vpop.permute.xlu0 %977 }
 0x104   : > { %7848 = vst [vmem:[#allocation25_spill] sm:$0xff] %v5469_v57  ;;  %7849 = vst [vmem:[#allocation26_spill] sm:$0xff] %v5471_v58  ;;  %1302 = vperm.xlu1 %4746, %v668_v49   ;;  %1297 = vperm.xlu0 %4745, %v667_v50   ;;  %v682_v58 = vld [vmem:[%s7707_s1 + $0x428] sm:$0xff] }
 0x107   : > { %v5479_v17 = vpop.permute.xlu1 %992  ;;  %v5481_v18 = vpop.permute.xlu0 %987 }
 0x108   : > { %7850 = vst [vmem:[#allocation27_spill] sm:$0xff] %v5479_v17  ;;  %7851 = vst [vmem:[#allocation28_spill] sm:$0xff] %v5481_v18  ;;  %1312 = vperm.xlu1 %4746, %v670_v1   ;;  %1307 = vperm.xlu0 %4745, %v669_v2   ;;  %v674_v18 = vld [vmem:[%s7707_s1 + $0x3e8] sm:$0xff]  ;;  %v673_v1 = vld [vmem:[%s7707_s1 + $0x3e0] sm:$0xff] }
 0x10b   : > { %v5489_v49 = vpop.permute.xlu1 %1002  ;;  %v5491_v50 = vpop.permute.xlu0 %997 }
 0x10c   : > { %7852 = vst [vmem:[#allocation29_spill] sm:$0xff] %v5489_v49  ;;  %7853 = vst [vmem:[#allocation30_spill] sm:$0xff] %v5491_v50  ;;  %1322 = vperm.xlu1 %4746, %v672_v33   ;;  %1317 = vperm.xlu0 %4745, %v671_v34   ;;  %v676_v50 = vld [vmem:[%s7707_s1 + $0x3f8] sm:$0xff]  ;;  %v675_v33 = vld [vmem:[%s7707_s1 + $0x3f0] sm:$0xff] }
 0x10f   : > { %v5499_v2 = vpop.permute.xlu1 %1012  ;;  %v5501_v17 = vpop.permute.xlu0 %1007 }
 0x110   : > { %7854 = vst [vmem:[#allocation31_spill] sm:$0xff] %v5499_v2  ;;  %7855 = vst [vmem:[#allocation32_spill] sm:$0xff] %v5501_v17  ;;  %1332 = vperm.xlu1 %4746, %v674_v18   ;;  %1327 = vperm.xlu0 %4745, %v673_v1   ;;  %v678_v17 = vld [vmem:[%s7707_s1 + $0x408] sm:$0xff]  ;;  %v677_v18 = vld [vmem:[%s7707_s1 + $0x400] sm:$0xff] }
 0x113   : > { %v5509_v34 = vpop.permute.xlu1 %1022  ;;  %v5511_v49 = vpop.permute.xlu0 %1017 }
 0x114   : > { %7856 = vst [vmem:[#allocation33_spill] sm:$0xff] %v5509_v34  ;;  %7857 = vst [vmem:[#allocation34_spill] sm:$0xff] %v5511_v49  ;;  %1342 = vperm.xlu1 %4746, %v676_v50   ;;  %1337 = vperm.xlu0 %4745, %v675_v33   ;;  %v680_v49 = vld [vmem:[%s7707_s1 + $0x418] sm:$0xff]  ;;  %v679_v50 = vld [vmem:[%s7707_s1 + $0x410] sm:$0xff] }
 0x117   : > { %v5519_v1 = vpop.permute.xlu1 %1032  ;;  %v5521_v2 = vpop.permute.xlu0 %1027 }
 0x118   : > { %1352 = vperm.xlu1 %4746, %v678_v17   ;;  %1347 = vperm.xlu0 %4745, %v677_v18   ;;  %v681_v17 = vld [vmem:[%s7707_s1 + $0x420] sm:$0xff] }
 0x11b   : > { %v5529_v33 = vpop.permute.xlu1 %1042  ;;  %v5531_v34 = vpop.permute.xlu0 %1037 }
 0x11c   : > { %1362 = vperm.xlu1 %4746, %v680_v49   ;;  %1357 = vperm.xlu0 %4745, %v679_v50   ;;  %v683_v49 = vld [vmem:[%s7707_s1 + $0x430] sm:$0xff] }
 0x11f   : > { %v5539_v18 = vpop.permute.xlu1 %1052  ;;  %v5541_v57 = vpop.permute.xlu0 %1047 }
 0x120   : > { %1372 = vperm.xlu1 %4746, %v682_v58   ;;  %1367 = vperm.xlu0 %4745, %v681_v17   ;;  %v685_v58 = vld [vmem:[%s7707_s1 + $0x440] sm:$0xff] }
 0x123   : > { %v5549_v50 = vpop.permute.xlu1 %1062  ;;  %v5551_v41 = vpop.permute.xlu0 %1057 }
 0x124   : > { %7858 = vst [vmem:[#allocation35_spill] sm:$0xff] %v5551_v41  ;;  %1382 = vperm.xlu1 %4746, %v684_v42   ;;  %1377 = vperm.xlu0 %4745, %v683_v49   ;;  %v687_v42 = vld [vmem:[%s7707_s1 + $0x450] sm:$0xff] }
 0x127   : > { %v5559_v17 = vpop.permute.xlu1 %1072  ;;  %v5561_v25 = vpop.permute.xlu0 %1067 }
 0x128   : > { %7859 = vst [vmem:[#allocation36_spill] sm:$0xff] %v5559_v17  ;;  %7860 = vst [vmem:[#allocation37_spill] sm:$0xff] %v5561_v25  ;;  %1392 = vperm.xlu1 %4746, %v686_v26   ;;  %1387 = vperm.xlu0 %4745, %v685_v58   ;;  %v689_v26 = vld [vmem:[%s7707_s1 + $0x460] sm:$0xff] }
 0x12b   : > { %v5569_v49 = vpop.permute.xlu1 %1082  ;;  %v5571_v9 = vpop.permute.xlu0 %1077 }
 0x12c   : > { %7861 = vst [vmem:[#allocation38_spill] sm:$0xff] %v5569_v49  ;;  %7862 = vst [vmem:[#allocation39_spill] sm:$0xff] %v5571_v9  ;;  %1402 = vperm.xlu1 %4746, %v688_v10   ;;  %1397 = vperm.xlu0 %4745, %v687_v42   ;;  %v691_v10 = vld [vmem:[%s7707_s1 + $0x470] sm:$0xff] }
 0x12f   : > { %v5579_v58 = vpop.permute.xlu1 %1092  ;;  %v5581_v61 = vpop.permute.xlu0 %1087 }
 0x130   : > { %7863 = vst [vmem:[#allocation40_spill] sm:$0xff] %v5579_v58  ;;  %7864 = vst [vmem:[#allocation41_spill] sm:$0xff] %v5581_v61  ;;  %1412 = vperm.xlu1 %4746, %v690_v62   ;;  %1407 = vperm.xlu0 %4745, %v689_v26   ;;  %v693_v62 = vld [vmem:[%s7707_s1 + $0x480] sm:$0xff] }
 0x131   : > { %v1893_v58 = vld [vmem:[%s7708_s2 + $0x300] sm:$0xff] }
 0x133   : > { %v5589_v42 = vpop.permute.xlu1 %1102  ;;  %v5591_v53 = vpop.permute.xlu0 %1097 }
 0x134   : > { %7865 = vst [vmem:[#allocation42_spill] sm:$0xff] %v5589_v42  ;;  %7866 = vst [vmem:[#allocation43_spill] sm:$0xff] %v5591_v53  ;;  %1422 = vperm.xlu1 %4746, %v692_v54   ;;  %1417 = vperm.xlu0 %4745, %v691_v10   ;;  %v695_v54 = vld [vmem:[%s7707_s1 + $0x490] sm:$0xff] }
 0x137   : > { %v5599_v26 = vpop.permute.xlu1 %1112  ;;  %v5601_v45 = vpop.permute.xlu0 %1107 }
 0x138   : > { %7867 = vst [vmem:[#allocation44_spill] sm:$0xff] %v5599_v26  ;;  %7868 = vst [vmem:[#allocation45_spill] sm:$0xff] %v5601_v45  ;;  %1432 = vperm.xlu1 %4746, %v694_v46   ;;  %1427 = vperm.xlu0 %4745, %v693_v62   ;;  %v697_v46 = vld [vmem:[%s7707_s1 + $0x4a0] sm:$0xff]  ;;  %v1894_v26 = vld [vmem:[%s7708_s2 + $0x308] sm:$0xff] }
 0x13b   : > { %v5609_v10 = vpop.permute.xlu1 %1122  ;;  %v5611_v37 = vpop.permute.xlu0 %1117 }
 0x13c   : > { %7869 = vst [vmem:[#allocation46_spill] sm:$0xff] %v5609_v10  ;;  %7870 = vst [vmem:[#allocation47_spill] sm:$0xff] %v5611_v37  ;;  %1442 = vperm.xlu1 %4746, %v696_v38   ;;  %1437 = vperm.xlu0 %4745, %v695_v54   ;;  %v699_v38 = vld [vmem:[%s7707_s1 + $0x4b0] sm:$0xff] }
 0x13d   : > { %v1891_v37 = vld [vmem:[%s7708_s2 + $0x2f0] sm:$0xff] }
 0x13f   : > { %v5619_v62 = vpop.permute.xlu1 %1132  ;;  %v5621_v29 = vpop.permute.xlu0 %1127 }
 0x140   : > { %7871 = vst [vmem:[#allocation48_spill] sm:$0xff] %v5619_v62  ;;  %7872 = vst [vmem:[#allocation49_spill] sm:$0xff] %v5621_v29  ;;  %1452 = vperm.xlu1 %4746, %v698_v30   ;;  %1447 = vperm.xlu0 %4745, %v697_v46   ;;  %v701_v30 = vld [vmem:[%s7707_s1 + $0x4c0] sm:$0xff] }
 0x143   : > { %v5629_v54 = vpop.permute.xlu1 %1142  ;;  %v5631_v21 = vpop.permute.xlu0 %1137 }
 0x144   : > { %7873 = vst [vmem:[#allocation50_spill] sm:$0xff] %v5629_v54  ;;  %7874 = vst [vmem:[#allocation51_spill] sm:$0xff] %v5631_v21  ;;  %1462 = vperm.xlu1 %4746, %v700_v22   ;;  %1457 = vperm.xlu0 %4745, %v699_v38   ;;  %v704_v21 = vld [vmem:[%s7707_s1 + $0x4d8] sm:$0xff]  ;;  %v703_v22 = vld [vmem:[%s7707_s1 + $0x4d0] sm:$0xff] }
 0x147   : > { %v5639_v46 = vpop.permute.xlu1 %1152  ;;  %v5641_v13 = vpop.permute.xlu0 %1147 }
 0x148   : > { %7875 = vst [vmem:[#allocation52_spill] sm:$0xff] %v5639_v46  ;;  %7876 = vst [vmem:[#allocation53_spill] sm:$0xff] %v5641_v13  ;;  %1472 = vperm.xlu1 %4746, %v702_v14   ;;  %1467 = vperm.xlu0 %4745, %v701_v30   ;;  %v1798_v13 = vld [vmem:[%s7708_s2 + $0x8] sm:$0xff]  ;;  %v1797_v14 = vld [vmem:[%s7708_s2] sm:$0xff] }
 0x14b   : > { %v5649_v38 = vpop.permute.xlu1 %1162  ;;  %v5651_v54 = vpop.permute.xlu0 %1157 }
 0x14c   : > { %7877 = vst [vmem:[#allocation54_spill] sm:$0xff] %v5649_v38  ;;  %7878 = vst [vmem:[#allocation55_spill] sm:$0xff] %v5651_v54  ;;  %1482 = vperm.xlu1 %4746, %v704_v21   ;;  %1477 = vperm.xlu0 %4745, %v703_v22   ;;  %v1800_v54 = vld [vmem:[%s7708_s2 + $0x18] sm:$0xff]  ;;  %v1799_v21 = vld [vmem:[%s7708_s2 + $0x10] sm:$0xff] }
 0x14f   : > { %v5659_v30 = vpop.permute.xlu1 %1172  ;;  %v5661_v46 = vpop.permute.xlu0 %1167 }
 0x150   : > { %7879 = vst [vmem:[#allocation56_spill] sm:$0xff] %v5659_v30  ;;  %7880 = vst [vmem:[#allocation57_spill] sm:$0xff] %v5661_v46  ;;  %1960 = vperm.xlu1 %4746, %v1798_v13   ;;  %1955 = vperm.xlu0 %4745, %v1797_v14   ;;  %v1802_v46 = vld [vmem:[%s7708_s2 + $0x28] sm:$0xff]  ;;  %v1801_v13 = vld [vmem:[%s7708_s2 + $0x20] sm:$0xff] }
 0x153   : > { %v5669_v22 = vpop.permute.xlu1 %1182  ;;  %v5671_v38 = vpop.permute.xlu0 %1177 }
 0x154   : > { %7881 = vst [vmem:[#allocation58_spill] sm:$0xff] %v5669_v22  ;;  %7882 = vst [vmem:[#allocation59_spill] sm:$0xff] %v5671_v38  ;;  %1970 = vperm.xlu1 %4746, %v1800_v54   ;;  %1965 = vperm.xlu0 %4745, %v1799_v21   ;;  %v1804_v38 = vld [vmem:[%s7708_s2 + $0x38] sm:$0xff]  ;;  %v1803_v54 = vld [vmem:[%s7708_s2 + $0x30] sm:$0xff] }
 0x157   : > { %v5679_v14 = vpop.permute.xlu1 %1192  ;;  %v5681_v30 = vpop.permute.xlu0 %1187 }
 0x158   : > { %7883 = vst [vmem:[#allocation60_spill] sm:$0xff] %v5679_v14  ;;  %7884 = vst [vmem:[#allocation61_spill] sm:$0xff] %v5681_v30  ;;  %1980 = vperm.xlu1 %4746, %v1802_v46   ;;  %1975 = vperm.xlu0 %4745, %v1801_v13   ;;  %v1806_v30 = vld [vmem:[%s7708_s2 + $0x48] sm:$0xff]  ;;  %v1805_v46 = vld [vmem:[%s7708_s2 + $0x40] sm:$0xff] }
 0x15b   : > { %v5689_v21 = vpop.permute.xlu1 %1202  ;;  %v5691_v22 = vpop.permute.xlu0 %1197 }
 0x15c   : > { %7885 = vst [vmem:[#allocation62_spill] sm:$0xff] %v5689_v21  ;;  %7886 = vst [vmem:[#allocation63_spill] sm:$0xff] %v5691_v22  ;;  %1990 = vperm.xlu1 %4746, %v1804_v38   ;;  %1985 = vperm.xlu0 %4745, %v1803_v54   ;;  %v1808_v22 = vld [vmem:[%s7708_s2 + $0x58] sm:$0xff]  ;;  %v1807_v38 = vld [vmem:[%s7708_s2 + $0x50] sm:$0xff] }
 0x15f   : > { %v5699_v13 = vpop.permute.xlu1 %1212  ;;  %v5701_v14 = vpop.permute.xlu0 %1207 }
 0x160   : > { %7887 = vst [vmem:[#allocation64_spill] sm:$0xff] %v5699_v13  ;;  %7888 = vst [vmem:[#allocation65_spill] sm:$0xff] %v5701_v14  ;;  %2000 = vperm.xlu1 %4746, %v1806_v30   ;;  %1995 = vperm.xlu0 %4745, %v1805_v46   ;;  %v1810_v14 = vld [vmem:[%s7708_s2 + $0x68] sm:$0xff]  ;;  %v1809_v30 = vld [vmem:[%s7708_s2 + $0x60] sm:$0xff] }
 0x163   : > { %v5709_v54 = vpop.permute.xlu1 %1222  ;;  %v5711_v21 = vpop.permute.xlu0 %1217 }
 0x164   : > { %7889 = vst [vmem:[#allocation66_spill] sm:$0xff] %v5709_v54  ;;  %7890 = vst [vmem:[#allocation67_spill] sm:$0xff] %v5711_v21  ;;  %2010 = vperm.xlu1 %4746, %v1808_v22   ;;  %2005 = vperm.xlu0 %4745, %v1807_v38   ;;  %v1812_v21 = vld [vmem:[%s7708_s2 + $0x78] sm:$0xff]  ;;  %v1811_v22 = vld [vmem:[%s7708_s2 + $0x70] sm:$0xff] }
 0x167   : > { %v5719_v46 = vpop.permute.xlu1 %1232  ;;  %v5721_v13 = vpop.permute.xlu0 %1227 }
 0x168   : > { %7891 = vst [vmem:[#allocation68_spill] sm:$0xff] %v5719_v46  ;;  %7892 = vst [vmem:[#allocation69_spill] sm:$0xff] %v5721_v13  ;;  %2020 = vperm.xlu1 %4746, %v1810_v14   ;;  %2015 = vperm.xlu0 %4745, %v1809_v30   ;;  %v1814_v13 = vld [vmem:[%s7708_s2 + $0x88] sm:$0xff]  ;;  %v1813_v14 = vld [vmem:[%s7708_s2 + $0x80] sm:$0xff] }
 0x16b   : > { %v5729_v38 = vpop.permute.xlu1 %1242  ;;  %v5731_v54 = vpop.permute.xlu0 %1237 }
 0x16c   : > { %7893 = vst [vmem:[#allocation70_spill] sm:$0xff] %v5729_v38  ;;  %7894 = vst [vmem:[#allocation71_spill] sm:$0xff] %v5731_v54  ;;  %2030 = vperm.xlu1 %4746, %v1812_v21   ;;  %2025 = vperm.xlu0 %4745, %v1811_v22   ;;  %v1816_v54 = vld [vmem:[%s7708_s2 + $0x98] sm:$0xff]  ;;  %v1815_v21 = vld [vmem:[%s7708_s2 + $0x90] sm:$0xff] }
 0x16f   : > { %v5739_v30 = vpop.permute.xlu1 %1252  ;;  %v5741_v46 = vpop.permute.xlu0 %1247 }
 0x170   : > { %7895 = vst [vmem:[#allocation72_spill] sm:$0xff] %v5739_v30  ;;  %7896 = vst [vmem:[#allocation73_spill] sm:$0xff] %v5741_v46  ;;  %2040 = vperm.xlu1 %4746, %v1814_v13   ;;  %2035 = vperm.xlu0 %4745, %v1813_v14   ;;  %v1818_v46 = vld [vmem:[%s7708_s2 + $0xa8] sm:$0xff]  ;;  %v1817_v13 = vld [vmem:[%s7708_s2 + $0xa0] sm:$0xff] }
 0x173   : > { %v5749_v22 = vpop.permute.xlu1 %1262  ;;  %v5751_v38 = vpop.permute.xlu0 %1257 }
 0x174   : > { %7897 = vst [vmem:[#allocation74_spill] sm:$0xff] %v5749_v22  ;;  %7898 = vst [vmem:[#allocation75_spill] sm:$0xff] %v5751_v38  ;;  %2050 = vperm.xlu1 %4746, %v1816_v54   ;;  %2045 = vperm.xlu0 %4745, %v1815_v21   ;;  %v1820_v38 = vld [vmem:[%s7708_s2 + $0xb8] sm:$0xff]  ;;  %v1819_v54 = vld [vmem:[%s7708_s2 + $0xb0] sm:$0xff] }
 0x177   : > { %v5759_v14 = vpop.permute.xlu1 %1272  ;;  %v5761_v30 = vpop.permute.xlu0 %1267 }
 0x178   : > { %7899 = vst [vmem:[#allocation76_spill] sm:$0xff] %v5759_v14  ;;  %7900 = vst [vmem:[#allocation77_spill] sm:$0xff] %v5761_v30  ;;  %2060 = vperm.xlu1 %4746, %v1818_v46   ;;  %2055 = vperm.xlu0 %4745, %v1817_v13   ;;  %v1822_v30 = vld [vmem:[%s7708_s2 + $0xc8] sm:$0xff]  ;;  %v1821_v46 = vld [vmem:[%s7708_s2 + $0xc0] sm:$0xff] }
 0x17b   : > { %v5769_v21 = vpop.permute.xlu1 %1282  ;;  %v5771_v22 = vpop.permute.xlu0 %1277 }
 0x17c   : > { %7901 = vst [vmem:[#allocation78_spill] sm:$0xff] %v5769_v21  ;;  %7902 = vst [vmem:[#allocation79_spill] sm:$0xff] %v5771_v22  ;;  %2070 = vperm.xlu1 %4746, %v1820_v38   ;;  %2065 = vperm.xlu0 %4745, %v1819_v54   ;;  %v1824_v22 = vld [vmem:[%s7708_s2 + $0xd8] sm:$0xff]  ;;  %v1823_v38 = vld [vmem:[%s7708_s2 + $0xd0] sm:$0xff] }
 0x17f   : > { %v5779_v13 = vpop.permute.xlu1 %1292  ;;  %v5781_v14 = vpop.permute.xlu0 %1287 }
 0x180   : > { %7903 = vst [vmem:[#allocation80_spill] sm:$0xff] %v5779_v13  ;;  %7904 = vst [vmem:[#allocation81_spill] sm:$0xff] %v5781_v14  ;;  %2080 = vperm.xlu1 %4746, %v1822_v30   ;;  %2075 = vperm.xlu0 %4745, %v1821_v46   ;;  %v1826_v30 = vld [vmem:[%s7708_s2 + $0xe8] sm:$0xff]  ;;  %v1825_v46 = vld [vmem:[%s7708_s2 + $0xe0] sm:$0xff] }
 0x183   : > { %v5789_v54 = vpop.permute.xlu1 %1302  ;;  %v5791_v21 = vpop.permute.xlu0 %1297 }
 0x184   : > { %7905 = vst [vmem:[#allocation82_spill] sm:$0xff] %v5789_v54  ;;  %7906 = vst [vmem:[#allocation83_spill] sm:$0xff] %v5791_v21  ;;  %2090 = vperm.xlu1 %4746, %v1824_v22   ;;  %2085 = vperm.xlu0 %4745, %v1823_v38   ;;  %v1828_v21 = vld [vmem:[%s7708_s2 + $0xf8] sm:$0xff]  ;;  %v1827_v22 = vld [vmem:[%s7708_s2 + $0xf0] sm:$0xff] }
 0x187   : > { %v5799_v14 = vpop.permute.xlu1 %1312  ;;  %v5801_v13 = vpop.permute.xlu0 %1307 }
 0x188   : > { %7907 = vst [vmem:[#allocation84_spill] sm:$0xff] %v5799_v14  ;;  %7908 = vst [vmem:[#allocation85_spill] sm:$0xff] %v5801_v13  ;;  %2100 = vperm.xlu1 %4746, %v1826_v30   ;;  %2095 = vperm.xlu0 %4745, %v1825_v46   ;;  %v1830_v30 = vld [vmem:[%s7708_s2 + $0x108] sm:$0xff]  ;;  %v1829_v46 = vld [vmem:[%s7708_s2 + $0x100] sm:$0xff] }
 0x18b   : > { %v5809_v38 = vpop.permute.xlu1 %1322  ;;  %v5811_v54 = vpop.permute.xlu0 %1317 }
 0x18c   : > { %7909 = vst [vmem:[#allocation86_spill] sm:$0xff] %v5809_v38  ;;  %7910 = vst [vmem:[#allocation87_spill] sm:$0xff] %v5811_v54  ;;  %2110 = vperm.xlu1 %4746, %v1828_v21   ;;  %2105 = vperm.xlu0 %4745, %v1827_v22   ;;  %v1862_v21 = vld [vmem:[%s7708_s2 + $0x208] sm:$0xff]  ;;  %v1861_v22 = vld [vmem:[%s7708_s2 + $0x200] sm:$0xff] }
 0x18f   : > { %v5820_v13 = vpop.permute.xlu1 %1332  ;;  %v5822_v14 = vpop.permute.xlu0 %1327 }
 0x190   : > { %7911 = vst [vmem:[#allocation88_spill] sm:$0xff] %v5820_v13  ;;  %7912 = vst [vmem:[#allocation89_spill] sm:$0xff] %v5822_v14  ;;  %2120 = vperm.xlu1 %4746, %v1830_v30   ;;  %2115 = vperm.xlu0 %4745, %v1829_v46   ;;  %v1864_v30 = vld [vmem:[%s7708_s2 + $0x218] sm:$0xff]  ;;  %v1863_v46 = vld [vmem:[%s7708_s2 + $0x210] sm:$0xff] }
 0x191   : > { %v4749_v14 = vld [vmem:[%s5840_s9 + $0x4] ss:$40 sps:$4 sm:$0xff]  }
 0x192   : > { %v1865_v13 = vld [vmem:[%s7708_s2 + $0x220] sm:$0xff]  ;;  %3918 = vmatprep.mubr.bf16.mxu1 %v4749_v14  ;;  %v1870_v14 = vld [vmem:[%s7708_s2 + $0x248] sm:$0xff] }
 0x193   : > { %v5830_v54 = vpop.permute.xlu1 %1342  ;;  %v5832_v38 = vpop.permute.xlu0 %1337 }
 0x194   : > { %7913 = vst [vmem:[#allocation90_spill] sm:$0xff] %v5830_v54  ;;  %7914 = vst [vmem:[#allocation91_spill] sm:$0xff] %v5832_v38  ;;  %2280 = vperm.xlu1 %4746, %v1862_v21   ;;  %2275 = vperm.xlu0 %4745, %v1861_v22   ;;  %v1866_v21 = vld [vmem:[%s7708_s2 + $0x228] sm:$0xff] }
 0x197   : > { %v5846_v54 = vpop.permute.xlu1 %1352  ;;  %v5848_v38 = vpop.permute.xlu0 %1347 }
 0x198   : > { %7915 = vst [vmem:[#allocation92_spill] sm:$0xff] %v5846_v54  ;;  %7916 = vst [vmem:[#allocation93_spill] sm:$0xff] %v5848_v38  ;;  %2290 = vperm.xlu1 %4746, %v1864_v30   ;;  %2285 = vperm.xlu0 %4745, %v1863_v46   ;;  %v1868_v38 = vld [vmem:[%s7708_s2 + $0x238] sm:$0xff]  ;;  %v1867_v30 = vld [vmem:[%s7708_s2 + $0x230] sm:$0xff] }
 0x199   : > { %v1869_v46 = vld [vmem:[%s7708_s2 + $0x240] sm:$0xff] }
 0x19b   : > { %v5856_v22 = vpop.permute.xlu1 %1362  ;;  %v5858_v29 = vpop.permute.xlu0 %1357 }
 0x19c   : > { %7917 = vst [vmem:[#allocation94_spill] sm:$0xff] %v5856_v22  ;;  %7918 = vst [vmem:[#allocation95_spill] sm:$0xff] %v5858_v29  ;;  %2300 = vperm.xlu1 %4746, %v1866_v21   ;;  %2295 = vperm.xlu0 %4745, %v1865_v13   ;;  %v1872_v13 = vld [vmem:[%s7708_s2 + $0x258] sm:$0xff] }
 0x19f   : > { %v5866_v54 = vpop.permute.xlu1 %1372  ;;  %v5868_v62 = vpop.permute.xlu0 %1367 }
 0x1a0   : > { %7919 = vst [vmem:[#allocation96_spill] sm:$0xff] %v5866_v54  ;;  %7920 = vst [vmem:[#allocation97_spill] sm:$0xff] %v5868_v62  ;;  %2310 = vperm.xlu1 %4746, %v1868_v38   ;;  %2305 = vperm.xlu0 %4745, %v1867_v30   ;;  %v1871_v38 = vld [vmem:[%s7708_s2 + $0x250] sm:$0xff]  ;;  %v1874_v30 = vld [vmem:[%s7708_s2 + $0x268] sm:$0xff] }
 0x1a3   : > { %v5876_v21 = vpop.permute.xlu1 %1382  ;;  %v5878_v29 = vpop.permute.xlu0 %1377 }
 0x1a4   : > { %7921 = vst [vmem:[#allocation98_spill] sm:$0xff] %v5876_v21  ;;  %7922 = vst [vmem:[#allocation99_spill] sm:$0xff] %v5878_v29  ;;  %2320 = vperm.xlu1 %4746, %v1870_v14   ;;  %2315 = vperm.xlu0 %4745, %v1869_v46   ;;  %v1873_v14 = vld [vmem:[%s7708_s2 + $0x260] sm:$0xff]  ;;  %v1876_v46 = vld [vmem:[%s7708_s2 + $0x278] sm:$0xff] }
 0x1a7   : > { %v5886_v62 = vpop.permute.xlu1 %1392  ;;  %v5888_v54 = vpop.permute.xlu0 %1387 }
 0x1a8   : > { %7923 = vst [vmem:[#allocation100_spill] sm:$0xff] %v5886_v62  ;;  %7924 = vst [vmem:[#allocation101_spill] sm:$0xff] %v5888_v54  ;;  %2330 = vperm.xlu1 %4746, %v1872_v13   ;;  %2325 = vperm.xlu0 %4745, %v1871_v38   ;;  %v1875_v13 = vld [vmem:[%s7708_s2 + $0x270] sm:$0xff]  ;;  %v1878_v38 = vld [vmem:[%s7708_s2 + $0x288] sm:$0xff] }
 0x1ab   : > { %v5896_v29 = vpop.permute.xlu1 %1402  ;;  %v5898_v21 = vpop.permute.xlu0 %1397 }
 0x1ac   : > { %7925 = vst [vmem:[#allocation102_spill] sm:$0xff] %v5896_v29  ;;  %7926 = vst [vmem:[#allocation103_spill] sm:$0xff] %v5898_v21  ;;  %2340 = vperm.xlu1 %4746, %v1874_v30   ;;  %2335 = vperm.xlu0 %4745, %v1873_v14   ;;  %v1877_v30 = vld [vmem:[%s7708_s2 + $0x280] sm:$0xff]  ;;  %v1892_v29 = vld [vmem:[%s7708_s2 + $0x2f8] sm:$0xff] }
 0x1af   : > { %v5906_v54 = vpop.permute.xlu1 %1412  ;;  %v5908_v62 = vpop.permute.xlu0 %1407 }
 0x1b0   : > { %7927 = vst [vmem:[#allocation104_spill] sm:$0xff] %v5906_v54  ;;  %7928 = vst [vmem:[#allocation105_spill] sm:$0xff] %v5908_v62  ;;  %2350 = vperm.xlu1 %4746, %v1876_v46   ;;  %2345 = vperm.xlu0 %4745, %v1875_v13   ;;  %v1880_v62 = vld [vmem:[%s7708_s2 + $0x298] sm:$0xff]  ;;  %v1879_v46 = vld [vmem:[%s7708_s2 + $0x290] sm:$0xff] }
 0x1b3   : > { %v5916_v14 = vpop.permute.xlu1 %1422  ;;  %v5918_v21 = vpop.permute.xlu0 %1417 }
 0x1b4   : > { %7929 = vst [vmem:[#allocation106_spill] sm:$0xff] %v5916_v14  ;;  %7930 = vst [vmem:[#allocation107_spill] sm:$0xff] %v5918_v21  ;;  %2360 = vperm.xlu1 %4746, %v1878_v38   ;;  %2355 = vperm.xlu0 %4745, %v1877_v30   ;;  %v1882_v21 = vld [vmem:[%s7708_s2 + $0x2a8] sm:$0xff]  ;;  %v1881_v38 = vld [vmem:[%s7708_s2 + $0x2a0] sm:$0xff] }
 0x1b7   : > { %v5926_v13 = vpop.permute.xlu1 %1432  ;;  %v5928_v54 = vpop.permute.xlu0 %1427 }
 0x1b8   : > { %7931 = vst [vmem:[#allocation108_spill] sm:$0xff] %v5926_v13  ;;  %7932 = vst [vmem:[#allocation109_spill] sm:$0xff] %v5928_v54  ;;  %2370 = vperm.xlu1 %4746, %v1880_v62   ;;  %2365 = vperm.xlu0 %4745, %v1879_v46   ;;  %v1884_v54 = vld [vmem:[%s7708_s2 + $0x2b8] sm:$0xff]  ;;  %v1883_v62 = vld [vmem:[%s7708_s2 + $0x2b0] sm:$0xff] }
 0x1bb   : > { %v5936_v30 = vpop.permute.xlu1 %1442  ;;  %v5938_v14 = vpop.permute.xlu0 %1437 }
 0x1bc   : > { %7933 = vst [vmem:[#allocation110_spill] sm:$0xff] %v5936_v30  ;;  %7934 = vst [vmem:[#allocation111_spill] sm:$0xff] %v5938_v14  ;;  %2380 = vperm.xlu1 %4746, %v1882_v21   ;;  %2375 = vperm.xlu0 %4745, %v1881_v38   ;;  %v1886_v14 = vld [vmem:[%s7708_s2 + $0x2c8] sm:$0xff]  ;;  %v1885_v21 = vld [vmem:[%s7708_s2 + $0x2c0] sm:$0xff] }
 0x1bf   : > { %v5946_v46 = vpop.permute.xlu1 %1452  ;;  %v5948_v13 = vpop.permute.xlu0 %1447 }
 0x1c0   : > { %7935 = vst [vmem:[#allocation112_spill] sm:$0xff] %v5946_v46  ;;  %7936 = vst [vmem:[#allocation113_spill] sm:$0xff] %v5948_v13  ;;  %2390 = vperm.xlu1 %4746, %v1884_v54   ;;  %2385 = vperm.xlu0 %4745, %v1883_v62   ;;  %v1888_v13 = vld [vmem:[%s7708_s2 + $0x2d8] sm:$0xff]  ;;  %v1887_v54 = vld [vmem:[%s7708_s2 + $0x2d0] sm:$0xff] }
 0x1c3   : > { %v5956_v38 = vpop.permute.xlu1 %1462  ;;  %v5958_v30 = vpop.permute.xlu0 %1457 }
 0x1c4   : > { %7937 = vst [vmem:[#allocation114_spill] sm:$0xff] %v5956_v38  ;;  %7938 = vst [vmem:[#allocation115_spill] sm:$0xff] %v5958_v30  ;;  %2400 = vperm.xlu1 %4746, %v1886_v14   ;;  %2395 = vperm.xlu0 %4745, %v1885_v21   ;;  %v1890_v30 = vld [vmem:[%s7708_s2 + $0x2e8] sm:$0xff]  ;;  %v1889_v14 = vld [vmem:[%s7708_s2 + $0x2e0] sm:$0xff] }
 0x1c5   : > { %v239_v21 = vld [vmem:[%s7706_s0 + $0x10] sm:$0xff] }
 0x1c6   : > { %v1487_v22 = vmul.f32 %v5211_v8, %v239_v21 }
 0x1c7   : > { %v5966_v62 = vpop.permute.xlu1 %1472  ;;  %v5968_v46 = vpop.permute.xlu0 %1467 }
 0x1c8   : > { %7939 = vst [vmem:[#allocation116_spill] sm:$0xff] %v5966_v62  ;;  %7940 = vst [vmem:[#allocation117_spill] sm:$0xff] %v5968_v46  ;;  %2410 = vperm.xlu1 %4746, %v1888_v13   ;;  %2405 = vperm.xlu0 %4745, %v1887_v54   ;;  %v240_v62 = vld [vmem:[%s7706_s0 + $0x18] sm:$0xff]  ;;  %v237_v13 = vld [vmem:[%s7706_s0] sm:$0xff] }
 0x1c9   : > { %v238_v54 = vld [vmem:[%s7706_s0 + $0x8] sm:$0xff]  ;;  %v1485_v10 = vmul.f32 %v5201_v4, %v237_v13 }
 0x1ca   : > { %v1486_v45 = vmul.f32 %v5201_v4, %v238_v54 }
 0x1cb   : > { %v5982_v38 = vpop.permute.xlu1 %1482  ;;  %v5990_v46 = vpop.permute.xlu0 %1477 }
 0x1cc   : > { %7941 = vst [vmem:[#allocation118_spill] sm:$0xff] %v5982_v38  ;;  %7942 = vst [vmem:[#allocation119_spill] sm:$0xff] %v5990_v46  ;;  %2420 = vperm.xlu1 %4746, %v1890_v30   ;;  %2415 = vperm.xlu0 %4745, %v1889_v14   ;;  %v1488_v38 = vmul.f32 %v5211_v8, %v240_v62  ;;  %v243_v30 = vld [vmem:[%s7706_s0 + $0x30] sm:$0xff]  ;;  %v244_v14 = vld [vmem:[%s7706_s0 + $0x38] sm:$0xff] }
 0x1cd   : > { %v241_v8 = vld [vmem:[%s7706_s0 + $0x20] sm:$0xff]  ;;  %v242_v62 = vld [vmem:[%s7706_s0 + $0x28] sm:$0xff]  ;;  %v1491_v42 = vmul.f32 %v5209_v7, %v243_v30  ;;  %v1492_v61 = vmul.f32 %v5209_v7, %v244_v14 }
 0x1ce   : > { %v245_v30 = vld [vmem:[%s7706_s0 + $0x40] sm:$0xff]  ;;  %v246_v14 = vld [vmem:[%s7706_s0 + $0x48] sm:$0xff] }
 0x1cf   : > { %v1961_v46 = vpop.permute.xlu1 %1960  ;;  %v1956_v13 = vpop.permute.xlu0 %1955 }
 0x1d0   : > { %v2735_v21 = vadd.f32 %v1961_v46, %v1487_v22  ;;  %2430 = vperm.xlu1 %4746, %v1892_v29   ;;  %v2736_v4 = vadd.f32 %v1961_v46, %v1488_v38  ;;  %v2733_v54 = vadd.f32 %v1956_v13, %v1485_v10  ;;  %2425 = vperm.xlu0 %4745, %v1891_v37   ;;  %v247_v37 = vld [vmem:[%s7706_s0 + $0x50] sm:$0xff] }
 0x1d1   : > { %v2734_v53 = vadd.f32 %v1956_v13, %v1486_v45  ;;  %v1489_v29 = vmul.f32 %v5199_v3, %v241_v8  ;;  %v1490_v10 = vmul.f32 %v5199_v3, %v242_v62  ;;  %v248_v45 = vld [vmem:[%s7706_s0 + $0x58] sm:$0xff] }
 0x1d2   : > { %v3048_v9 = vmax.f32 %v2736_v4, 0.0  ;;  %v3047_v22 = vmax.f32 %v2735_v21, 0.0  ;;  %v3045_v38 = vmax.f32 %v2733_v54, 0.0  ;;  %v1495_v54 = vmul.f32 %v5219_v11, %v247_v37 }
 0x1d3   : > { %v1971_v46 = vpop.permute.xlu1 %1970  ;;  %v3046_v7 = vmax.f32 %v2734_v53, 0.0  ;;  %v1966_v62 = vpop.permute.xlu0 %1965  ;;  %v1832_v53 = vld [vmem:[%s7708_s2 + $0x118] sm:$0xff]  ;;  %v1496_v25 = vmul.f32 %v5219_v11, %v248_v45 }
 0x1d4   : > { %v2739_v3 = vadd.f32 %v1971_v46, %v1491_v42  ;;  %v2740_v8 = vadd.f32 %v1971_v46, %v1492_v61  ;;  %2440 = vperm.xlu1 %4746, %v1894_v26   ;;  %v2737_v21 = vadd.f32 %v1966_v62, %v1489_v29  ;;  %v2738_v13 = vadd.f32 %v1966_v62, %v1490_v10  ;;  %v1831_v61 = vld [vmem:[%s7708_s2 + $0x110] sm:$0xff]  ;;  %v252_v26 = vld [vmem:[%s7706_s0 + $0x78] sm:$0xff]  ;;  %v249_v10 = vld [vmem:[%s7706_s0 + $0x60] sm:$0xff] }
 0x1d5   : > { %2435 = vperm.xlu0 %4745, %v1893_v58   ;;  %v3418_v4 = vpack.c.bf16 %v3048_v9, %v3046_v7  ;;  %v3417_v49 = vpack.c.bf16 %v3047_v22, %v3045_v38  ;;  %v1493_v42 = vmul.f32 %v5221_v12, %v245_v30  ;;  %v1494_v58 = vmul.f32 %v5221_v12, %v246_v14  ;;  %v251_v9 = vld [vmem:[%s7706_s0 + $0x70] sm:$0xff]  ;;  %v250_v12 = vld [vmem:[%s7706_s0 + $0x68] sm:$0xff] }
 0x1d6   : > { %v3051_v17 = vmax.f32 %v2739_v3, 0.0  ;;  %v3052_v41 = vmax.f32 %v2740_v8, 0.0  ;;  %v3049_v22 = vmax.f32 %v2737_v21, 0.0  ;;  %v3050_v11 = vmax.f32 %v2738_v13, 0.0  ;;  %v1896_v3 = vld [vmem:[%s7708_s2 + $0x318] sm:$0xff] }
 0x1d7   : > { %3886 = vmatprep.subr.bf16.mxu1 %v3418_v4  ;;  %v1981_v29 = vpop.permute.xlu1 %1980  ;;  %v1976_v46 = vpop.permute.xlu0 %1975  ;;  %v4752_v8 = vld [vmem:[%s5840_s9 + $0x14] ss:$40 sps:$4 sm:$0xff]   ;;  %v1499_v62 = vmul.f32 %v5229_v15, %v251_v9  ;;  %v1500_v21 = vmul.f32 %v5229_v15, %v252_v26 }
 0x1d8   : > { %v2743_v37 = vadd.f32 %v1981_v29, %v1495_v54  ;;  %v2744_v45 = vadd.f32 %v1981_v29, %v1496_v25  ;;  %3887 = vmatpush1.bf16.msra.mxu1 %v3417_v49  ;;  %2130 = vperm.xlu1 %4746, %v1832_v53   ;;  %v2741_v7 = vadd.f32 %v1976_v46, %v1493_v42  ;;  %v1895_v25 = vld [vmem:[%s7708_s2 + $0x310] sm:$0xff]  ;;  %v256_v53 = vld [vmem:[%s7706_s0 + $0x98] sm:$0xff]  ;;  %v253_v42 = vld [vmem:[%s7706_s0 + $0x80] sm:$0xff] }
 0x1d9   : > { %v2742_v38 = vadd.f32 %v1976_v46, %v1494_v58  ;;  %2125 = vperm.xlu0 %4745, %v1831_v61   ;;  %v3420_v30 = vpack.c.bf16 %v3052_v41, %v3050_v11  ;;  %v3419_v14 = vpack.c.bf16 %v3051_v17, %v3049_v22  ;;  %v1497_v49 = vmul.f32 %v5231_v16, %v249_v10  ;;  %v255_v17 = vld [vmem:[%s7706_s0 + $0x90] sm:$0xff] }
 0x1da   : > { %v3055_v13 = vmax.f32 %v2743_v37, 0.0  ;;  %v3056_v4 = vmax.f32 %v2744_v45, 0.0  ;;  %v1498_v41 = vmul.f32 %v5231_v16, %v250_v12  ;;  %v3053_v54 = vmax.f32 %v2741_v7, 0.0  ;;  %4104 = vmatprep.mubr.bf16.mxu0 %v4752_v8  ;;  %v254_v16 = vld [vmem:[%s7706_s0 + $0x88] sm:$0xff]  ;;  %v260_v8 = vld [vmem:[%s7706_s0 + $0xb8] sm:$0xff] }
 0x1db   : > { %v3054_v15 = vmax.f32 %v2742_v38, 0.0  ;;  %3888 = vmatprep.subr.bf16.mxu1 %v3420_v30  ;;  %v1991_v61 = vpop.permute.xlu1 %1990  ;;  %v1986_v26 = vpop.permute.xlu0 %1985  ;;  %v1834_v12 = vld [vmem:[%s7708_s2 + $0x128] sm:$0xff]  ;;  %v1503_v37 = vmul.f32 %v5239_v19, %v255_v17  ;;  %v1504_v45 = vmul.f32 %v5239_v19, %v256_v53  ;;  %v1833_v38 = vld [vmem:[%s7708_s2 + $0x120] sm:$0xff]  ;;  %v1501_v30 = vmul.f32 %v5241_v20, %v253_v42 }
 0x1dc   : > { %v2747_v58 = vadd.f32 %v1991_v61, %v1499_v62  ;;  %v2748_v9 = vadd.f32 %v1991_v61, %v1500_v21  ;;  %3889 = vmatpush1.bf16.msra.mxu1 %v3419_v14  ;;  %2450 = vperm.xlu1 %4746, %v1896_v3   ;;  %v2745_v22 = vadd.f32 %v1986_v26, %v1497_v49  ;;  %v259_v3 = vld [vmem:[%s7706_s0 + $0xb0] sm:$0xff] }
 0x1dd   : > { %v2746_v11 = vadd.f32 %v1986_v26, %v1498_v41  ;;  %2445 = vperm.xlu0 %4745, %v1895_v25   ;;  %v3422_v29 = vpack.c.bf16 %v3056_v4, %v3054_v15  ;;  %v3421_v10 = vpack.c.bf16 %v3055_v13, %v3053_v54  ;;  %v1502_v14 = vmul.f32 %v5241_v20, %v254_v16  ;;  %v257_v13 = vld [vmem:[%s7706_s0 + $0xa0] sm:$0xff]  ;;  %v258_v20 = vld [vmem:[%s7706_s0 + $0xa8] sm:$0xff] }
 0x1de   : > { %v3059_v46 = vmax.f32 %v2747_v58, 0.0  ;;  %v3060_v7 = vmax.f32 %v2748_v9, 0.0  ;;  %v3057_v62 = vmax.f32 %v2745_v22, 0.0  ;;  %v1898_v15 = vld [vmem:[%s7708_s2 + $0x328] sm:$0xff]  ;;  %v1507_v61 = vmul.f32 %v5249_v23, %v259_v3  ;;  %v1897_v9 = vld [vmem:[%s7708_s2 + $0x320] sm:$0xff] }
 0x1df   : > { %v3058_v19 = vmax.f32 %v2746_v11, 0.0  ;;  %3890 = vmatprep.subr.bf16.mxu1 %v3422_v29  ;;  %v2001_v21 = vpop.permute.xlu1 %2000  ;;  %v1996_v49 = vpop.permute.xlu0 %1995  ;;  %v1508_v42 = vmul.f32 %v5249_v23, %v260_v8  ;;  %v1505_v26 = vmul.f32 %v5251_v24, %v257_v13  ;;  %v1506_v22 = vmul.f32 %v5251_v24, %v258_v20  ;;  %v263_v11 = vld [vmem:[%s7706_s0 + $0xd0] sm:$0xff]  ;;  %v264_v29 = vld [vmem:[%s7706_s0 + $0xd8] sm:$0xff]  ;;  %v262_v24 = vld [vmem:[%s7706_s0 + $0xc8] sm:$0xff] }
 0x1e0   : > { %v2751_v4 = vadd.f32 %v2001_v21, %v1503_v37  ;;  %v2752_v25 = vadd.f32 %v2001_v21, %v1504_v45  ;;  %3891 = vmatpush1.bf16.msra.mxu1 %v3421_v10  ;;  %2140 = vperm.xlu1 %4746, %v1834_v12   ;;  %v2749_v41 = vadd.f32 %v1996_v49, %v1501_v30  ;;  %v261_v37 = vld [vmem:[%s7706_s0 + $0xc0] sm:$0xff]  ;;  %v1836_v8 = vld [vmem:[%s7708_s2 + $0x138] sm:$0xff]  ;;  %v1835_v20 = vld [vmem:[%s7708_s2 + $0x130] sm:$0xff] }
 0x1e1   : > { %v2750_v17 = vadd.f32 %v1996_v49, %v1502_v14  ;;  %2135 = vperm.xlu0 %4745, %v1833_v38   ;;  %v3424_v53 = vpack.c.bf16 %v3060_v7, %v3058_v19  ;;  %v3423_v54 = vpack.c.bf16 %v3059_v46, %v3057_v62  ;;  %v1511_v62 = vmul.f32 %v5259_v27, %v263_v11  ;;  %v267_v49 = vld [vmem:[%s7706_s0 + $0xf0] sm:$0xff] }
 0x1e2   : > { %v3063_v16 = vmax.f32 %v2751_v4, 0.0  ;;  %v3064_v58 = vmax.f32 %v2752_v25, 0.0  ;;  %v3061_v10 = vmax.f32 %v2749_v41, 0.0  ;;  %v1512_v19 = vmul.f32 %v5259_v27, %v264_v29  ;;  %v268_v41 = vld [vmem:[%s7706_s0 + $0xf8] sm:$0xff] }
 0x1e3   : > { %v3062_v23 = vmax.f32 %v2750_v17, 0.0  ;;  %3892 = vmatprep.subr.bf16.mxu1 %v3424_v53  ;;  %v2011_v12 = vpop.permute.xlu1 %2010  ;;  %v2006_v7 = vpop.permute.xlu0 %2005  ;;  %v1509_v4 = vmul.f32 %v5261_v28, %v261_v37  ;;  %v1510_v25 = vmul.f32 %v5261_v28, %v262_v24  ;;  %v266_v28 = vld [vmem:[%s7706_s0 + $0xe8] sm:$0xff]  ;;  %v1515_v11 = vmul.f32 %v5269_v31, %v267_v49 }
 0x1e4   : > { %v2755_v45 = vadd.f32 %v2011_v12, %v1507_v61  ;;  %v2756_v46 = vadd.f32 %v2011_v12, %v1508_v42  ;;  %3893 = vmatpush1.bf16.msra.mxu1 %v3423_v54  ;;  %2460 = vperm.xlu1 %4746, %v1898_v15   ;;  %v2753_v38 = vadd.f32 %v2006_v7, %v1505_v26  ;;  %v265_v54 = vld [vmem:[%s7706_s0 + $0xe0] sm:$0xff]  ;;  %v1899_v12 = vld [vmem:[%s7708_s2 + $0x330] sm:$0xff] }
 0x1e5   : > { %v2754_v30 = vadd.f32 %v2006_v7, %v1506_v22  ;;  %2455 = vperm.xlu0 %4745, %v1897_v9   ;;  %v3426_v14 = vpack.c.bf16 %v3064_v58, %v3062_v23  ;;  %v3425_v3 = vpack.c.bf16 %v3063_v16, %v3061_v10  ;;  %v1900_v22 = vld [vmem:[%s7708_s2 + $0x338] sm:$0xff]  ;;  %v1516_v29 = vmul.f32 %v5269_v31, %v268_v41 }
 0x1e6   : > { %v3067_v21 = vmax.f32 %v2755_v45, 0.0  ;;  %v3068_v13 = vmax.f32 %v2756_v46, 0.0  ;;  %v3065_v17 = vmax.f32 %v2753_v38, 0.0  ;;  %v1513_v37 = vmul.f32 %v5271_v32, %v265_v54  ;;  %v271_v45 = vld [vmem:[%s7706_s0 + $0x110] sm:$0xff]  ;;  %v272_v46 = vld [vmem:[%s7706_s0 + $0x118] sm:$0xff] }
 0x1e7   : > { %v3066_v27 = vmax.f32 %v2754_v30, 0.0  ;;  %3894 = vmatprep.subr.bf16.mxu1 %v3426_v14  ;;  %v2021_v53 = vpop.permute.xlu1 %2020  ;;  %v2016_v42 = vpop.permute.xlu0 %2015  ;;  %v1514_v24 = vmul.f32 %v5271_v32, %v266_v28  ;;  %v269_v30 = vld [vmem:[%s7706_s0 + $0x100] sm:$0xff]  ;;  %v270_v32 = vld [vmem:[%s7706_s0 + $0x108] sm:$0xff]  ;;  %v275_v54 = vld [vmem:[%s7706_s0 + $0x130] sm:$0xff] }
 0x1e8   : > { %v2759_v15 = vadd.f32 %v2021_v53, %v1511_v62  ;;  %v2760_v61 = vadd.f32 %v2021_v53, %v1512_v19  ;;  %3895 = vmatpush1.bf16.msra.mxu1 %v3425_v3  ;;  %2150 = vperm.xlu1 %4746, %v1836_v8   ;;  %v2757_v16 = vadd.f32 %v2016_v42, %v1509_v4  ;;  %v276_v28 = vld [vmem:[%s7706_s0 + $0x138] sm:$0xff] }
 0x1e9   : > { %v2758_v58 = vadd.f32 %v2016_v42, %v1510_v25  ;;  %2145 = vperm.xlu0 %4745, %v1835_v20   ;;  %v3428_v9 = vpack.c.bf16 %v3068_v13, %v3066_v27  ;;  %v3427_v26 = vpack.c.bf16 %v3067_v21, %v3065_v17  ;;  %v1838_v20 = vld [vmem:[%s7708_s2 + $0x148] sm:$0xff]  ;;  %v1519_v4 = vmul.f32 %v5279_v35, %v271_v45  ;;  %v1837_v17 = vld [vmem:[%s7708_s2 + $0x140] sm:$0xff] }
 0x1ea   : > { %v3071_v10 = vmax.f32 %v2759_v15, 0.0  ;;  %v3072_v23 = vmax.f32 %v2760_v61, 0.0  ;;  %v3069_v7 = vmax.f32 %v2757_v16, 0.0  ;;  %v1520_v25 = vmul.f32 %v5279_v35, %v272_v46  ;;  %v273_v42 = vld [vmem:[%s7706_s0 + $0x120] sm:$0xff] }
 0x1eb   : > { %v3070_v31 = vmax.f32 %v2758_v58, 0.0  ;;  %3896 = vmatprep.subr.bf16.mxu1 %v3428_v9  ;;  %v2031_v38 = vpop.permute.xlu1 %2030  ;;  %v2026_v8 = vpop.permute.xlu0 %2025  ;;  %v1517_v27 = vmul.f32 %v5281_v36, %v269_v30  ;;  %v1518_v53 = vmul.f32 %v5281_v36, %v270_v32  ;;  %v274_v36 = vld [vmem:[%s7706_s0 + $0x128] sm:$0xff]  ;;  %v1901_v45 = vld [vmem:[%s7708_s2 + $0x340] sm:$0xff]  ;;  %v1521_v46 = vmul.f32 %v5291_v40, %v273_v42 }
 0x1ec   : > { %v2763_v14 = vadd.f32 %v2031_v38, %v1515_v11  ;;  %v2764_v3 = vadd.f32 %v2031_v38, %v1516_v29  ;;  %3897 = vmatpush1.bf16.msra.mxu1 %v3427_v26  ;;  %2470 = vperm.xlu1 %4746, %v1900_v22   ;;  %v2761_v62 = vadd.f32 %v2026_v8, %v1513_v37  ;;  %v280_v38 = vld [vmem:[%s7706_s0 + $0x158] sm:$0xff]  ;;  %v281_v42 = vld [vmem:[%s7706_s0 + $0x160] sm:$0xff] }
 0x1ed   : > { %v2762_v19 = vadd.f32 %v2026_v8, %v1514_v24  ;;  %2465 = vperm.xlu0 %4745, %v1899_v12   ;;  %v3430_v21 = vpack.c.bf16 %v3072_v23, %v3070_v31  ;;  %v3429_v13 = vpack.c.bf16 %v3071_v10, %v3069_v7  ;;  %v1902_v10 = vld [vmem:[%s7708_s2 + $0x348] sm:$0xff]  ;;  %v1523_v23 = vmul.f32 %v5289_v39, %v275_v54  ;;  %v279_v31 = vld [vmem:[%s7706_s0 + $0x150] sm:$0xff] }
 0x1ee   : > { %v3075_v49 = vmax.f32 %v2763_v14, 0.0  ;;  %v3076_v41 = vmax.f32 %v2764_v3, 0.0  ;;  %v3073_v15 = vmax.f32 %v2761_v62, 0.0  ;;  %v1524_v12 = vmul.f32 %v5289_v39, %v276_v28  ;;  %v277_v14 = vld [vmem:[%s7706_s0 + $0x140] sm:$0xff]  ;;  %v283_v28 = vld [vmem:[%s7706_s0 + $0x170] sm:$0xff] }
 0x1ef   : > { %v3074_v35 = vmax.f32 %v2762_v19, 0.0  ;;  %3898 = vmatprep.subr.bf16.mxu1 %v3430_v21  ;;  %v2041_v61 = vpop.permute.xlu1 %2040  ;;  %v2036_v9 = vpop.permute.xlu0 %2035  ;;  %v1522_v7 = vmul.f32 %v5291_v40, %v274_v36  ;;  %v278_v40 = vld [vmem:[%s7706_s0 + $0x148] sm:$0xff] }
 0x1f0   : > { %v2767_v16 = vadd.f32 %v2041_v61, %v1519_v4  ;;  %v2768_v58 = vadd.f32 %v2041_v61, %v1520_v25  ;;  %3899 = vmatpush1.bf16.msra.mxu1 %v3429_v13  ;;  %2160 = vperm.xlu1 %4746, %v1838_v20   ;;  %v2765_v26 = vadd.f32 %v2036_v9, %v1517_v27  ;;  %v1840_v4 = vld [vmem:[%s7708_s2 + $0x158] sm:$0xff]  ;;  %v1839_v27 = vld [vmem:[%s7708_s2 + $0x150] sm:$0xff] }
 0x1f1   : > { %v2766_v22 = vadd.f32 %v2036_v9, %v1518_v53  ;;  %2155 = vperm.xlu0 %4745, %v1837_v17   ;;  %v3432_v11 = vpack.c.bf16 %v3076_v41, %v3074_v35  ;;  %v3431_v29 = vpack.c.bf16 %v3075_v49, %v3073_v15  ;;  %v1527_v25 = vmul.f32 %v5299_v43, %v279_v31  ;;  %v284_v15 = vld [vmem:[%s7706_s0 + $0x178] sm:$0xff] }
 0x1f2   : > { %v3079_v37 = vmax.f32 %v2767_v16, 0.0  ;;  %v3080_v24 = vmax.f32 %v2768_v58, 0.0  ;;  %v3077_v30 = vmax.f32 %v2765_v26, 0.0  ;;  %v1528_v49 = vmul.f32 %v5299_v43, %v280_v38  ;;  %v288_v31 = vld [vmem:[%s7706_s0 + $0x198] sm:$0xff] }
 0x1f3   : > { %v3078_v39 = vmax.f32 %v2766_v22, 0.0  ;;  %3900 = vmatprep.subr.bf16.mxu1 %v3432_v11  ;;  %v2051_v32 = vpop.permute.xlu1 %2050  ;;  %v2046_v62 = vpop.permute.xlu0 %2045  ;;  %v1525_v53 = vmul.f32 %v5301_v44, %v277_v14  ;;  %v1526_v54 = vmul.f32 %v5301_v44, %v278_v40  ;;  %v282_v44 = vld [vmem:[%s7706_s0 + $0x168] sm:$0xff] }
 0x1f4   : > { %v2771_v3 = vadd.f32 %v2051_v32, %v1523_v23  ;;  %v2772_v8 = vadd.f32 %v2051_v32, %v1524_v12  ;;  %3901 = vmatpush1.bf16.msra.mxu1 %v3431_v29  ;;  %2480 = vperm.xlu1 %4746, %v1902_v10   ;;  %v2769_v19 = vadd.f32 %v2046_v62, %v1521_v46  ;;  %v1904_v29 = vld [vmem:[%s7708_s2 + $0x358] sm:$0xff] }
 0x1f5   : > { %v2770_v21 = vadd.f32 %v2046_v62, %v1522_v7  ;;  %2475 = vperm.xlu0 %4745, %v1901_v45   ;;  %v3434_v13 = vpack.c.bf16 %v3080_v24, %v3078_v39  ;;  %v3433_v20 = vpack.c.bf16 %v3079_v37, %v3077_v30  ;;  %v1531_v10 = vmul.f32 %v5309_v47, %v283_v28  ;;  %v1903_v24 = vld [vmem:[%s7708_s2 + $0x350] sm:$0xff]  ;;  %v285_v39 = vld [vmem:[%s7706_s0 + $0x180] sm:$0xff] }
 0x1f6   : > { %v3083_v41 = vmax.f32 %v2771_v3, 0.0  ;;  %v3084_v17 = vmax.f32 %v2772_v8, 0.0  ;;  %v3081_v35 = vmax.f32 %v2769_v19, 0.0  ;;  %v1532_v23 = vmul.f32 %v5309_v47, %v284_v15  ;;  %v287_v7 = vld [vmem:[%s7706_s0 + $0x190] sm:$0xff]  ;;  %v289_v15 = vld [vmem:[%s7706_s0 + $0x1a0] sm:$0xff] }
 0x1f7   : > { %v3082_v43 = vmax.f32 %v2770_v21, 0.0  ;;  %3902 = vmatprep.subr.bf16.mxu1 %v3434_v13  ;;  %v2061_v61 = vpop.permute.xlu1 %2060  ;;  %v2056_v58 = vpop.permute.xlu0 %2055  ;;  %v1529_v45 = vmul.f32 %v5311_v48, %v281_v42  ;;  %v1530_v46 = vmul.f32 %v5311_v48, %v282_v44  ;;  %v286_v48 = vld [vmem:[%s7706_s0 + $0x188] sm:$0xff]  ;;  %v1535_v13 = vmul.f32 %v5319_v51, %v287_v7 }
 0x1f8   : > { %v2775_v36 = vadd.f32 %v2061_v61, %v1527_v25  ;;  %v2776_v16 = vadd.f32 %v2061_v61, %v1528_v49  ;;  %3903 = vmatpush1.bf16.msra.mxu1 %v3433_v20  ;;  %2170 = vperm.xlu1 %4746, %v1840_v4   ;;  %v2773_v9 = vadd.f32 %v2056_v58, %v1525_v53  ;;  %v1842_v21 = vld [vmem:[%s7708_s2 + $0x168] sm:$0xff]  ;;  %v1841_v49 = vld [vmem:[%s7708_s2 + $0x160] sm:$0xff]  ;;  %v292_v53 = vld [vmem:[%s7706_s0 + $0x1b8] sm:$0xff] }
 0x1f9   : > { %v2774_v26 = vadd.f32 %v2056_v58, %v1526_v54  ;;  %2165 = vperm.xlu0 %4745, %v1839_v27   ;;  %v3436_v22 = vpack.c.bf16 %v3084_v17, %v3082_v43  ;;  %v3435_v11 = vpack.c.bf16 %v3083_v41, %v3081_v35  ;;  %v1536_v20 = vmul.f32 %v5319_v51, %v288_v31  ;;  %v291_v27 = vld [vmem:[%s7706_s0 + $0x1b0] sm:$0xff]  ;;  %v1906_v58 = vld [vmem:[%s7708_s2 + $0x368] sm:$0xff] }
 0x1fa   : > { %v3087_v12 = vmax.f32 %v2775_v36, 0.0  ;;  %v3088_v37 = vmax.f32 %v2776_v16, 0.0  ;;  %v3085_v38 = vmax.f32 %v2773_v9, 0.0  ;;  %v1533_v41 = vmul.f32 %v5321_v52, %v285_v39 }
 0x1fb   : > { %v3086_v47 = vmax.f32 %v2774_v26, 0.0  ;;  %3904 = vmatprep.subr.bf16.mxu1 %v3436_v22  ;;  %v2071_v30 = vpop.permute.xlu1 %2070  ;;  %v2066_v40 = vpop.permute.xlu0 %2065  ;;  %v1534_v17 = vmul.f32 %v5321_v52, %v286_v48  ;;  %v290_v52 = vld [vmem:[%s7706_s0 + $0x1a8] sm:$0xff]  ;;  %v1539_v9 = vmul.f32 %v5329_v55, %v291_v27  ;;  %v1540_v26 = vmul.f32 %v5329_v55, %v292_v53 }
 0x1fc   : > { %v2779_v32 = vadd.f32 %v2071_v30, %v1531_v10  ;;  %v2780_v14 = vadd.f32 %v2071_v30, %v1532_v23  ;;  %3905 = vmatpush1.bf16.msra.mxu1 %v3435_v11  ;;  %2490 = vperm.xlu1 %4746, %v1904_v29   ;;  %v2777_v3 = vadd.f32 %v2066_v40, %v1529_v45  ;;  %v1905_v29 = vld [vmem:[%s7708_s2 + $0x360] sm:$0xff] }
 0x1fd   : > { %v2778_v8 = vadd.f32 %v2066_v40, %v1530_v46  ;;  %2485 = vperm.xlu0 %4745, %v1903_v24   ;;  %v3438_v62 = vpack.c.bf16 %v3088_v37, %v3086_v47  ;;  %v3437_v19 = vpack.c.bf16 %v3087_v12, %v3085_v38  ;;  %v1537_v10 = vmul.f32 %v5331_v56, %v289_v15  ;;  %v295_v12 = vld [vmem:[%s7706_s0 + $0x1d0] sm:$0xff]  ;;  %v296_v37 = vld [vmem:[%s7706_s0 + $0x1d8] sm:$0xff]  ;;  %v293_v46 = vld [vmem:[%s7706_s0 + $0x1c0] sm:$0xff] }
 0x1fe   : > { %v3091_v4 = vmax.f32 %v2779_v32, 0.0  ;;  %v3092_v25 = vmax.f32 %v2780_v14, 0.0  ;;  %v3089_v54 = vmax.f32 %v2777_v3, 0.0  ;;  %v1538_v23 = vmul.f32 %v5331_v56, %v290_v52  ;;  %v294_v56 = vld [vmem:[%s7706_s0 + $0x1c8] sm:$0xff]  ;;  %v1844_v32 = vld [vmem:[%s7708_s2 + $0x178] sm:$0xff] }
 0x1ff   : > { %v3090_v51 = vmax.f32 %v2778_v8, 0.0  ;;  %3906 = vmatprep.subr.bf16.mxu1 %v3438_v62  ;;  %v2081_v28 = vpop.permute.xlu1 %2080  ;;  %v2076_v61 = vpop.permute.xlu0 %2075  ;;  %v1543_v14 = vmul.f32 %v5339_v59, %v295_v12  ;;  %v1544_v40 = vmul.f32 %v5339_v59, %v296_v37  ;;  %v1843_v62 = vld [vmem:[%s7708_s2 + $0x170] sm:$0xff]  ;;  %v1908_v15 = vld [vmem:[%s7708_s2 + $0x378] sm:$0xff] }
 0x200   : > { %v2783_v35 = vadd.f32 %v2081_v28, %v1535_v13  ;;  %v2784_v43 = vadd.f32 %v2081_v28, %v1536_v20  ;;  %3907 = vmatpush1.bf16.msra.mxu1 %v3437_v19  ;;  %2180 = vperm.xlu1 %4746, %v1842_v21   ;;  %v2781_v42 = vadd.f32 %v2076_v61, %v1533_v41  ;;  %v299_v13 = vld [vmem:[%s7706_s0 + $0x1f0] sm:$0xff]  ;;  %v300_v20 = vld [vmem:[%s7706_s0 + $0x1f8] sm:$0xff] }
 0x201   : > { %v2782_v44 = vadd.f32 %v2076_v61, %v1534_v17  ;;  %2175 = vperm.xlu0 %4745, %v1841_v49   ;;  %v3440_v36 = vpack.c.bf16 %v3092_v25, %v3090_v51  ;;  %v3439_v16 = vpack.c.bf16 %v3091_v4, %v3089_v54  ;;  %v1541_v19 = vmul.f32 %v5341_v60, %v293_v46  ;;  %v297_v49 = vld [vmem:[%s7706_s0 + $0x1e0] sm:$0xff] }
 0x202   : > { %v3095_v22 = vmax.f32 %v2783_v35, 0.0  ;;  %v3096_v11 = vmax.f32 %v2784_v43, 0.0  ;;  %v3093_v24 = vmax.f32 %v2781_v42, 0.0  ;;  %v1542_v21 = vmul.f32 %v5341_v60, %v294_v56  ;;  %v298_v60 = vld [vmem:[%s7706_s0 + $0x1e8] sm:$0xff]  ;;  %v1907_v42 = vld [vmem:[%s7708_s2 + $0x370] sm:$0xff] }
 0x203   : > { %v3094_v55 = vmax.f32 %v2782_v44, 0.0  ;;  %3908 = vmatprep.subr.bf16.mxu1 %v3440_v36  ;;  %v2091_v45 = vpop.permute.xlu1 %2090  ;;  %v2086_v38 = vpop.permute.xlu0 %2085  ;;  %v1547_v52 = vmul.f32 %v5349_v63, %v299_v13  ;;  %v1548_v35 = vmul.f32 %v5349_v63, %v300_v20  ;;  %v1545_v44 = vmul.f32 %v5351_v0, %v297_v49  ;;  %v1910_v20 = vld [vmem:[%s7708_s2 + $0x388] sm:$0xff] }
 0x204   : > { %v2787_v7 = vadd.f32 %v2091_v45, %v1539_v9  ;;  %v2788_v31 = vadd.f32 %v2091_v45, %v1540_v26  ;;  %3909 = vmatpush1.bf16.msra.mxu1 %v3439_v16  ;;  %2500 = vperm.xlu1 %4746, %v1906_v58   ;;  %v2785_v47 = vadd.f32 %v2086_v38, %v1537_v10  ;;  %v303_v16 = vld [vmem:[%s7706_s0 + $0x210] sm:$0xff]  ;;  %v304_v58 = vld [vmem:[%s7706_s0 + $0x218] sm:$0xff] }
 0x205   : > { %v2786_v30 = vadd.f32 %v2086_v38, %v1538_v23  ;;  %2495 = vperm.xlu0 %4745, %v1905_v29   ;;  %v3442_v39 = vpack.c.bf16 %v3096_v11, %v3094_v55  ;;  %v3441_v48 = vpack.c.bf16 %v3095_v22, %v3093_v24  ;;  %v1546_v36 = vmul.f32 %v5351_v0, %v298_v60  ;;  %v301_v22 = vld [vmem:[%s7706_s0 + $0x200] sm:$0xff]  ;;  %v302_v0 = vld [vmem:[%s7706_s0 + $0x208] sm:$0xff] }
 0x206   : > { %v3099_v3 = vmax.f32 %v2787_v7, 0.0  ;;  %v3100_v8 = vmax.f32 %v2788_v31, 0.0  ;;  %v3097_v4 = vmax.f32 %v2785_v47, 0.0  ;;  %v1846_v55 = vld [vmem:[%s7708_s2 + $0x188] sm:$0xff]  ;;  %v1551_v45 = vmul.f32 %v5359_v5, %v303_v16  ;;  %v1845_v31 = vld [vmem:[%s7708_s2 + $0x180] sm:$0xff] }
 0x207   : > { %v3098_v59 = vmax.f32 %v2786_v30, 0.0  ;;  %3910 = vmatprep.subr.bf16.mxu1 %v3442_v39  ;;  %v2101_v25 = vpop.permute.xlu1 %2100  ;;  %v2096_v27 = vpop.permute.xlu0 %2095  ;;  %v1552_v46 = vmul.f32 %v5359_v5, %v304_v58  ;;  %v1549_v38 = vmul.f32 %v5361_v6, %v301_v22  ;;  %v1550_v47 = vmul.f32 %v5361_v6, %v302_v0  ;;  %v367_v30 = vld [vmem:[%s7706_s0 + $0x410] sm:$0xff]  ;;  %v368_v39 = vld [vmem:[%s7706_s0 + $0x418] sm:$0xff]  ;;  %v366_v6 = vld [vmem:[%s7706_s0 + $0x408] sm:$0xff] }
 0x208   : > { %v2791_v41 = vadd.f32 %v2101_v25, %v1543_v14  ;;  %v2792_v17 = vadd.f32 %v2101_v25, %v1544_v40  ;;  %3911 = vmatpush1.bf16.msra.mxu1 %v3441_v48  ;;  %2190 = vperm.xlu1 %4746, %v1844_v32   ;;  %v2789_v53 = vadd.f32 %v2096_v27, %v1541_v19  ;;  %v365_v14 = vld [vmem:[%s7706_s0 + $0x400] sm:$0xff] }
 0x209   : > { %v2790_v54 = vadd.f32 %v2096_v27, %v1542_v21  ;;  %2185 = vperm.xlu0 %4745, %v1843_v62   ;;  %v3444_v51 = vpack.c.bf16 %v3100_v8, %v3098_v59  ;;  %v3443_v28 = vpack.c.bf16 %v3099_v3, %v3097_v4  ;;  %v1615_v4 = vmul.f32 %v5519_v1, %v367_v30  ;;  %v1909_v60 = vld [vmem:[%s7708_s2 + $0x380] sm:$0xff]  ;;  %v371_v27 = vld [vmem:[%s7706_s0 + $0x430] sm:$0xff] }
 0x20a   : > { %v3103_v43 = vmax.f32 %v2791_v41, 0.0  ;;  %v3104_v61 = vmax.f32 %v2792_v17, 0.0  ;;  %v3101_v9 = vmax.f32 %v2789_v53, 0.0  ;;  %v1616_v59 = vmul.f32 %v5519_v1, %v368_v39  ;;  %v372_v53 = vld [vmem:[%s7706_s0 + $0x438] sm:$0xff] }
 0x20b   : > { %v3102_v63 = vmax.f32 %v2790_v54, 0.0  ;;  %3912 = vmatprep.subr.bf16.mxu1 %v3444_v51  ;;  %v2111_v26 = vpop.permute.xlu1 %2110  ;;  %v2106_v10 = vpop.permute.xlu0 %2105  ;;  %v1613_v41 = vmul.f32 %v5521_v2, %v365_v14  ;;  %v1614_v17 = vmul.f32 %v5521_v2, %v366_v6  ;;  %v370_v2 = vld [vmem:[%s7706_s0 + $0x428] sm:$0xff]  ;;  %v1619_v58 = vmul.f32 %v5529_v33, %v371_v27  ;;  %v379_v6 = vld [vmem:[%s7706_s0 + $0x470] sm:$0xff] }
 0x20c   : > { %v2795_v11 = vadd.f32 %v2111_v26, %v1547_v52  ;;  %v2796_v29 = vadd.f32 %v2111_v26, %v1548_v35  ;;  %3913 = vmatpush1.bf16.msra.mxu1 %v3443_v28  ;;  %2510 = vperm.xlu1 %4746, %v1908_v15   ;;  %v2793_v23 = vadd.f32 %v2106_v10, %v1545_v44  ;;  %v4747_v28 = vld [vmem:[%s5840_s9] ss:$40 sps:$4 sm:$0xff]  }
 0x20d   : > { %v2794_v12 = vadd.f32 %v2106_v10, %v1546_v36  ;;  %2505 = vperm.xlu0 %4745, %v1907_v42   ;;  %v3446_v37 = vpack.c.bf16 %v3104_v61, %v3102_v63  ;;  %v3445_v24 = vpack.c.bf16 %v3103_v43, %v3101_v9  ;;  %v369_v15 = vld [vmem:[%s7706_s0 + $0x420] sm:$0xff]  ;;  %v1848_v36 = vld [vmem:[%s7708_s2 + $0x198] sm:$0xff]  ;;  %v1620_v9 = vmul.f32 %v5529_v33, %v372_v53  ;;  %v1847_v63 = vld [vmem:[%s7708_s2 + $0x190] sm:$0xff] }
 0x20e   : > { %v3107_v56 = vmax.f32 %v2795_v11, 0.0  ;;  %v3108_v7 = vmax.f32 %v2796_v29, 0.0  ;;  %v3105_v48 = vmax.f32 %v2793_v23, 0.0  ;;  %v1617_v0 = vmul.f32 %v5531_v34, %v369_v15  ;;  %v375_v29 = vld [vmem:[%s7706_s0 + $0x450] sm:$0xff]  ;;  %v376_v10 = vld [vmem:[%s7706_s0 + $0x458] sm:$0xff]  ;;  %v1849_v53 = vld [vmem:[%s7708_s2 + $0x1a0] sm:$0xff] }
 0x20f   : > { %v3106_v5 = vmax.f32 %v2794_v12, 0.0  ;;  %3914 = vmatprep.subr.bf16.mxu1 %v3446_v37  ;;  %v2121_v32 = vpop.permute.xlu1 %2120  ;;  %v2116_v8 = vpop.permute.xlu0 %2115  ;;  %v1618_v11 = vmul.f32 %v5531_v34, %v370_v2  ;;  %v373_v37 = vld [vmem:[%s7706_s0 + $0x440] sm:$0xff]  ;;  %v374_v34 = vld [vmem:[%s7706_s0 + $0x448] sm:$0xff]  ;;  %v1624_v30 = vmul.f32 %v5539_v18, %v376_v10  ;;  %v384_v15 = vld [vmem:[%s7706_s0 + $0x498] sm:$0xff] }
 0x210   : > { %v2799_v40 = vadd.f32 %v2121_v32, %v1551_v45  ;;  %v2800_v3 = vadd.f32 %v2121_v32, %v1552_v46  ;;  %3915 = vmatpush1.bf16.msra.mxu1 %v3445_v24  ;;  %2200 = vperm.xlu1 %4746, %v1846_v55   ;;  %v2797_v62 = vadd.f32 %v2116_v8, %v1549_v38  ;;  %v1912_v38 = vld [vmem:[%s7708_s2 + $0x398] sm:$0xff]  ;;  %v1913_v10 = vld [vmem:[%s7708_s2 + $0x3a0] sm:$0xff] }
 0x211   : > { %v2798_v19 = vadd.f32 %v2116_v8, %v1550_v47  ;;  %2195 = vperm.xlu0 %4745, %v1845_v31   ;;  %v3448_v21 = vpack.c.bf16 %v3108_v7, %v3106_v5  ;;  %v3447_v13 = vpack.c.bf16 %v3107_v56, %v3105_v48  ;;  %v1623_v47 = vmul.f32 %v5539_v18, %v375_v29  ;;  %v1911_v5 = vld [vmem:[%s7708_s2 + $0x390] sm:$0xff] }
 0x212   : > { %v3111_v25 = vmax.f32 %v2799_v40, 0.0  ;;  %v3112_v49 = vmax.f32 %v2800_v3, 0.0  ;;  %v3109_v54 = vmax.f32 %v2797_v62, 0.0  ;;  %v1621_v32 = vmul.f32 %v5541_v57, %v373_v37  ;;  %v380_v40 = vld [vmem:[%s7706_s0 + $0x478] sm:$0xff]  ;;  %v377_v62 = vld [vmem:[%s7706_s0 + $0x460] sm:$0xff]  ;;  %v387_v37 = vld [vmem:[%s7706_s0 + $0x4b0] sm:$0xff] }
 0x213   : > { %v3110_v1 = vmax.f32 %v2798_v19, 0.0  ;;  %3916 = vmatprep.subr.bf16.mxu1 %v3448_v21  ;;  %v2281_v51 = vpop.permute.xlu1 %2280  ;;  %v2276_v35 = vpop.permute.xlu0 %2275  ;;  %v1622_v14 = vmul.f32 %v5541_v57, %v374_v34  ;;  %v378_v57 = vld [vmem:[%s7706_s0 + $0x468] sm:$0xff]  ;;  %v388_v34 = vld [vmem:[%s7706_s0 + $0x4b8] sm:$0xff] }
 0x214   : > { %v2863_v52 = vadd.f32 %v2281_v51, %v1615_v4  ;;  %3917 = vmatpush1.bf16.msra.mxu1 %v3447_v13  ;;  %2520 = vperm.xlu1 %4746, %v1910_v20   ;;  %v2864_v43 = vadd.f32 %v2281_v51, %v1616_v59  ;;  %v3449_v61 = vpack.c.bf16 %v3111_v25, %v3109_v54  ;;  %v7943_v54 = vld [vmem:[#allocation35_spill] sm:$0xff] }
 0x215   : > { %v2861_v42 = vadd.f32 %v2276_v35, %v1613_v41  ;;  %2515 = vperm.xlu0 %4745, %v1909_v60   ;;  %v3450_v44 = vpack.c.bf16 %v3112_v49, %v3110_v1  ;;  %v2862_v16 = vadd.f32 %v2276_v35, %v1614_v17  ;;  %v1850_v49 = vld [vmem:[%s7708_s2 + $0x1a8] sm:$0xff]  ;;  %v1627_v60 = vmul.f32 %v5549_v50, %v379_v6  ;;  %v381_v35 = vld [vmem:[%s7706_s0 + $0x480] sm:$0xff] }
 0x216   : > { %v3176_v26 = vmax.f32 %v2864_v43, 0.0  ;;  %v3175_v22 = vmax.f32 %v2863_v52, 0.0  ;;  %v1628_v41 = vmul.f32 %v5549_v50, %v380_v40  ;;  %v1625_v1 = vmul.f32 %v7943_v54, %v377_v62  ;;  %v382_v43 = vld [vmem:[%s7706_s0 + $0x488] sm:$0xff] }
 0x217   : > { %3979 = vmatprep.subr.bf16.mxu1 %v3450_v44  ;;  %v2291_v33 = vpop.permute.xlu1 %2290  ;;  %3919 = vmatmul.mubr.bf16.vlgmr.msra.gmra.mrb[0].mxu1 %v4747_v28  ;;  %v3174_v23 = vmax.f32 %v2862_v16, 0.0  ;;  %v3173_v12 = vmax.f32 %v2861_v42, 0.0  ;;  %v2286_v45 = vpop.permute.xlu0 %2285  ;;  %v1626_v51 = vmul.f32 %v7943_v54, %v378_v57  ;;  %v383_v28 = vld [vmem:[%s7706_s0 + $0x490] sm:$0xff] }
 0x218   : > { %v2867_v24 = vadd.f32 %v2291_v33, %v1619_v58  ;;  %v2868_v55 = vadd.f32 %v2291_v33, %v1620_v9  ;;  %3980 = vmatpush1.bf16.msra.mxu1 %v3449_v61  ;;  %2210 = vperm.xlu1 %4746, %v1848_v36   ;;  %v2865_v46 = vadd.f32 %v2286_v45, %v1617_v0  ;;  %v7945_v33 = vld [vmem:[#allocation37_spill] sm:$0xff] }
 0x219   : > { %v2866_v56 = vadd.f32 %v2286_v45, %v1618_v11  ;;  %2205 = vperm.xlu0 %4745, %v1847_v63   ;;  %v3482_v7 = vpack.c.bf16 %v3176_v26, %v3174_v23  ;;  %v3481_v31 = vpack.c.bf16 %v3175_v22, %v3173_v12  ;;  %v1914_v63 = vld [vmem:[%s7708_s2 + $0x3a8] sm:$0xff]  ;;  %v7944_v26 = vld [vmem:[#allocation36_spill] sm:$0xff]  ;;  %v1629_v23 = vmul.f32 %v7945_v33, %v381_v35 }
 0x21a   : > { %v3179_v39 = vmax.f32 %v2867_v24, 0.0  ;;  %v3180_v48 = vmax.f32 %v2868_v55, 0.0  ;;  %v3177_v3 = vmax.f32 %v2865_v46, 0.0  ;;  %v1631_v22 = vmul.f32 %v7944_v26, %v383_v28  ;;  %v385_v46 = vld [vmem:[%s7706_s0 + $0x4a0] sm:$0xff]  ;;  %v4755_v28 = vld [vmem:[%s5840_s9 + $0x50] ss:$40 sps:$4 sm:$0xff]  }
 0x21b   : > { %v3178_v18 = vmax.f32 %v2866_v56, 0.0  ;;  %4072 = vmatprep.subr.bf16.mxu0 %v3482_v7  ;;  %v2301_v8 = vpop.permute.xlu1 %2300  ;;  %v2296_v13 = vpop.permute.xlu0 %2295  ;;  %v1632_v0 = vmul.f32 %v7944_v26, %v384_v15  ;;  %v1630_v12 = vmul.f32 %v7945_v33, %v382_v43  ;;  %v386_v56 = vld [vmem:[%s7706_s0 + $0x4a8] sm:$0xff]  ;;  %v7948_v15 = vld [vmem:[#allocation40_spill] sm:$0xff]  ;;  %v1915_v43 = vld [vmem:[%s7708_s2 + $0x3b0] sm:$0xff] }
 0x21c   : > { %v2871_v19 = vadd.f32 %v2301_v8, %v1623_v47  ;;  %v2872_v21 = vadd.f32 %v2301_v8, %v1624_v30  ;;  %4073 = vmatpush1.bf16.msra.mxu0 %v3481_v31  ;;  %2530 = vperm.xlu1 %4746, %v1912_v38   ;;  %v2869_v20 = vadd.f32 %v2296_v13, %v1621_v32  ;;  %v7946_v32 = vld [vmem:[#allocation38_spill] sm:$0xff]  ;;  %v7947_v8 = vld [vmem:[#allocation39_spill] sm:$0xff]  ;;  %v393_v26 = vld [vmem:[%s7706_s0 + $0x4e0] sm:$0xff] }
 0x21d   : > { %v2870_v4 = vadd.f32 %v2296_v13, %v1622_v14  ;;  %2525 = vperm.xlu0 %4745, %v1911_v5   ;;  %v3484_v59 = vpack.c.bf16 %v3180_v48, %v3178_v18  ;;  %v3483_v25 = vpack.c.bf16 %v3179_v39, %v3177_v3  ;;  %v1852_v5 = vld [vmem:[%s7708_s2 + $0x1b8] sm:$0xff]  ;;  %v1635_v14 = vmul.f32 %v7946_v32, %v387_v37  ;;  %v1851_v18 = vld [vmem:[%s7708_s2 + $0x1b0] sm:$0xff]  ;;  %v1854_v37 = vld [vmem:[%s7708_s2 + $0x1c8] sm:$0xff] }
 0x21e   : > { %v3183_v17 = vmax.f32 %v2871_v19, 0.0  ;;  %v3184_v27 = vmax.f32 %v2872_v21, 0.0  ;;  %v3181_v2 = vmax.f32 %v2869_v20, 0.0  ;;  %v1636_v6 = vmul.f32 %v7946_v32, %v388_v34  ;;  %v391_v19 = vld [vmem:[%s7706_s0 + $0x4d0] sm:$0xff]  ;;  %v392_v21 = vld [vmem:[%s7706_s0 + $0x4d8] sm:$0xff]  ;;  %v7950_v34 = vld [vmem:[#allocation42_spill] sm:$0xff] }
 0x21f   : > { %v3182_v50 = vmax.f32 %v2870_v4, 0.0  ;;  %4074 = vmatprep.subr.bf16.mxu0 %v3484_v59  ;;  %v2311_v52 = vpop.permute.xlu1 %2310  ;;  %v2306_v44 = vpop.permute.xlu0 %2305  ;;  %v1633_v62 = vmul.f32 %v7947_v8, %v385_v46  ;;  %v1634_v57 = vmul.f32 %v7947_v8, %v386_v56  ;;  %v389_v59 = vld [vmem:[%s7706_s0 + $0x4c0] sm:$0xff] }
 0x220   : > { %v2875_v61 = vadd.f32 %v2311_v52, %v1627_v60  ;;  %v2876_v42 = vadd.f32 %v2311_v52, %v1628_v41  ;;  %4075 = vmatpush1.bf16.msra.mxu0 %v3483_v25  ;;  %2220 = vperm.xlu1 %4746, %v1850_v49   ;;  %v2873_v36 = vadd.f32 %v2306_v44, %v1625_v1  ;;  %v390_v25 = vld [vmem:[%s7706_s0 + $0x4c8] sm:$0xff]  ;;  %v1853_v56 = vld [vmem:[%s7708_s2 + $0x1c0] sm:$0xff] }
 0x221   : > { %v2874_v16 = vadd.f32 %v2306_v44, %v1626_v51  ;;  %2215 = vperm.xlu0 %4745, %v1849_v53   ;;  %v3486_v58 = vpack.c.bf16 %v3184_v27, %v3182_v50  ;;  %v3485_v9 = vpack.c.bf16 %v3183_v17, %v3181_v2  ;;  %v4753_v17 = vld [vmem:[%s5840_s9 + $0x54] ss:$40 sps:$4 sm:$0xff]   ;;  %v1639_v2 = vmul.f32 %v7948_v15, %v391_v19  ;;  %v397_v32 = vld [vmem:[%s7706_s0 + $0x500] sm:$0xff] }
 0x222   : > { %v3187_v11 = vmax.f32 %v2875_v61, 0.0  ;;  %v3188_v29 = vmax.f32 %v2876_v42, 0.0  ;;  %v3185_v24 = vmax.f32 %v2873_v36, 0.0  ;;  %v1916_v51 = vld [vmem:[%s7708_s2 + $0x3b8] sm:$0xff]  ;;  %v1640_v50 = vmul.f32 %v7948_v15, %v392_v21  ;;  %3928 = vmatprep.mubr.bf16.mxu1 %v4753_v17  ;;  %v7949_v61 = vld [vmem:[#allocation41_spill] sm:$0xff]  ;;  %v395_v36 = vld [vmem:[%s7706_s0 + $0x4f0] sm:$0xff] }
 0x223   : > { %v3186_v55 = vmax.f32 %v2874_v16, 0.0  ;;  %4076 = vmatprep.subr.bf16.mxu0 %v3486_v58  ;;  %v2321_v45 = vpop.permute.xlu1 %2320  ;;  %v2316_v38 = vpop.permute.xlu0 %2315  ;;  %v1637_v42 = vmul.f32 %v7949_v61, %v389_v59  ;;  %v1638_v44 = vmul.f32 %v7949_v61, %v390_v25  ;;  %v396_v16 = vld [vmem:[%s7706_s0 + $0x4f8] sm:$0xff]  ;;  %3929 = vmatmul.mubr.bf16.gmra.mrb[4].mxu1 %v4755_v28  ;;  %v1918_v21 = vld [vmem:[%s7708_s2 + $0x3c8] sm:$0xff]  ;;  %v401_v15 = vld [vmem:[%s7706_s0 + $0x520] sm:$0xff] }
 0x224   : > { %v2879_v7 = vadd.f32 %v2321_v45, %v1631_v22  ;;  %v2880_v31 = vadd.f32 %v2321_v45, %v1632_v0  ;;  %4077 = vmatpush1.bf16.msra.mxu0 %v3485_v9  ;;  %2540 = vperm.xlu1 %4746, %v1914_v63   ;;  %v2877_v47 = vadd.f32 %v2316_v38, %v1629_v23  ;;  %v394_v22 = vld [vmem:[%s7706_s0 + $0x4e8] sm:$0xff] }
 0x225   : > { %v2878_v30 = vadd.f32 %v2316_v38, %v1630_v12  ;;  %2535 = vperm.xlu0 %4745, %v1913_v10   ;;  %v3488_v39 = vpack.c.bf16 %v3188_v29, %v3186_v55  ;;  %v3487_v48 = vpack.c.bf16 %v3187_v11, %v3185_v24  ;;  %v1643_v24 = vmul.f32 %v7950_v34, %v395_v36  ;;  %v1856_v36 = vld [vmem:[%s7708_s2 + $0x1d8] sm:$0xff] }
 0x226   : > { %v3191_v40 = vmax.f32 %v2879_v7, 0.0  ;;  %v3192_v3 = vmax.f32 %v2880_v31, 0.0  ;;  %v3189_v13 = vmax.f32 %v2877_v47, 0.0  ;;  %v1644_v55 = vmul.f32 %v7950_v34, %v396_v16  ;;  %v7951_v7 = vld [vmem:[#allocation43_spill] sm:$0xff]  ;;  %v7954_v16 = vld [vmem:[#allocation46_spill] sm:$0xff]  ;;  %v405_v34 = vld [vmem:[%s7706_s0 + $0x540] sm:$0xff] }
 0x227   : > { %v3190_v20 = vmax.f32 %v2878_v30, 0.0  ;;  %4078 = vmatprep.subr.bf16.mxu0 %v3488_v39  ;;  %v2331_v4 = vpop.permute.xlu1 %2330  ;;  %v2326_v41 = vpop.permute.xlu0 %2325  ;;  %v1641_v31 = vmul.f32 %v7951_v7, %v393_v26  ;;  %v1642_v38 = vmul.f32 %v7951_v7, %v394_v22  ;;  %v399_v47 = vld [vmem:[%s7706_s0 + $0x510] sm:$0xff]  ;;  %v400_v30 = vld [vmem:[%s7706_s0 + $0x518] sm:$0xff] }
 0x228   : > { %v2883_v49 = vadd.f32 %v2331_v4, %v1635_v14  ;;  %v2884_v60 = vadd.f32 %v2331_v4, %v1636_v6  ;;  %4079 = vmatpush1.bf16.msra.mxu0 %v3487_v48  ;;  %2230 = vperm.xlu1 %4746, %v1852_v5   ;;  %v2881_v27 = vadd.f32 %v2326_v41, %v1633_v62  ;;  %v398_v14 = vld [vmem:[%s7706_s0 + $0x508] sm:$0xff]  ;;  %v1855_v22 = vld [vmem:[%s7708_s2 + $0x1d0] sm:$0xff] }
 0x229   : > { %v2882_v53 = vadd.f32 %v2326_v41, %v1634_v57  ;;  %2225 = vperm.xlu0 %4745, %v1851_v18   ;;  %v3490_v54 = vpack.c.bf16 %v3192_v3, %v3190_v20  ;;  %v3489_v1 = vpack.c.bf16 %v3191_v40, %v3189_v13  ;;  %v4759_v18 = vld [vmem:[%s5840_s9 + $0xa4] ss:$40 sps:$4 sm:$0xff]   ;;  %v4761_v13 = vld [vmem:[%s5840_s9 + $0xa0] ss:$40 sps:$4 sm:$0xff]   ;;  %v7952_v20 = vld [vmem:[#allocation44_spill] sm:$0xff] }
 0x22a   : > { %v3195_v52 = vmax.f32 %v2883_v49, 0.0  ;;  %v3196_v35 = vmax.f32 %v2884_v60, 0.0  ;;  %v3193_v58 = vmax.f32 %v2881_v27, 0.0  ;;  %v1647_v4 = vmul.f32 %v7952_v20, %v399_v47  ;;  %v1917_v60 = vld [vmem:[%s7708_s2 + $0x3c0] sm:$0xff]  ;;  %3938 = vmatprep.mubr.bf16.mxu1 %v4759_v18 }
 0x22b   : > { %v3194_v9 = vmax.f32 %v2882_v53, 0.0  ;;  %4080 = vmatprep.subr.bf16.mxu0 %v3490_v54  ;;  %v2341_v63 = vpop.permute.xlu1 %2340  ;;  %v2336_v29 = vpop.permute.xlu0 %2335  ;;  %v1648_v59 = vmul.f32 %v7952_v20, %v400_v30  ;;  %v7953_v41 = vld [vmem:[#allocation45_spill] sm:$0xff]  ;;  %v403_v53 = vld [vmem:[%s7706_s0 + $0x530] sm:$0xff]  ;;  %v404_v54 = vld [vmem:[%s7706_s0 + $0x538] sm:$0xff]  ;;  %3939 = vmatmul.mubr.bf16.gmra.mrb[8].mxu1 %v4761_v13 }
 0x22c   : > { %v2887_v0 = vadd.f32 %v2341_v63, %v1639_v2  ;;  %v2888_v11 = vadd.f32 %v2341_v63, %v1640_v50  ;;  %4081 = vmatpush1.bf16.msra.mxu0 %v3489_v1  ;;  %2550 = vperm.xlu1 %4746, %v1916_v51   ;;  %v2885_v10 = vadd.f32 %v2336_v29, %v1637_v42  ;;  %v402_v2 = vld [vmem:[%s7706_s0 + $0x528] sm:$0xff]  ;;  %v1920_v30 = vld [vmem:[%s7708_s2 + $0x3d8] sm:$0xff]  ;;  %v409_v20 = vld [vmem:[%s7706_s0 + $0x560] sm:$0xff] }
 0x22d   : > { %v2886_v33 = vadd.f32 %v2336_v29, %v1638_v44  ;;  %2545 = vperm.xlu0 %4745, %v1915_v43   ;;  %v3492_v23 = vpack.c.bf16 %v3196_v35, %v3194_v9  ;;  %v3491_v12 = vpack.c.bf16 %v3195_v52, %v3193_v58  ;;  %v1645_v17 = vmul.f32 %v7953_v41, %v397_v32 }
 0x22e   : > { %v3199_v45 = vmax.f32 %v2887_v0, 0.0  ;;  %v3200_v46 = vmax.f32 %v2888_v11, 0.0  ;;  %v3197_v39 = vmax.f32 %v2885_v10, 0.0  ;;  %v1646_v27 = vmul.f32 %v7953_v41, %v398_v14  ;;  %v7955_v0 = vld [vmem:[#allocation47_spill] sm:$0xff] }
 0x22f   : > { %v3198_v48 = vmax.f32 %v2886_v33, 0.0  ;;  %4082 = vmatprep.subr.bf16.mxu0 %v3492_v23  ;;  %v2351_v5 = vpop.permute.xlu1 %2350  ;;  %v2346_v3 = vpop.permute.xlu0 %2345  ;;  %v1651_v58 = vmul.f32 %v7954_v16, %v403_v53  ;;  %v1652_v9 = vmul.f32 %v7954_v16, %v404_v54  ;;  %v1649_v11 = vmul.f32 %v7955_v0, %v401_v15  ;;  %v407_v10 = vld [vmem:[%s7706_s0 + $0x550] sm:$0xff]  ;;  %v408_v33 = vld [vmem:[%s7706_s0 + $0x558] sm:$0xff]  ;;  %v1858_v53 = vld [vmem:[%s7708_s2 + $0x1e8] sm:$0xff] }
 0x230   : > { %v2891_v6 = vadd.f32 %v2351_v5, %v1643_v24  ;;  %v2892_v40 = vadd.f32 %v2351_v5, %v1644_v55  ;;  %4083 = vmatpush1.bf16.msra.mxu0 %v3491_v12  ;;  %2240 = vperm.xlu1 %4746, %v1854_v37   ;;  %v2889_v8 = vadd.f32 %v2346_v3, %v1641_v31  ;;  %v406_v24 = vld [vmem:[%s7706_s0 + $0x548] sm:$0xff]  ;;  %v413_v16 = vld [vmem:[%s7706_s0 + $0x580] sm:$0xff] }
 0x231   : > { %v2890_v62 = vadd.f32 %v2346_v3, %v1642_v38  ;;  %2235 = vperm.xlu0 %4745, %v1853_v56   ;;  %v3494_v57 = vpack.c.bf16 %v3200_v46, %v3198_v48  ;;  %v3493_v19 = vpack.c.bf16 %v3199_v45, %v3197_v39  ;;  %v1650_v29 = vmul.f32 %v7955_v0, %v402_v2  ;;  %v4765_v56 = vld [vmem:[%s5840_s9 + $0xf4] ss:$40 sps:$4 sm:$0xff]   ;;  %v4767_v39 = vld [vmem:[%s5840_s9 + $0xf0] ss:$40 sps:$4 sm:$0xff]   ;;  %v7957_v3 = vld [vmem:[#allocation49_spill] sm:$0xff] }
 0x232   : > { %v3203_v25 = vmax.f32 %v2891_v6, 0.0  ;;  %v3204_v49 = vmax.f32 %v2892_v40, 0.0  ;;  %v3201_v1 = vmax.f32 %v2889_v8, 0.0  ;;  %v7956_v48 = vld [vmem:[#allocation48_spill] sm:$0xff]  ;;  %v1919_v40 = vld [vmem:[%s7708_s2 + $0x3d0] sm:$0xff]  ;;  %3948 = vmatprep.mubr.bf16.mxu1 %v4765_v56  ;;  %v1653_v18 = vmul.f32 %v7957_v3, %v405_v34  ;;  %v7958_v54 = vld [vmem:[#allocation50_spill] sm:$0xff] }
 0x233   : > { %v3202_v51 = vmax.f32 %v2890_v62, 0.0  ;;  %4084 = vmatprep.subr.bf16.mxu0 %v3494_v57  ;;  %v2361_v28 = vpop.permute.xlu1 %2360  ;;  %v2356_v35 = vpop.permute.xlu0 %2355  ;;  %v1655_v5 = vmul.f32 %v7956_v48, %v407_v10  ;;  %v1656_v32 = vmul.f32 %v7956_v48, %v408_v33  ;;  %v1654_v8 = vmul.f32 %v7957_v3, %v406_v24  ;;  %v411_v62 = vld [vmem:[%s7706_s0 + $0x570] sm:$0xff]  ;;  %v412_v57 = vld [vmem:[%s7706_s0 + $0x578] sm:$0xff]  ;;  %3949 = vmatmul.mubr.bf16.gmra.mrb[12].mxu1 %v4767_v39  ;;  %v1857_v2 = vld [vmem:[%s7708_s2 + $0x1e0] sm:$0xff] }
 0x234   : > { %v2895_v50 = vadd.f32 %v2361_v28, %v1647_v4  ;;  %v2896_v52 = vadd.f32 %v2361_v28, %v1648_v59  ;;  %4085 = vmatpush1.bf16.msra.mxu0 %v3493_v19  ;;  %2560 = vperm.xlu1 %4746, %v1918_v21   ;;  %v2893_v43 = vadd.f32 %v2356_v35, %v1645_v17  ;;  %v410_v4 = vld [vmem:[%s7706_s0 + $0x568] sm:$0xff]  ;;  %v417_v48 = vld [vmem:[%s7706_s0 + $0x5a0] sm:$0xff] }
 0x235   : > { %v2894_v61 = vadd.f32 %v2356_v35, %v1646_v27  ;;  %2555 = vperm.xlu0 %4745, %v1917_v60   ;;  %v3496_v42 = vpack.c.bf16 %v3204_v49, %v3202_v51  ;;  %v3495_v44 = vpack.c.bf16 %v3203_v25, %v3201_v1  ;;  %v1659_v1 = vmul.f32 %v7958_v54, %v411_v62  ;;  %v1922_v33 = vld [vmem:[%s7708_s2 + $0x3e8] sm:$0xff]  ;;  %v1860_v62 = vld [vmem:[%s7708_s2 + $0x1f8] sm:$0xff] }
 0x236   : > { %v3207_v63 = vmax.f32 %v2895_v50, 0.0  ;;  %v3208_v26 = vmax.f32 %v2896_v52, 0.0  ;;  %v3205_v23 = vmax.f32 %v2893_v43, 0.0  ;;  %v1660_v51 = vmul.f32 %v7958_v54, %v412_v57  ;;  %v7959_v50 = vld [vmem:[#allocation51_spill] sm:$0xff]  ;;  %v7962_v57 = vld [vmem:[#allocation54_spill] sm:$0xff]  ;;  %v421_v54 = vld [vmem:[%s7706_s0 + $0x5c0] sm:$0xff] }
 0x237   : > { %v3206_v12 = vmax.f32 %v2894_v61, 0.0  ;;  %4086 = vmatprep.subr.bf16.mxu0 %v3496_v42  ;;  %v2371_v37 = vpop.permute.xlu1 %2370  ;;  %v2366_v46 = vpop.permute.xlu0 %2365  ;;  %v1657_v52 = vmul.f32 %v7959_v50, %v409_v20  ;;  %v1658_v35 = vmul.f32 %v7959_v50, %v410_v4  ;;  %v415_v43 = vld [vmem:[%s7706_s0 + $0x590] sm:$0xff]  ;;  %v416_v61 = vld [vmem:[%s7706_s0 + $0x598] sm:$0xff] }
 0x238   : > { %v2899_v55 = vadd.f32 %v2371_v37, %v1651_v58  ;;  %v2900_v45 = vadd.f32 %v2371_v37, %v1652_v9  ;;  %4087 = vmatpush1.bf16.msra.mxu0 %v3495_v44  ;;  %2250 = vperm.xlu1 %4746, %v1856_v36   ;;  %v2897_v7 = vadd.f32 %v2366_v46, %v1649_v11  ;;  %v414_v58 = vld [vmem:[%s7706_s0 + $0x588] sm:$0xff]  ;;  %v1859_v4 = vld [vmem:[%s7708_s2 + $0x1f0] sm:$0xff] }
 0x239   : > { %v2898_v31 = vadd.f32 %v2366_v46, %v1650_v29  ;;  %2245 = vperm.xlu0 %4745, %v1855_v22   ;;  %v3498_v38 = vpack.c.bf16 %v3208_v26, %v3206_v12  ;;  %v3497_v47 = vpack.c.bf16 %v3207_v63, %v3205_v23  ;;  %v4771_v22 = vld [vmem:[%s5840_s9 + $0x144] ss:$40 sps:$4 sm:$0xff]   ;;  %v4773_v23 = vld [vmem:[%s5840_s9 + $0x140] ss:$40 sps:$4 sm:$0xff]   ;;  %v7960_v12 = vld [vmem:[#allocation52_spill] sm:$0xff] }
 0x23a   : > { %v3211_v14 = vmax.f32 %v2899_v55, 0.0  ;;  %v3212_v6 = vmax.f32 %v2900_v45, 0.0  ;;  %v3209_v19 = vmax.f32 %v2897_v7, 0.0  ;;  %v1663_v37 = vmul.f32 %v7960_v12, %v415_v43  ;;  %v1921_v45 = vld [vmem:[%s7708_s2 + $0x3e0] sm:$0xff]  ;;  %3958 = vmatprep.mubr.bf16.mxu1 %v4771_v22 }
 0x23b   : > { %v3210_v21 = vmax.f32 %v2898_v31, 0.0  ;;  %4088 = vmatprep.subr.bf16.mxu0 %v3498_v38  ;;  %v2381_v13 = vpop.permute.xlu1 %2380  ;;  %v2376_v49 = vpop.permute.xlu0 %2375  ;;  %v1664_v34 = vmul.f32 %v7960_v12, %v416_v61  ;;  %v7961_v46 = vld [vmem:[#allocation53_spill] sm:$0xff]  ;;  %v419_v31 = vld [vmem:[%s7706_s0 + $0x5b0] sm:$0xff]  ;;  %v420_v38 = vld [vmem:[%s7706_s0 + $0x5b8] sm:$0xff]  ;;  %3959 = vmatmul.mubr.bf16.gmra.mrb[16].mxu1 %v4773_v23 }
 0x23c   : > { %v2903_v59 = vadd.f32 %v2381_v13, %v1655_v5  ;;  %v2904_v25 = vadd.f32 %v2381_v13, %v1656_v32  ;;  %4089 = vmatpush1.bf16.msra.mxu0 %v3497_v47  ;;  %2570 = vperm.xlu1 %4746, %v1920_v30   ;;  %v2901_v60 = vadd.f32 %v2376_v49, %v1653_v18  ;;  %v418_v5 = vld [vmem:[%s7706_s0 + $0x5a8] sm:$0xff]  ;;  %v1924_v61 = vld [vmem:[%s7708_s2 + $0x3f8] sm:$0xff]  ;;  %v425_v12 = vld [vmem:[%s7706_s0 + $0x5e0] sm:$0xff] }
 0x23d   : > { %v2902_v41 = vadd.f32 %v2376_v49, %v1654_v8  ;;  %2565 = vperm.xlu0 %4745, %v1919_v40   ;;  %v3500_v17 = vpack.c.bf16 %v3212_v6, %v3210_v21  ;;  %v3499_v27 = vpack.c.bf16 %v3211_v14, %v3209_v19  ;;  %v1661_v56 = vmul.f32 %v7961_v46, %v413_v16 }
 0x23e   : > { %v3215_v28 = vmax.f32 %v2903_v59, 0.0  ;;  %v3216_v15 = vmax.f32 %v2904_v25, 0.0  ;;  %v3213_v42 = vmax.f32 %v2901_v60, 0.0  ;;  %v1662_v7 = vmul.f32 %v7961_v46, %v414_v58  ;;  %v7963_v59 = vld [vmem:[#allocation55_spill] sm:$0xff] }
 0x23f   : > { %v3214_v44 = vmax.f32 %v2902_v41, 0.0  ;;  %4090 = vmatprep.subr.bf16.mxu0 %v3500_v17  ;;  %v2391_v36 = vpop.permute.xlu1 %2390  ;;  %v2386_v26 = vpop.permute.xlu0 %2385  ;;  %v1667_v19 = vmul.f32 %v7962_v57, %v419_v31  ;;  %v1668_v21 = vmul.f32 %v7962_v57, %v420_v38  ;;  %v1665_v25 = vmul.f32 %v7963_v59, %v417_v48  ;;  %v423_v60 = vld [vmem:[%s7706_s0 + $0x5d0] sm:$0xff]  ;;  %v424_v41 = vld [vmem:[%s7706_s0 + $0x5d8] sm:$0xff]  ;;  %v1926_v31 = vld [vmem:[%s7708_s2 + $0x408] sm:$0xff] }
 0x240   : > { %v2907_v9 = vadd.f32 %v2391_v36, %v1659_v1  ;;  %v2908_v63 = vadd.f32 %v2391_v36, %v1660_v51  ;;  %4091 = vmatpush1.bf16.msra.mxu0 %v3499_v27  ;;  %2260 = vperm.xlu1 %4746, %v1858_v53   ;;  %v2905_v0 = vadd.f32 %v2386_v26, %v1657_v52  ;;  %v422_v1 = vld [vmem:[%s7706_s0 + $0x5c8] sm:$0xff]  ;;  %v429_v57 = vld [vmem:[%s7706_s0 + $0x600] sm:$0xff] }
 0x241   : > { %v2906_v11 = vadd.f32 %v2386_v26, %v1658_v35  ;;  %2255 = vperm.xlu0 %4745, %v1857_v2   ;;  %v3502_v29 = vpack.c.bf16 %v3216_v15, %v3214_v44  ;;  %v3501_v10 = vpack.c.bf16 %v3215_v28, %v3213_v42  ;;  %v1666_v49 = vmul.f32 %v7963_v59, %v418_v5  ;;  %v4777_v2 = vld [vmem:[%s5840_s9 + $0x194] ss:$40 sps:$4 sm:$0xff]   ;;  %v4779_v42 = vld [vmem:[%s5840_s9 + $0x190] ss:$40 sps:$4 sm:$0xff]   ;;  %v7965_v26 = vld [vmem:[#allocation57_spill] sm:$0xff] }
 0x242   : > { %v3219_v24 = vmax.f32 %v2907_v9, 0.0  ;;  %v3220_v55 = vmax.f32 %v2908_v63, 0.0  ;;  %v3217_v47 = vmax.f32 %v2905_v0, 0.0  ;;  %v7964_v44 = vld [vmem:[#allocation56_spill] sm:$0xff]  ;;  %v1923_v63 = vld [vmem:[%s7708_s2 + $0x3f0] sm:$0xff]  ;;  %3968 = vmatprep.mubr.bf16.mxu1 %v4777_v2  ;;  %v1669_v22 = vmul.f32 %v7965_v26, %v421_v54  ;;  %v7966_v38 = vld [vmem:[#allocation58_spill] sm:$0xff] }
 0x243   : > { %v3218_v30 = vmax.f32 %v2906_v11, 0.0  ;;  %4092 = vmatprep.subr.bf16.mxu0 %v3502_v29  ;;  %v2401_v39 = vpop.permute.xlu1 %2400  ;;  %v2396_v6 = vpop.permute.xlu0 %2395  ;;  %v1671_v36 = vmul.f32 %v7964_v44, %v423_v60  ;;  %v1672_v16 = vmul.f32 %v7964_v44, %v424_v41  ;;  %v1670_v0 = vmul.f32 %v7965_v26, %v422_v1  ;;  %v427_v11 = vld [vmem:[%s7706_s0 + $0x5f0] sm:$0xff]  ;;  %v428_v29 = vld [vmem:[%s7706_s0 + $0x5f8] sm:$0xff]  ;;  %3969 = vmatmul.mubr.bf16.gmra.mrb[20].mxu1 %v4779_v42  ;;  %v1925_v5 = vld [vmem:[%s7708_s2 + $0x400] sm:$0xff] }
 0x244   : > { %v2911_v32 = vadd.f32 %v2401_v39, %v1663_v37  ;;  %v2912_v14 = vadd.f32 %v2401_v39, %v1664_v34  ;;  %4093 = vmatpush1.bf16.msra.mxu0 %v3501_v10  ;;  %2580 = vperm.xlu1 %4746, %v1922_v33   ;;  %v2909_v40 = vadd.f32 %v2396_v6, %v1661_v56  ;;  %v426_v37 = vld [vmem:[%s7706_s0 + $0x5e8] sm:$0xff]  ;;  %v1928_v41 = vld [vmem:[%s7708_s2 + $0x418] sm:$0xff]  ;;  %v7969_v2 = vld [vmem:[#allocation61_spill] sm:$0xff] }
 0x245   : > { %v2910_v3 = vadd.f32 %v2396_v6, %v1662_v7  ;;  %2575 = vperm.xlu0 %4745, %v1921_v45   ;;  %v3504_v18 = vpack.c.bf16 %v3220_v55, %v3218_v30  ;;  %v3503_v8 = vpack.c.bf16 %v3219_v24, %v3217_v47  ;;  %v1675_v47 = vmul.f32 %v7966_v38, %v427_v11  ;;  %v305_v42 = vld [vmem:[%s7706_s0 + $0x220] sm:$0xff]  ;;  %v306_v44 = vld [vmem:[%s7706_s0 + $0x228] sm:$0xff] }
 0x246   : > { %v3223_v13 = vmax.f32 %v2911_v32, 0.0  ;;  %v3224_v20 = vmax.f32 %v2912_v14, 0.0  ;;  %v3221_v17 = vmax.f32 %v2909_v40, 0.0  ;;  %v1676_v30 = vmul.f32 %v7966_v38, %v428_v29  ;;  %v7967_v32 = vld [vmem:[#allocation59_spill] sm:$0xff]  ;;  %v7970_v11 = vld [vmem:[#allocation5_spill] sm:$0xff] }
 0x247   : > { %v3222_v27 = vmax.f32 %v2910_v3, 0.0  ;;  %4094 = vmatprep.subr.bf16.mxu0 %v3504_v18  ;;  %v2411_v53 = vpop.permute.xlu1 %2410  ;;  %v2406_v15 = vpop.permute.xlu0 %2405  ;;  %v1673_v14 = vmul.f32 %v7967_v32, %v425_v12  ;;  %v1674_v6 = vmul.f32 %v7967_v32, %v426_v37  ;;  %v431_v40 = vld [vmem:[%s7706_s0 + $0x610] sm:$0xff]  ;;  %v432_v3 = vld [vmem:[%s7706_s0 + $0x618] sm:$0xff]  ;;  %v1929_v12 = vld [vmem:[%s7708_s2 + $0x420] sm:$0xff] }
 0x248   : > { %v2915_v51 = vadd.f32 %v2411_v53, %v1667_v19  ;;  %v2916_v28 = vadd.f32 %v2411_v53, %v1668_v21  ;;  %4095 = vmatpush1.bf16.msra.mxu0 %v3503_v8  ;;  %2270 = vperm.xlu1 %4746, %v1860_v62   ;;  %v2913_v50 = vadd.f32 %v2406_v15, %v1665_v25  ;;  %v430_v19 = vld [vmem:[%s7706_s0 + $0x608] sm:$0xff]  ;;  %v433_v38 = vld [vmem:[%s7706_s0 + $0x620] sm:$0xff] }
 0x249   : > { %v2914_v52 = vadd.f32 %v2406_v15, %v1666_v49  ;;  %2265 = vperm.xlu0 %4745, %v1859_v4   ;;  %v3506_v35 = vpack.c.bf16 %v3224_v20, %v3222_v27  ;;  %v3505_v43 = vpack.c.bf16 %v3223_v13, %v3221_v17  ;;  %v4785_v4 = vld [vmem:[%s5840_s9 + $0xc] ss:$40 sps:$4 sm:$0xff]   ;;  %v7968_v17 = vld [vmem:[#allocation60_spill] sm:$0xff] }
 0x24a   : > { %v3227_v58 = vmax.f32 %v2915_v51, 0.0  ;;  %v3228_v9 = vmax.f32 %v2916_v28, 0.0  ;;  %v3225_v10 = vmax.f32 %v2913_v50, 0.0  ;;  %v1679_v27 = vmul.f32 %v7968_v17, %v431_v40  ;;  %v1927_v51 = vld [vmem:[%s7708_s2 + $0x410] sm:$0xff]  ;;  %4011 = vmatprep.mubr.bf16.mxu1 %v4785_v4  ;;  %v308_v15 = vld [vmem:[%s7706_s0 + $0x238] sm:$0xff]  ;;  %v7971_v37 = vld [vmem:[#allocation6_spill] sm:$0xff] }
 0x24b   : > { %v3226_v33 = vmax.f32 %v2914_v52, 0.0  ;;  %4096 = vmatprep.subr.bf16.mxu0 %v3506_v35  ;;  %v2421_v23 = vpop.permute.xlu1 %2420  ;;  %v2416_v55 = vpop.permute.xlu0 %2415  ;;  %v1680_v53 = vmul.f32 %v7968_v17, %v432_v3  ;;  %v307_v28 = vld [vmem:[%s7706_s0 + $0x230] sm:$0xff]  ;;  %v1677_v50 = vmul.f32 %v7969_v2, %v429_v57  ;;  %v1678_v52 = vmul.f32 %v7969_v2, %v430_v19  ;;  %v1932_v40 = vld [vmem:[%s7708_s2 + $0x438] sm:$0xff]  ;;  %v7972_v3 = vld [vmem:[#allocation62_spill] sm:$0xff] }
 0x24c   : > { %v2919_v34 = vadd.f32 %v2421_v23, %v1671_v36  ;;  %v2920_v24 = vadd.f32 %v2421_v23, %v1672_v16  ;;  %4097 = vmatpush1.bf16.msra.mxu0 %v3505_v43  ;;  %2590 = vperm.xlu1 %4746, %v1924_v61   ;;  %v2917_v45 = vadd.f32 %v2416_v55, %v1669_v22  ;;  %v1931_v19 = vld [vmem:[%s7708_s2 + $0x430] sm:$0xff]  ;;  %v309_v17 = vld [vmem:[%s7706_s0 + $0x240] sm:$0xff] }
 0x24d   : > { %v2918_v46 = vadd.f32 %v2416_v55, %v1670_v0  ;;  %2585 = vperm.xlu0 %4745, %v1923_v63   ;;  %v3508_v56 = vpack.c.bf16 %v3228_v9, %v3226_v33  ;;  %v3507_v7 = vpack.c.bf16 %v3227_v58, %v3225_v10  ;;  %v1930_v0 = vld [vmem:[%s7708_s2 + $0x428] sm:$0xff]  ;;  %v1555_v29 = vmul.f32 %v7970_v11, %v307_v28  ;;  %v435_v55 = vld [vmem:[%s7706_s0 + $0x630] sm:$0xff] }
 0x24e   : > { %v3231_v39 = vmax.f32 %v2919_v34, 0.0  ;;  %v3232_v48 = vmax.f32 %v2920_v24, 0.0  ;;  %v3229_v18 = vmax.f32 %v2917_v45, 0.0  ;;  %v1556_v10 = vmul.f32 %v7970_v11, %v308_v15  ;;  %v436_v45 = vld [vmem:[%s7706_s0 + $0x638] sm:$0xff]  ;;  %v7973_v4 = vld [vmem:[#allocation63_spill] sm:$0xff] }
 0x24f   : > { %v3230_v8 = vmax.f32 %v2918_v46, 0.0  ;;  %4098 = vmatprep.subr.bf16.mxu0 %v3508_v56  ;;  %v2431_v62 = vpop.permute.xlu1 %2430  ;;  %v2426_v20 = vpop.permute.xlu0 %2425  ;;  %v1553_v34 = vmul.f32 %v7971_v37, %v305_v42  ;;  %v1554_v24 = vmul.f32 %v7971_v37, %v306_v44  ;;  %v1933_v44 = vld [vmem:[%s7708_s2 + $0x440] sm:$0xff] }
 0x250   : > { %v2923_v21 = vadd.f32 %v2431_v62, %v1675_v47  ;;  %v2924_v13 = vadd.f32 %v2431_v62, %v1676_v30  ;;  %4099 = vmatpush1.bf16.msra.mxu0 %v3507_v7  ;;  %2600 = vperm.xlu1 %4746, %v1926_v31   ;;  %v2921_v59 = vadd.f32 %v2426_v20, %v1673_v14  ;;  %v4750_v31 = vld [vmem:[%s5840_s9 + $0x10] ss:$40 sps:$4 sm:$0xff]   ;;  %v434_v47 = vld [vmem:[%s7706_s0 + $0x628] sm:$0xff] }
 0x251   : > { %v2922_v25 = vadd.f32 %v2426_v20, %v1674_v6  ;;  %2595 = vperm.xlu0 %4745, %v1925_v5   ;;  %v3510_v49 = vpack.c.bf16 %v3232_v48, %v3230_v8  ;;  %v3509_v60 = vpack.c.bf16 %v3231_v39, %v3229_v18  ;;  %v1683_v18 = vmul.f32 %v7972_v3, %v435_v55  ;;  %v312_v20 = vld [vmem:[%s7706_s0 + $0x258] sm:$0xff]  ;;  %v4758_v11 = vld [vmem:[%s5840_s9 + $0x60] ss:$40 sps:$4 sm:$0xff]  }
 0x252   : > { %v3235_v54 = vmax.f32 %v2923_v21, 0.0  ;;  %v3236_v1 = vmax.f32 %v2924_v13, 0.0  ;;  %v3233_v35 = vmax.f32 %v2921_v59, 0.0  ;;  %v1684_v8 = vmul.f32 %v7972_v3, %v436_v45  ;;  %v4756_v21 = vld [vmem:[%s5840_s9 + $0x64] ss:$40 sps:$4 sm:$0xff]   ;;  %v311_v13 = vld [vmem:[%s7706_s0 + $0x250] sm:$0xff] }
 0x253   : > { %v3234_v43 = vmax.f32 %v2922_v25, 0.0  ;;  %4100 = vmatprep.subr.bf16.mxu0 %v3510_v49  ;;  %v2441_v61 = vpop.permute.xlu1 %2440  ;;  %v1681_v59 = vmul.f32 %v7973_v4, %v433_v38  ;;  %v1682_v25 = vmul.f32 %v7973_v4, %v434_v47  ;;  %v1936_v45 = vld [vmem:[%s7708_s2 + $0x458] sm:$0xff]  ;;  %v1935_v47 = vld [vmem:[%s7708_s2 + $0x450] sm:$0xff] }
 0x254   : > { %v2927_v36 = vadd.f32 %v2441_v61, %v1679_v27  ;;  %v2928_v16 = vadd.f32 %v2441_v61, %v1680_v53  ;;  %v2436_v58 = vpop.permute.xlu0 %2435  ;;  %4101 = vmatpush1.bf16.msra.mxu0 %v3509_v60  ;;  %2610 = vperm.xlu1 %4746, %v1928_v41   ;;  %v3511_v22 = vpack.c.bf16 %v3235_v54, %v3233_v35  ;;  %v310_v27 = vld [vmem:[%s7706_s0 + $0x248] sm:$0xff] }
 0x255   : > { %v2925_v9 = vadd.f32 %v2436_v58, %v1677_v50  ;;  %v2926_v63 = vadd.f32 %v2436_v58, %v1678_v52  ;;  %2605 = vperm.xlu0 %4745, %v1927_v51   ;;  %v3512_v26 = vpack.c.bf16 %v3236_v1, %v3234_v43  ;;  %v1934_v50 = vld [vmem:[%s7708_s2 + $0x448] sm:$0xff]  ;;  %v7974_v52 = vld [vmem:[#allocation7_spill] sm:$0xff] }
 0x256   : > { %v3239_v33 = vmax.f32 %v2927_v36, 0.0  ;;  %v3240_v23 = vmax.f32 %v2928_v16, 0.0  ;;  %v1559_v35 = vmul.f32 %v7974_v52, %v311_v13  ;;  %v1560_v43 = vmul.f32 %v7974_v52, %v312_v20  ;;  %v7975_v36 = vld [vmem:[#allocation8_spill] sm:$0xff] }
 0x257   : > { %v3237_v46 = vmax.f32 %v2925_v9, 0.0  ;;  %v3238_v56 = vmax.f32 %v2926_v63, 0.0  ;;  %4102 = vmatprep.subr.bf16.mxu0 %v3512_v26  ;;  %v2131_v7 = vpop.permute.xlu1 %2130  ;;  %v1557_v16 = vmul.f32 %v7975_v36, %v309_v17  ;;  %v1558_v58 = vmul.f32 %v7975_v36, %v310_v27  ;;  %v439_v9 = vld [vmem:[%s7706_s0 + $0x650] sm:$0xff]  ;;  %v440_v63 = vld [vmem:[%s7706_s0 + $0x658] sm:$0xff]  ;;  %v1937_v27 = vld [vmem:[%s7708_s2 + $0x460] sm:$0xff] }
 0x258   : > { %v2803_v30 = vadd.f32 %v2131_v7, %v1555_v29  ;;  %v2804_v39 = vadd.f32 %v2131_v7, %v1556_v10  ;;  %v2126_v48 = vpop.permute.xlu0 %2125  ;;  %4103 = vmatpush1.bf16.msra.mxu0 %v3511_v22  ;;  %2620 = vperm.xlu1 %4746, %v1930_v0   ;;  %v437_v29 = vld [vmem:[%s7706_s0 + $0x640] sm:$0xff]  ;;  %v438_v10 = vld [vmem:[%s7706_s0 + $0x648] sm:$0xff]  ;;  %v4764_v52 = vld [vmem:[%s5840_s9 + $0xb0] ss:$40 sps:$4 sm:$0xff]  }
 0x259   : > { %v3513_v5 = vpack.c.bf16 %v3239_v33, %v3237_v46  ;;  %v2801_v32 = vadd.f32 %v2126_v48, %v1553_v34  ;;  %v2802_v14 = vadd.f32 %v2126_v48, %v1554_v24  ;;  %2615 = vperm.xlu0 %4745, %v1929_v12   ;;  %v3514_v6 = vpack.c.bf16 %v3240_v23, %v3238_v56  ;;  %v7976_v46 = vld [vmem:[#allocation64_spill] sm:$0xff] }
 0x25a   : > { %v3115_v62 = vmax.f32 %v2803_v30, 0.0  ;;  %v3116_v57 = vmax.f32 %v2804_v39, 0.0  ;;  %v1687_v56 = vmul.f32 %v7976_v46, %v439_v9  ;;  %v1688_v7 = vmul.f32 %v7976_v46, %v440_v63  ;;  %v4762_v30 = vld [vmem:[%s5840_s9 + $0xb4] ss:$40 sps:$4 sm:$0xff]  }
 0x25b   : > { %v3113_v49 = vmax.f32 %v2801_v32, 0.0  ;;  %v3114_v60 = vmax.f32 %v2802_v14, 0.0  ;;  %4165 = vmatprep.subr.bf16.mxu0 %v3514_v6  ;;  %v2451_v41 = vpop.permute.xlu1 %2450  ;;  %4105 = vmatmul.mubr.bf16.vlgmr.msra.gmra.mrb[0].mxu0 %v4750_v31  ;;  %v315_v39 = vld [vmem:[%s7706_s0 + $0x270] sm:$0xff]  ;;  %v316_v48 = vld [vmem:[%s7706_s0 + $0x278] sm:$0xff] }
 0x25c   : > { %v2931_v53 = vadd.f32 %v2451_v41, %v1683_v18  ;;  %v2932_v54 = vadd.f32 %v2451_v41, %v1684_v8  ;;  %v2446_v1 = vpop.permute.xlu0 %2445  ;;  %4166 = vmatpush1.bf16.msra.mxu0 %v3513_v5  ;;  %2630 = vperm.xlu1 %4746, %v1932_v40   ;;  %v7977_v5 = vld [vmem:[#allocation65_spill] sm:$0xff]  ;;  %v314_v8 = vld [vmem:[%s7706_s0 + $0x268] sm:$0xff]  ;;  %v1940_v63 = vld [vmem:[%s7708_s2 + $0x478] sm:$0xff] }
 0x25d   : > { %v3451_v51 = vpack.c.bf16 %v3115_v62, %v3113_v49  ;;  %v2929_v28 = vadd.f32 %v2446_v1, %v1681_v59  ;;  %v2930_v15 = vadd.f32 %v2446_v1, %v1682_v25  ;;  %2625 = vperm.xlu0 %4745, %v1931_v19   ;;  %v3452_v2 = vpack.c.bf16 %v3116_v57, %v3114_v60  ;;  %v313_v18 = vld [vmem:[%s7706_s0 + $0x260] sm:$0xff]  ;;  %v1938_v59 = vld [vmem:[%s7708_s2 + $0x468] sm:$0xff] }
 0x25e   : > { %v3243_v61 = vmax.f32 %v2931_v53, 0.0  ;;  %v3244_v42 = vmax.f32 %v2932_v54, 0.0  ;;  %4114 = vmatprep.mubr.bf16.mxu0 %v4756_v21  ;;  %v1685_v32 = vmul.f32 %v7977_v5, %v437_v29  ;;  %v1686_v14 = vmul.f32 %v7977_v5, %v438_v10  ;;  %v7978_v25 = vld [vmem:[#allocation9_spill] sm:$0xff]  ;;  %v7979_v53 = vld [vmem:[#allocation10_spill] sm:$0xff]  ;;  %v1939_v10 = vld [vmem:[%s7708_s2 + $0x470] sm:$0xff] }
 0x25f   : > { %v3241_v26 = vmax.f32 %v2929_v28, 0.0  ;;  %v3242_v22 = vmax.f32 %v2930_v15, 0.0  ;;  %3981 = vmatprep.subr.bf16.mxu1 %v3452_v2  ;;  %v2141_v0 = vpop.permute.xlu1 %2140  ;;  %v1563_v49 = vmul.f32 %v7978_v25, %v315_v39  ;;  %v1564_v60 = vmul.f32 %v7978_v25, %v316_v48  ;;  %v444_v28 = vld [vmem:[%s7706_s0 + $0x678] sm:$0xff]  ;;  %v4770_v25 = vld [vmem:[%s5840_s9 + $0x100] ss:$40 sps:$4 sm:$0xff]  }
 0x260   : > { %v2807_v33 = vadd.f32 %v2141_v0, %v1559_v35  ;;  %v2808_v23 = vadd.f32 %v2141_v0, %v1560_v43  ;;  %v2136_v12 = vpop.permute.xlu0 %2135  ;;  %3982 = vmatpush1.bf16.msra.mxu1 %v3451_v51  ;;  %2640 = vperm.xlu1 %4746, %v1934_v50   ;;  %v1561_v54 = vmul.f32 %v7979_v53, %v313_v18  ;;  %v443_v51 = vld [vmem:[%s7706_s0 + $0x670] sm:$0xff]  ;;  %v441_v35 = vld [vmem:[%s7706_s0 + $0x660] sm:$0xff]  ;;  %v442_v43 = vld [vmem:[%s7706_s0 + $0x668] sm:$0xff] }
 0x261   : > { %v3515_v37 = vpack.c.bf16 %v3243_v61, %v3241_v26  ;;  %v2805_v34 = vadd.f32 %v2136_v12, %v1557_v16  ;;  %v2806_v24 = vadd.f32 %v2136_v12, %v1558_v58  ;;  %2635 = vperm.xlu0 %4745, %v1933_v44   ;;  %v3516_v55 = vpack.c.bf16 %v3244_v42, %v3242_v22  ;;  %v7980_v26 = vld [vmem:[#allocation66_spill] sm:$0xff]  ;;  %v320_v12 = vld [vmem:[%s7706_s0 + $0x298] sm:$0xff] }
 0x262   : > { %v3119_v31 = vmax.f32 %v2807_v33, 0.0  ;;  %v3120_v38 = vmax.f32 %v2808_v23, 0.0  ;;  %v1562_v1 = vmul.f32 %v7979_v53, %v314_v8  ;;  %v1691_v22 = vmul.f32 %v7980_v26, %v443_v51  ;;  %v4768_v33 = vld [vmem:[%s5840_s9 + $0x104] ss:$40 sps:$4 sm:$0xff]   ;;  %v319_v23 = vld [vmem:[%s7706_s0 + $0x290] sm:$0xff] }
 0x263   : > { %v3117_v6 = vmax.f32 %v2805_v34, 0.0  ;;  %v3118_v40 = vmax.f32 %v2806_v24, 0.0  ;;  %4167 = vmatprep.subr.bf16.mxu0 %v3516_v55  ;;  %v2461_v3 = vpop.permute.xlu1 %2460  ;;  %4115 = vmatmul.mubr.bf16.gmra.mrb[4].mxu0 %v4758_v11  ;;  %v1692_v0 = vmul.f32 %v7980_v26, %v444_v28  ;;  %v1941_v8 = vld [vmem:[%s7708_s2 + $0x480] sm:$0xff]  ;;  %v1944_v28 = vld [vmem:[%s7708_s2 + $0x498] sm:$0xff] }
 0x264   : > { %v2935_v62 = vadd.f32 %v2461_v3, %v1687_v56  ;;  %v2936_v57 = vadd.f32 %v2461_v3, %v1688_v7  ;;  %v2456_v19 = vpop.permute.xlu0 %2455  ;;  %4168 = vmatpush1.bf16.msra.mxu0 %v3515_v37  ;;  %2650 = vperm.xlu1 %4746, %v1936_v45   ;;  %v7981_v37 = vld [vmem:[#allocation67_spill] sm:$0xff]  ;;  %v317_v56 = vld [vmem:[%s7706_s0 + $0x280] sm:$0xff]  ;;  %v318_v7 = vld [vmem:[%s7706_s0 + $0x288] sm:$0xff] }
 0x265   : > { %v3453_v21 = vpack.c.bf16 %v3119_v31, %v3117_v6  ;;  %v2933_v13 = vadd.f32 %v2456_v19, %v1685_v32  ;;  %v2934_v20 = vadd.f32 %v2456_v19, %v1686_v14  ;;  %2645 = vperm.xlu0 %4745, %v1935_v47   ;;  %v3454_v4 = vpack.c.bf16 %v3120_v38, %v3118_v40  ;;  %v1942_v32 = vld [vmem:[%s7708_s2 + $0x488] sm:$0xff]  ;;  %v7982_v14 = vld [vmem:[#allocation11_spill] sm:$0xff] }
 0x266   : > { %v3247_v41 = vmax.f32 %v2935_v62, 0.0  ;;  %v3248_v17 = vmax.f32 %v2936_v57, 0.0  ;;  %4124 = vmatprep.mubr.bf16.mxu0 %v4762_v30  ;;  %v1689_v34 = vmul.f32 %v7981_v37, %v441_v35  ;;  %v1690_v24 = vmul.f32 %v7981_v37, %v442_v43  ;;  %v7983_v62 = vld [vmem:[#allocation12_spill] sm:$0xff]  ;;  %v1943_v43 = vld [vmem:[%s7708_s2 + $0x490] sm:$0xff] }
 0x267   : > { %v3245_v15 = vmax.f32 %v2933_v13, 0.0  ;;  %v3246_v2 = vmax.f32 %v2934_v20, 0.0  ;;  %3983 = vmatprep.subr.bf16.mxu1 %v3454_v4  ;;  %v2151_v50 = vpop.permute.xlu1 %2150  ;;  %v1567_v6 = vmul.f32 %v7982_v14, %v319_v23  ;;  %v1568_v40 = vmul.f32 %v7982_v14, %v320_v12  ;;  %v448_v13 = vld [vmem:[%s7706_s0 + $0x698] sm:$0xff] }
 0x268   : > { %v2811_v61 = vadd.f32 %v2151_v50, %v1563_v49  ;;  %v2812_v42 = vadd.f32 %v2151_v50, %v1564_v60  ;;  %v2146_v44 = vpop.permute.xlu0 %2145  ;;  %3984 = vmatpush1.bf16.msra.mxu1 %v3453_v21  ;;  %2660 = vperm.xlu1 %4746, %v1938_v59   ;;  %v1565_v57 = vmul.f32 %v7983_v62, %v317_v56  ;;  %v447_v21 = vld [vmem:[%s7706_s0 + $0x690] sm:$0xff]  ;;  %v445_v49 = vld [vmem:[%s7706_s0 + $0x680] sm:$0xff]  ;;  %v446_v60 = vld [vmem:[%s7706_s0 + $0x688] sm:$0xff] }
 0x269   : > { %v3517_v36 = vpack.c.bf16 %v3247_v41, %v3245_v15  ;;  %v2809_v16 = vadd.f32 %v2146_v44, %v1561_v54  ;;  %v2810_v58 = vadd.f32 %v2146_v44, %v1562_v1  ;;  %2655 = vperm.xlu0 %4745, %v1937_v27   ;;  %v3518_v9 = vpack.c.bf16 %v3248_v17, %v3246_v2  ;;  %v7984_v15 = vld [vmem:[#allocation68_spill] sm:$0xff] }
 0x26a   : > { %v3123_v11 = vmax.f32 %v2811_v61, 0.0  ;;  %v3124_v29 = vmax.f32 %v2812_v42, 0.0  ;;  %v1566_v19 = vmul.f32 %v7983_v62, %v318_v7  ;;  %v1695_v2 = vmul.f32 %v7984_v15, %v447_v21  ;;  %v4774_v61 = vld [vmem:[%s5840_s9 + $0x154] ss:$40 sps:$4 sm:$0xff]   ;;  %v1945_v7 = vld [vmem:[%s7708_s2 + $0x4a0] sm:$0xff] }
 0x26b   : > { %v3121_v55 = vmax.f32 %v2809_v16, 0.0  ;;  %v3122_v45 = vmax.f32 %v2810_v58, 0.0  ;;  %4169 = vmatprep.subr.bf16.mxu0 %v3518_v9  ;;  %v2471_v46 = vpop.permute.xlu1 %2470  ;;  %4125 = vmatmul.mubr.bf16.gmra.mrb[8].mxu0 %v4764_v52  ;;  %v1696_v50 = vmul.f32 %v7984_v15, %v448_v13  ;;  %v323_v42 = vld [vmem:[%s7706_s0 + $0x2b0] sm:$0xff]  ;;  %v324_v44 = vld [vmem:[%s7706_s0 + $0x2b8] sm:$0xff] }
 0x26c   : > { %v2939_v31 = vadd.f32 %v2471_v46, %v1691_v22  ;;  %v2940_v38 = vadd.f32 %v2471_v46, %v1692_v0  ;;  %v2466_v47 = vpop.permute.xlu0 %2465  ;;  %4170 = vmatpush1.bf16.msra.mxu0 %v3517_v36  ;;  %2670 = vperm.xlu1 %4746, %v1940_v63   ;;  %v7985_v36 = vld [vmem:[#allocation69_spill] sm:$0xff]  ;;  %v322_v0 = vld [vmem:[%s7706_s0 + $0x2a8] sm:$0xff]  ;;  %v4776_v14 = vld [vmem:[%s5840_s9 + $0x150] ss:$40 sps:$4 sm:$0xff]  }
 0x26d   : > { %v3455_v30 = vpack.c.bf16 %v3123_v11, %v3121_v55  ;;  %v2937_v39 = vadd.f32 %v2466_v47, %v1689_v34  ;;  %v2938_v48 = vadd.f32 %v2466_v47, %v1690_v24  ;;  %2665 = vperm.xlu0 %4745, %v1939_v10   ;;  %v3456_v5 = vpack.c.bf16 %v3124_v29, %v3122_v45  ;;  %v321_v22 = vld [vmem:[%s7706_s0 + $0x2a0] sm:$0xff]  ;;  %v1946_v34 = vld [vmem:[%s7708_s2 + $0x4a8] sm:$0xff]  ;;  %v1948_v13 = vld [vmem:[%s7708_s2 + $0x4b8] sm:$0xff] }
 0x26e   : > { %v3251_v3 = vmax.f32 %v2939_v31, 0.0  ;;  %v3252_v18 = vmax.f32 %v2940_v38, 0.0  ;;  %4134 = vmatprep.mubr.bf16.mxu0 %v4768_v33  ;;  %v1693_v16 = vmul.f32 %v7985_v36, %v445_v49  ;;  %v1694_v58 = vmul.f32 %v7985_v36, %v446_v60  ;;  %v7986_v24 = vld [vmem:[#allocation13_spill] sm:$0xff]  ;;  %v7987_v31 = vld [vmem:[#allocation14_spill] sm:$0xff]  ;;  %v1947_v60 = vld [vmem:[%s7708_s2 + $0x4b0] sm:$0xff] }
 0x26f   : > { %v3249_v20 = vmax.f32 %v2937_v39, 0.0  ;;  %v3250_v4 = vmax.f32 %v2938_v48, 0.0  ;;  %3985 = vmatprep.subr.bf16.mxu1 %v3456_v5  ;;  %v2161_v59 = vpop.permute.xlu1 %2160  ;;  %v1571_v55 = vmul.f32 %v7986_v24, %v323_v42  ;;  %v1572_v45 = vmul.f32 %v7986_v24, %v324_v44  ;;  %v452_v39 = vld [vmem:[%s7706_s0 + $0x6b8] sm:$0xff]  ;;  %v4782_v24 = vld [vmem:[%s5840_s9 + $0x1a0] ss:$40 sps:$4 sm:$0xff]  }
 0x270   : > { %v2815_v41 = vadd.f32 %v2161_v59, %v1567_v6  ;;  %v2816_v17 = vadd.f32 %v2161_v59, %v1568_v40  ;;  %v2156_v27 = vpop.permute.xlu0 %2155  ;;  %3986 = vmatpush1.bf16.msra.mxu1 %v3455_v30  ;;  %2680 = vperm.xlu1 %4746, %v1942_v32   ;;  %v1569_v38 = vmul.f32 %v7987_v31, %v321_v22  ;;  %v451_v30 = vld [vmem:[%s7706_s0 + $0x6b0] sm:$0xff]  ;;  %v449_v6 = vld [vmem:[%s7706_s0 + $0x6a0] sm:$0xff]  ;;  %v450_v40 = vld [vmem:[%s7706_s0 + $0x6a8] sm:$0xff] }
 0x271   : > { %v3519_v53 = vpack.c.bf16 %v3251_v3, %v3249_v20  ;;  %v2813_v54 = vadd.f32 %v2156_v27, %v1565_v57  ;;  %v2814_v1 = vadd.f32 %v2156_v27, %v1566_v19  ;;  %2675 = vperm.xlu0 %4745, %v1941_v8   ;;  %v3520_v51 = vpack.c.bf16 %v3252_v18, %v3250_v4  ;;  %v7988_v20 = vld [vmem:[#allocation70_spill] sm:$0xff]  ;;  %v328_v27 = vld [vmem:[%s7706_s0 + $0x2d8] sm:$0xff] }
 0x272   : > { %v3127_v52 = vmax.f32 %v2815_v41, 0.0  ;;  %v3128_v35 = vmax.f32 %v2816_v17, 0.0  ;;  %v1570_v47 = vmul.f32 %v7987_v31, %v322_v0  ;;  %v1699_v4 = vmul.f32 %v7988_v20, %v451_v30  ;;  %v4780_v41 = vld [vmem:[%s5840_s9 + $0x1a4] ss:$40 sps:$4 sm:$0xff]   ;;  %v327_v17 = vld [vmem:[%s7706_s0 + $0x2d0] sm:$0xff] }
 0x273   : > { %v3125_v9 = vmax.f32 %v2813_v54, 0.0  ;;  %v3126_v63 = vmax.f32 %v2814_v1, 0.0  ;;  %4171 = vmatprep.subr.bf16.mxu0 %v3520_v51  ;;  %v2481_v26 = vpop.permute.xlu1 %2480  ;;  %4135 = vmatmul.mubr.bf16.gmra.mrb[12].mxu0 %v4770_v25  ;;  %v1700_v59 = vmul.f32 %v7988_v20, %v452_v39  ;;  %v1949_v0 = vld [vmem:[%s7708_s2 + $0x4c0] sm:$0xff]  ;;  %v1952_v39 = vld [vmem:[%s7708_s2 + $0x4d8] sm:$0xff] }
 0x274   : > { %v2943_v11 = vadd.f32 %v2481_v26, %v1695_v2  ;;  %v2944_v29 = vadd.f32 %v2481_v26, %v1696_v50  ;;  %v2476_v10 = vpop.permute.xlu0 %2475  ;;  %4172 = vmatpush1.bf16.msra.mxu0 %v3519_v53  ;;  %2690 = vperm.xlu1 %4746, %v1944_v28   ;;  %v7989_v53 = vld [vmem:[#allocation71_spill] sm:$0xff]  ;;  %v325_v2 = vld [vmem:[%s7706_s0 + $0x2c0] sm:$0xff]  ;;  %v326_v50 = vld [vmem:[%s7706_s0 + $0x2c8] sm:$0xff] }
 0x275   : > { %v3457_v33 = vpack.c.bf16 %v3127_v52, %v3125_v9  ;;  %v2941_v23 = vadd.f32 %v2476_v10, %v1693_v16  ;;  %v2942_v12 = vadd.f32 %v2476_v10, %v1694_v58  ;;  %2685 = vperm.xlu0 %4745, %v1943_v43   ;;  %v3458_v37 = vpack.c.bf16 %v3128_v35, %v3126_v63  ;;  %v1950_v16 = vld [vmem:[%s7708_s2 + $0x4c8] sm:$0xff]  ;;  %v7990_v58 = vld [vmem:[#allocation15_spill] sm:$0xff] }
 0x276   : > { %v3255_v46 = vmax.f32 %v2943_v11, 0.0  ;;  %v3256_v56 = vmax.f32 %v2944_v29, 0.0  ;;  %4144 = vmatprep.mubr.bf16.mxu0 %v4774_v61  ;;  %v1697_v54 = vmul.f32 %v7989_v53, %v449_v6  ;;  %v1698_v1 = vmul.f32 %v7989_v53, %v450_v40  ;;  %v7991_v11 = vld [vmem:[#allocation16_spill] sm:$0xff]  ;;  %v1951_v40 = vld [vmem:[%s7708_s2 + $0x4d0] sm:$0xff] }
 0x277   : > { %v3253_v48 = vmax.f32 %v2941_v23, 0.0  ;;  %v3254_v5 = vmax.f32 %v2942_v12, 0.0  ;;  %3987 = vmatprep.subr.bf16.mxu1 %v3458_v37  ;;  %v2171_v32 = vpop.permute.xlu1 %2170  ;;  %v1575_v9 = vmul.f32 %v7990_v58, %v327_v17  ;;  %v1576_v63 = vmul.f32 %v7990_v58, %v328_v27  ;;  %v456_v23 = vld [vmem:[%s7706_s0 + $0x6d8] sm:$0xff] }
 0x278   : > { %v2819_v3 = vadd.f32 %v2171_v32, %v1571_v55  ;;  %v2820_v18 = vadd.f32 %v2171_v32, %v1572_v45  ;;  %v2166_v8 = vpop.permute.xlu0 %2165  ;;  %3988 = vmatpush1.bf16.msra.mxu1 %v3457_v33  ;;  %2700 = vperm.xlu1 %4746, %v1946_v34   ;;  %v1573_v29 = vmul.f32 %v7991_v11, %v325_v2  ;;  %v455_v33 = vld [vmem:[%s7706_s0 + $0x6d0] sm:$0xff]  ;;  %v453_v55 = vld [vmem:[%s7706_s0 + $0x6c0] sm:$0xff]  ;;  %v454_v45 = vld [vmem:[%s7706_s0 + $0x6c8] sm:$0xff] }
 0x279   : > { %v3521_v62 = vpack.c.bf16 %v3255_v46, %v3253_v48  ;;  %v2817_v57 = vadd.f32 %v2166_v8, %v1569_v38  ;;  %v2818_v19 = vadd.f32 %v2166_v8, %v1570_v47  ;;  %2695 = vperm.xlu0 %4745, %v1945_v7   ;;  %v3522_v21 = vpack.c.bf16 %v3256_v56, %v3254_v5  ;;  %v7992_v48 = vld [vmem:[#allocation72_spill] sm:$0xff]  ;;  %v7995_v2 = vld [vmem:[#allocation18_spill] sm:$0xff] }
 0x27a   : > { %v3131_v25 = vmax.f32 %v2819_v3, 0.0  ;;  %v3132_v49 = vmax.f32 %v2820_v18, 0.0  ;;  %v1574_v10 = vmul.f32 %v7991_v11, %v326_v50  ;;  %v1703_v5 = vmul.f32 %v7992_v48, %v455_v33  ;;  %v4788_v3 = vld [vmem:[%s5840_s9 + $0x1c] ss:$40 sps:$4 sm:$0xff]   ;;  %v331_v18 = vld [vmem:[%s7706_s0 + $0x2f0] sm:$0xff] }
 0x27b   : > { %v3129_v51 = vmax.f32 %v2817_v57, 0.0  ;;  %v3130_v28 = vmax.f32 %v2818_v19, 0.0  ;;  %4173 = vmatprep.subr.bf16.mxu0 %v3522_v21  ;;  %v2491_v15 = vpop.permute.xlu1 %2490  ;;  %4145 = vmatmul.mubr.bf16.gmra.mrb[16].mxu0 %v4776_v14  ;;  %v1704_v32 = vmul.f32 %v7992_v48, %v456_v23  ;;  %v332_v8 = vld [vmem:[%s7706_s0 + $0x2f8] sm:$0xff] }
 0x27c   : > { %v2947_v52 = vadd.f32 %v2491_v15, %v1699_v4  ;;  %v2948_v35 = vadd.f32 %v2491_v15, %v1700_v59  ;;  %v2486_v43 = vpop.permute.xlu0 %2485  ;;  %4174 = vmatpush1.bf16.msra.mxu0 %v3521_v62  ;;  %2710 = vperm.xlu1 %4746, %v1948_v13   ;;  %v7993_v62 = vld [vmem:[#allocation73_spill] sm:$0xff]  ;;  %v330_v59 = vld [vmem:[%s7706_s0 + $0x2e8] sm:$0xff] }
 0x27d   : > { %v3459_v61 = vpack.c.bf16 %v3131_v25, %v3129_v51  ;;  %v2945_v42 = vadd.f32 %v2486_v43, %v1697_v54  ;;  %v2946_v44 = vadd.f32 %v2486_v43, %v1698_v1  ;;  %2705 = vperm.xlu0 %4745, %v1947_v60   ;;  %v3460_v36 = vpack.c.bf16 %v3132_v49, %v3130_v28  ;;  %v329_v4 = vld [vmem:[%s7706_s0 + $0x2e0] sm:$0xff]  ;;  %v460_v43 = vld [vmem:[%s7706_s0 + $0x6f8] sm:$0xff] }
 0x27e   : > { %v3259_v26 = vmax.f32 %v2947_v52, 0.0  ;;  %v3260_v22 = vmax.f32 %v2948_v35, 0.0  ;;  %4154 = vmatprep.mubr.bf16.mxu0 %v4780_v41  ;;  %v1701_v57 = vmul.f32 %v7993_v62, %v453_v55  ;;  %v1702_v19 = vmul.f32 %v7993_v62, %v454_v45  ;;  %v7994_v54 = vld [vmem:[#allocation17_spill] sm:$0xff]  ;;  %v459_v35 = vld [vmem:[%s7706_s0 + $0x6f0] sm:$0xff]  ;;  %v7999_v62 = vld [vmem:[#allocation20_spill] sm:$0xff] }
 0x27f   : > { %v3257_v12 = vmax.f32 %v2945_v42, 0.0  ;;  %v3258_v37 = vmax.f32 %v2946_v44, 0.0  ;;  %3989 = vmatprep.subr.bf16.mxu1 %v3460_v36  ;;  %v2181_v34 = vpop.permute.xlu1 %2180  ;;  %v1579_v1 = vmul.f32 %v7994_v54, %v331_v18  ;;  %v1580_v51 = vmul.f32 %v7994_v54, %v332_v8  ;;  %v457_v36 = vld [vmem:[%s7706_s0 + $0x6e0] sm:$0xff] }
 0x280   : > { %v2823_v46 = vadd.f32 %v2181_v34, %v1575_v9  ;;  %v2824_v56 = vadd.f32 %v2181_v34, %v1576_v63  ;;  %v2176_v7 = vpop.permute.xlu0 %2175  ;;  %3990 = vmatpush1.bf16.msra.mxu1 %v3459_v61  ;;  %2720 = vperm.xlu1 %4746, %v1950_v16   ;;  %v1577_v50 = vmul.f32 %v7995_v2, %v329_v4  ;;  %v458_v16 = vld [vmem:[%s7706_s0 + $0x6e8] sm:$0xff]  ;;  %v336_v34 = vld [vmem:[%s7706_s0 + $0x318] sm:$0xff] }
 0x281   : > { %v3523_v31 = vpack.c.bf16 %v3259_v26, %v3257_v12  ;;  %v2821_v38 = vadd.f32 %v2176_v7, %v1573_v29  ;;  %v2822_v47 = vadd.f32 %v2176_v7, %v1574_v10  ;;  %2715 = vperm.xlu0 %4745, %v1949_v0   ;;  %v3524_v30 = vpack.c.bf16 %v3260_v22, %v3258_v37  ;;  %v7996_v29 = vld [vmem:[#allocation74_spill] sm:$0xff]  ;;  %v335_v37 = vld [vmem:[%s7706_s0 + $0x310] sm:$0xff] }
 0x282   : > { %v3135_v14 = vmax.f32 %v2823_v46, 0.0  ;;  %v3136_v6 = vmax.f32 %v2824_v56, 0.0  ;;  %v1578_v52 = vmul.f32 %v7995_v2, %v330_v59  ;;  %v1707_v10 = vmul.f32 %v7996_v29, %v459_v35  ;;  %v340_v35 = vld [vmem:[%s7706_s0 + $0x338] sm:$0xff] }
 0x283   : > { %v3133_v21 = vmax.f32 %v2821_v38, 0.0  ;;  %v3134_v13 = vmax.f32 %v2822_v47, 0.0  ;;  %4175 = vmatprep.subr.bf16.mxu0 %v3524_v30  ;;  %v2501_v20 = vpop.permute.xlu1 %2500  ;;  %4155 = vmatmul.mubr.bf16.gmra.mrb[20].mxu0 %v4782_v24  ;;  %v1708_v33 = vmul.f32 %v7996_v29, %v460_v43  ;;  %v7997_v24 = vld [vmem:[#allocation75_spill] sm:$0xff]  ;;  %v334_v38 = vld [vmem:[%s7706_s0 + $0x308] sm:$0xff]  ;;  %v8001_v43 = vld [vmem:[#allocation77_spill] sm:$0xff] }
 0x284   : > { %v2951_v25 = vadd.f32 %v2501_v20, %v1703_v5  ;;  %v2952_v49 = vadd.f32 %v2501_v20, %v1704_v32  ;;  %v2496_v60 = vpop.permute.xlu0 %2495  ;;  %4176 = vmatpush1.bf16.msra.mxu0 %v3523_v31  ;;  %2730 = vperm.xlu1 %4746, %v1952_v39   ;;  %v1705_v55 = vmul.f32 %v7997_v24, %v457_v36  ;;  %v333_v31 = vld [vmem:[%s7706_s0 + $0x300] sm:$0xff] }
 0x285   : > { %v3461_v41 = vpack.c.bf16 %v3135_v14, %v3133_v21  ;;  %v2949_v17 = vadd.f32 %v2496_v60, %v1701_v57  ;;  %v2950_v27 = vadd.f32 %v2496_v60, %v1702_v19  ;;  %2725 = vperm.xlu0 %4745, %v1951_v40   ;;  %v3462_v53 = vpack.c.bf16 %v3136_v6, %v3134_v13  ;;  %v7998_v6 = vld [vmem:[#allocation19_spill] sm:$0xff]  ;;  %v464_v13 = vld [vmem:[%s7706_s0 + $0x718] sm:$0xff] }
 0x286   : > { %v3263_v28 = vmax.f32 %v2951_v25, 0.0  ;;  %v3264_v15 = vmax.f32 %v2952_v49, 0.0  ;;  %4197 = vmatprep.mubr.bf16.mxu0 %v4788_v3  ;;  %v1706_v45 = vmul.f32 %v7997_v24, %v458_v16  ;;  %v1583_v40 = vmul.f32 %v7998_v6, %v335_v37  ;;  %v463_v21 = vld [vmem:[%s7706_s0 + $0x710] sm:$0xff]  ;;  %v461_v25 = vld [vmem:[%s7706_s0 + $0x700] sm:$0xff]  ;;  %v462_v49 = vld [vmem:[%s7706_s0 + $0x708] sm:$0xff] }
 0x287   : > { %v3261_v61 = vmax.f32 %v2949_v17, 0.0  ;;  %v3262_v42 = vmax.f32 %v2950_v27, 0.0  ;;  %3991 = vmatprep.subr.bf16.mxu1 %v3462_v53  ;;  %v2191_v44 = vpop.permute.xlu1 %2190  ;;  %v1584_v3 = vmul.f32 %v7998_v6, %v336_v34  ;;  %v1581_v57 = vmul.f32 %v7999_v62, %v333_v31  ;;  %v8003_v24 = vld [vmem:[#allocation22_spill] sm:$0xff] }
 0x288   : > { %v2827_v58 = vadd.f32 %v2191_v44, %v1579_v1  ;;  %v2828_v9 = vadd.f32 %v2191_v44, %v1580_v51  ;;  %v2186_v63 = vpop.permute.xlu0 %2185  ;;  %3992 = vmatpush1.bf16.msra.mxu1 %v3461_v41  ;;  %v1582_v19 = vmul.f32 %v7999_v62, %v334_v38  ;;  %v8000_v51 = vld [vmem:[#allocation76_spill] sm:$0xff] }
 0x289   : > { %v3525_v26 = vpack.c.bf16 %v3263_v28, %v3261_v61  ;;  %v2825_v22 = vadd.f32 %v2186_v63, %v1577_v50  ;;  %v2826_v0 = vadd.f32 %v2186_v63, %v1578_v52  ;;  %v3526_v11 = vpack.c.bf16 %v3264_v15, %v3262_v42  ;;  %v339_v52 = vld [vmem:[%s7706_s0 + $0x330] sm:$0xff] }
 0x28a   : > { %v3139_v23 = vmax.f32 %v2827_v58, 0.0  ;;  %v3140_v12 = vmax.f32 %v2828_v9, 0.0  ;;  %v1711_v28 = vmul.f32 %v8000_v51, %v463_v21  ;;  %v1712_v15 = vmul.f32 %v8000_v51, %v464_v13  ;;  %v337_v58 = vld [vmem:[%s7706_s0 + $0x320] sm:$0xff]  ;;  %v338_v9 = vld [vmem:[%s7706_s0 + $0x328] sm:$0xff]  ;;  %v344_v21 = vld [vmem:[%s7706_s0 + $0x358] sm:$0xff] }
 0x28b   : > { %v3137_v46 = vmax.f32 %v2825_v22, 0.0  ;;  %v3138_v56 = vmax.f32 %v2826_v0, 0.0  ;;  %4177 = vmatprep.subr.bf16.mxu0 %v3526_v11  ;;  %v2511_v7 = vpop.permute.xlu1 %2510  ;;  %v1709_v61 = vmul.f32 %v8001_v43, %v461_v25  ;;  %v1710_v42 = vmul.f32 %v8001_v43, %v462_v49  ;;  %v8005_v13 = vld [vmem:[#allocation79_spill] sm:$0xff]  ;;  %v8007_v43 = vld [vmem:[#allocation24_spill] sm:$0xff] }
 0x28c   : > { %v2955_v47 = vadd.f32 %v2511_v7, %v1707_v10  ;;  %v2956_v30 = vadd.f32 %v2511_v7, %v1708_v33  ;;  %v2506_v39 = vpop.permute.xlu0 %2505  ;;  %4178 = vmatpush1.bf16.msra.mxu0 %v3525_v26  ;;  %v8002_v33 = vld [vmem:[#allocation21_spill] sm:$0xff] }
 0x28d   : > { %v3463_v48 = vpack.c.bf16 %v3139_v23, %v3137_v46  ;;  %v2953_v5 = vadd.f32 %v2506_v39, %v1705_v55  ;;  %v2954_v32 = vadd.f32 %v2506_v39, %v1706_v45  ;;  %v3464_v14 = vpack.c.bf16 %v3140_v12, %v3138_v56  ;;  %v467_v46 = vld [vmem:[%s7706_s0 + $0x730] sm:$0xff]  ;;  %v468_v56 = vld [vmem:[%s7706_s0 + $0x738] sm:$0xff] }
 0x28e   : > { %v3267_v18 = vmax.f32 %v2955_v47, 0.0  ;;  %v3268_v8 = vmax.f32 %v2956_v30, 0.0  ;;  %v1587_v23 = vmul.f32 %v8002_v33, %v339_v52  ;;  %v1588_v12 = vmul.f32 %v8002_v33, %v340_v35  ;;  %v465_v47 = vld [vmem:[%s7706_s0 + $0x720] sm:$0xff]  ;;  %v466_v30 = vld [vmem:[%s7706_s0 + $0x728] sm:$0xff] }
 0x28f   : > { %v3265_v20 = vmax.f32 %v2953_v5, 0.0  ;;  %v3266_v4 = vmax.f32 %v2954_v32, 0.0  ;;  %3993 = vmatprep.subr.bf16.mxu1 %v3464_v14  ;;  %v2201_v59 = vpop.permute.xlu1 %2200  ;;  %v1585_v55 = vmul.f32 %v8003_v24, %v337_v58  ;;  %v1586_v45 = vmul.f32 %v8003_v24, %v338_v9 }
 0x290   : > { %v2831_v60 = vadd.f32 %v2201_v59, %v1583_v40  ;;  %v2832_v41 = vadd.f32 %v2201_v59, %v1584_v3  ;;  %v2196_v17 = vpop.permute.xlu0 %2195  ;;  %3994 = vmatpush1.bf16.msra.mxu1 %v3463_v48  ;;  %v8004_v3 = vld [vmem:[#allocation78_spill] sm:$0xff] }
 0x291   : > { %v3527_v27 = vpack.c.bf16 %v3267_v18, %v3265_v20  ;;  %v2829_v53 = vadd.f32 %v2196_v17, %v1581_v57  ;;  %v2830_v54 = vadd.f32 %v2196_v17, %v1582_v19  ;;  %v3528_v1 = vpack.c.bf16 %v3268_v8, %v3266_v4  ;;  %v343_v19 = vld [vmem:[%s7706_s0 + $0x350] sm:$0xff] }
 0x292   : > { %v3143_v2 = vmax.f32 %v2831_v60, 0.0  ;;  %v3144_v50 = vmax.f32 %v2832_v41, 0.0  ;;  %v1715_v18 = vmul.f32 %v8004_v3, %v467_v46  ;;  %v1716_v8 = vmul.f32 %v8004_v3, %v468_v56  ;;  %v341_v60 = vld [vmem:[%s7706_s0 + $0x340] sm:$0xff]  ;;  %v342_v41 = vld [vmem:[%s7706_s0 + $0x348] sm:$0xff]  ;;  %v348_v46 = vld [vmem:[%s7706_s0 + $0x378] sm:$0xff] }
 0x293   : > { %v3141_v44 = vmax.f32 %v2829_v53, 0.0  ;;  %v3142_v36 = vmax.f32 %v2830_v54, 0.0  ;;  %4179 = vmatprep.subr.bf16.mxu0 %v3528_v1  ;;  %v2521_v16 = vpop.permute.xlu1 %2520  ;;  %v1713_v20 = vmul.f32 %v8005_v13, %v465_v47  ;;  %v1714_v4 = vmul.f32 %v8005_v13, %v466_v30  ;;  %v8009_v56 = vld [vmem:[#allocation81_spill] sm:$0xff]  ;;  %v8011_v13 = vld [vmem:[#allocation26_spill] sm:$0xff] }
 0x294   : > { %v2959_v63 = vadd.f32 %v2521_v16, %v1711_v28  ;;  %v2960_v26 = vadd.f32 %v2521_v16, %v1712_v15  ;;  %v2516_v22 = vpop.permute.xlu0 %2515  ;;  %4180 = vmatpush1.bf16.msra.mxu0 %v3527_v27  ;;  %v8006_v15 = vld [vmem:[#allocation23_spill] sm:$0xff] }
 0x295   : > { %v3465_v0 = vpack.c.bf16 %v3143_v2, %v3141_v44  ;;  %v2957_v11 = vadd.f32 %v2516_v22, %v1709_v61  ;;  %v2958_v29 = vadd.f32 %v2516_v22, %v1710_v42  ;;  %v3466_v10 = vpack.c.bf16 %v3144_v50, %v3142_v36  ;;  %v471_v44 = vld [vmem:[%s7706_s0 + $0x750] sm:$0xff]  ;;  %v472_v36 = vld [vmem:[%s7706_s0 + $0x758] sm:$0xff] }
 0x296   : > { %v3271_v37 = vmax.f32 %v2959_v63, 0.0  ;;  %v3272_v34 = vmax.f32 %v2960_v26, 0.0  ;;  %v1591_v2 = vmul.f32 %v8006_v15, %v343_v19  ;;  %v1592_v50 = vmul.f32 %v8006_v15, %v344_v21  ;;  %v469_v63 = vld [vmem:[%s7706_s0 + $0x740] sm:$0xff]  ;;  %v470_v26 = vld [vmem:[%s7706_s0 + $0x748] sm:$0xff] }
 0x297   : > { %v3269_v7 = vmax.f32 %v2957_v11, 0.0  ;;  %v3270_v31 = vmax.f32 %v2958_v29, 0.0  ;;  %3995 = vmatprep.subr.bf16.mxu1 %v3466_v10  ;;  %v2211_v38 = vpop.permute.xlu1 %2210  ;;  %v1589_v61 = vmul.f32 %v8007_v43, %v341_v60  ;;  %v1590_v42 = vmul.f32 %v8007_v43, %v342_v41 }
 0x298   : > { %v2835_v39 = vadd.f32 %v2211_v38, %v1587_v23  ;;  %v2836_v48 = vadd.f32 %v2211_v38, %v1588_v12  ;;  %v2206_v5 = vpop.permute.xlu0 %2205  ;;  %3996 = vmatpush1.bf16.msra.mxu1 %v3465_v0  ;;  %v8008_v12 = vld [vmem:[#allocation80_spill] sm:$0xff] }
 0x299   : > { %v3529_v32 = vpack.c.bf16 %v3271_v37, %v3269_v7  ;;  %v2833_v14 = vadd.f32 %v2206_v5, %v1585_v55  ;;  %v2834_v6 = vadd.f32 %v2206_v5, %v1586_v45  ;;  %v3530_v40 = vpack.c.bf16 %v3272_v34, %v3270_v31  ;;  %v347_v45 = vld [vmem:[%s7706_s0 + $0x370] sm:$0xff] }
 0x29a   : > { %v3147_v62 = vmax.f32 %v2835_v39, 0.0  ;;  %v3148_v57 = vmax.f32 %v2836_v48, 0.0  ;;  %v1719_v37 = vmul.f32 %v8008_v12, %v471_v44  ;;  %v1720_v34 = vmul.f32 %v8008_v12, %v472_v36  ;;  %v345_v39 = vld [vmem:[%s7706_s0 + $0x360] sm:$0xff]  ;;  %v346_v48 = vld [vmem:[%s7706_s0 + $0x368] sm:$0xff]  ;;  %v352_v44 = vld [vmem:[%s7706_s0 + $0x398] sm:$0xff] }
 0x29b   : > { %v3145_v59 = vmax.f32 %v2833_v14, 0.0  ;;  %v3146_v25 = vmax.f32 %v2834_v6, 0.0  ;;  %4181 = vmatprep.subr.bf16.mxu0 %v3530_v40  ;;  %v2531_v49 = vpop.permute.xlu1 %2530  ;;  %v1717_v7 = vmul.f32 %v8009_v56, %v469_v63  ;;  %v1718_v31 = vmul.f32 %v8009_v56, %v470_v26  ;;  %v8013_v36 = vld [vmem:[#allocation83_spill] sm:$0xff]  ;;  %v8015_v56 = vld [vmem:[#allocation28_spill] sm:$0xff] }
 0x29c   : > { %v2963_v17 = vadd.f32 %v2531_v49, %v1715_v18  ;;  %v2964_v27 = vadd.f32 %v2531_v49, %v1716_v8  ;;  %v2526_v53 = vpop.permute.xlu0 %2525  ;;  %4182 = vmatpush1.bf16.msra.mxu0 %v3529_v32  ;;  %v8010_v8 = vld [vmem:[#allocation25_spill] sm:$0xff] }
 0x29d   : > { %v3467_v54 = vpack.c.bf16 %v3147_v62, %v3145_v59  ;;  %v2961_v1 = vadd.f32 %v2526_v53, %v1713_v20  ;;  %v2962_v51 = vadd.f32 %v2526_v53, %v1714_v4  ;;  %v3468_v28 = vpack.c.bf16 %v3148_v57, %v3146_v25  ;;  %v475_v59 = vld [vmem:[%s7706_s0 + $0x770] sm:$0xff]  ;;  %v476_v25 = vld [vmem:[%s7706_s0 + $0x778] sm:$0xff] }
 0x29e   : > { %v3275_v52 = vmax.f32 %v2963_v17, 0.0  ;;  %v3276_v35 = vmax.f32 %v2964_v27, 0.0  ;;  %v1595_v62 = vmul.f32 %v8010_v8, %v347_v45  ;;  %v1596_v57 = vmul.f32 %v8010_v8, %v348_v46  ;;  %v473_v17 = vld [vmem:[%s7706_s0 + $0x760] sm:$0xff]  ;;  %v474_v27 = vld [vmem:[%s7706_s0 + $0x768] sm:$0xff] }
 0x29f   : > { %v3273_v16 = vmax.f32 %v2961_v1, 0.0  ;;  %v3274_v58 = vmax.f32 %v2962_v51, 0.0  ;;  %3997 = vmatprep.subr.bf16.mxu1 %v3468_v28  ;;  %v2221_v9 = vpop.permute.xlu1 %2220  ;;  %v1593_v20 = vmul.f32 %v8011_v13, %v345_v39  ;;  %v1594_v4 = vmul.f32 %v8011_v13, %v346_v48 }
 0x2a0   : > { %v2839_v22 = vadd.f32 %v2221_v9, %v1591_v2  ;;  %v2840_v0 = vadd.f32 %v2221_v9, %v1592_v50  ;;  %v2216_v11 = vpop.permute.xlu0 %2215  ;;  %3998 = vmatpush1.bf16.msra.mxu1 %v3467_v54  ;;  %v8012_v50 = vld [vmem:[#allocation82_spill] sm:$0xff] }
 0x2a1   : > { %v3531_v29 = vpack.c.bf16 %v3275_v52, %v3273_v16  ;;  %v2837_v10 = vadd.f32 %v2216_v11, %v1589_v61  ;;  %v2838_v33 = vadd.f32 %v2216_v11, %v1590_v42  ;;  %v3532_v23 = vpack.c.bf16 %v3276_v35, %v3274_v58  ;;  %v351_v42 = vld [vmem:[%s7706_s0 + $0x390] sm:$0xff] }
 0x2a2   : > { %v3151_v24 = vmax.f32 %v2839_v22, 0.0  ;;  %v3152_v55 = vmax.f32 %v2840_v0, 0.0  ;;  %v1723_v52 = vmul.f32 %v8012_v50, %v475_v59  ;;  %v1724_v35 = vmul.f32 %v8012_v50, %v476_v25  ;;  %v349_v22 = vld [vmem:[%s7706_s0 + $0x380] sm:$0xff]  ;;  %v350_v0 = vld [vmem:[%s7706_s0 + $0x388] sm:$0xff]  ;;  %v356_v59 = vld [vmem:[%s7706_s0 + $0x3b8] sm:$0xff] }
 0x2a3   : > { %v3149_v38 = vmax.f32 %v2837_v10, 0.0  ;;  %v3150_v47 = vmax.f32 %v2838_v33, 0.0  ;;  %4183 = vmatprep.subr.bf16.mxu0 %v3532_v23  ;;  %v2541_v30 = vpop.permute.xlu1 %2540  ;;  %v1721_v16 = vmul.f32 %v8013_v36, %v473_v17  ;;  %v1722_v58 = vmul.f32 %v8013_v36, %v474_v27  ;;  %v8017_v25 = vld [vmem:[#allocation85_spill] sm:$0xff]  ;;  %v8019_v36 = vld [vmem:[#allocation30_spill] sm:$0xff] }
 0x2a4   : > { %v2967_v5 = vadd.f32 %v2541_v30, %v1719_v37  ;;  %v2968_v32 = vadd.f32 %v2541_v30, %v1720_v34  ;;  %v2536_v14 = vpop.permute.xlu0 %2535  ;;  %4184 = vmatpush1.bf16.msra.mxu0 %v3531_v29  ;;  %v8014_v34 = vld [vmem:[#allocation27_spill] sm:$0xff] }
 0x2a5   : > { %v3469_v6 = vpack.c.bf16 %v3151_v24, %v3149_v38  ;;  %v2965_v40 = vadd.f32 %v2536_v14, %v1717_v7  ;;  %v2966_v3 = vadd.f32 %v2536_v14, %v1718_v31  ;;  %v3470_v18 = vpack.c.bf16 %v3152_v55, %v3150_v47  ;;  %v479_v38 = vld [vmem:[%s7706_s0 + $0x790] sm:$0xff]  ;;  %v480_v47 = vld [vmem:[%s7706_s0 + $0x798] sm:$0xff] }
 0x2a6   : > { %v3279_v19 = vmax.f32 %v2967_v5, 0.0  ;;  %v3280_v21 = vmax.f32 %v2968_v32, 0.0  ;;  %v1599_v24 = vmul.f32 %v8014_v34, %v351_v42  ;;  %v1600_v55 = vmul.f32 %v8014_v34, %v352_v44  ;;  %v477_v5 = vld [vmem:[%s7706_s0 + $0x780] sm:$0xff]  ;;  %v478_v32 = vld [vmem:[%s7706_s0 + $0x788] sm:$0xff] }
 0x2a7   : > { %v3277_v49 = vmax.f32 %v2965_v40, 0.0  ;;  %v3278_v60 = vmax.f32 %v2966_v3, 0.0  ;;  %3999 = vmatprep.subr.bf16.mxu1 %v3470_v18  ;;  %v2231_v41 = vpop.permute.xlu1 %2230  ;;  %v1597_v7 = vmul.f32 %v8015_v56, %v349_v22  ;;  %v1598_v31 = vmul.f32 %v8015_v56, %v350_v0 }
 0x2a8   : > { %v2843_v53 = vadd.f32 %v2231_v41, %v1595_v62  ;;  %v2844_v54 = vadd.f32 %v2231_v41, %v1596_v57  ;;  %v2226_v1 = vpop.permute.xlu0 %2225  ;;  %4000 = vmatpush1.bf16.msra.mxu1 %v3469_v6  ;;  %v8016_v57 = vld [vmem:[#allocation84_spill] sm:$0xff] }
 0x2a9   : > { %v3533_v51 = vpack.c.bf16 %v3279_v19, %v3277_v49  ;;  %v2841_v28 = vadd.f32 %v2226_v1, %v1593_v20  ;;  %v2842_v15 = vadd.f32 %v2226_v1, %v1594_v4  ;;  %v3534_v2 = vpack.c.bf16 %v3280_v21, %v3278_v60  ;;  %v355_v4 = vld [vmem:[%s7706_s0 + $0x3b0] sm:$0xff] }
 0x2aa   : > { %v3155_v43 = vmax.f32 %v2843_v53, 0.0  ;;  %v3156_v61 = vmax.f32 %v2844_v54, 0.0  ;;  %v1727_v19 = vmul.f32 %v8016_v57, %v479_v38  ;;  %v1728_v21 = vmul.f32 %v8016_v57, %v480_v47  ;;  %v353_v53 = vld [vmem:[%s7706_s0 + $0x3a0] sm:$0xff]  ;;  %v354_v54 = vld [vmem:[%s7706_s0 + $0x3a8] sm:$0xff]  ;;  %v360_v38 = vld [vmem:[%s7706_s0 + $0x3d8] sm:$0xff] }
 0x2ab   : > { %v3153_v9 = vmax.f32 %v2841_v28, 0.0  ;;  %v3154_v63 = vmax.f32 %v2842_v15, 0.0  ;;  %4185 = vmatprep.subr.bf16.mxu0 %v3534_v2  ;;  %v2551_v26 = vpop.permute.xlu1 %2550  ;;  %v1725_v49 = vmul.f32 %v8017_v25, %v477_v5  ;;  %v1726_v60 = vmul.f32 %v8017_v25, %v478_v32  ;;  %v8021_v47 = vld [vmem:[#allocation87_spill] sm:$0xff]  ;;  %v8023_v25 = vld [vmem:[#allocation32_spill] sm:$0xff] }
 0x2ac   : > { %v2971_v11 = vadd.f32 %v2551_v26, %v1723_v52  ;;  %v2972_v29 = vadd.f32 %v2551_v26, %v1724_v35  ;;  %v2546_v10 = vpop.permute.xlu0 %2545  ;;  %4186 = vmatpush1.bf16.msra.mxu0 %v3533_v51  ;;  %v8018_v35 = vld [vmem:[#allocation29_spill] sm:$0xff] }
 0x2ad   : > { %v3471_v33 = vpack.c.bf16 %v3155_v43, %v3153_v9  ;;  %v2969_v23 = vadd.f32 %v2546_v10, %v1721_v16  ;;  %v2970_v12 = vadd.f32 %v2546_v10, %v1722_v58  ;;  %v3472_v37 = vpack.c.bf16 %v3156_v61, %v3154_v63  ;;  %v483_v9 = vld [vmem:[%s7706_s0 + $0x7b0] sm:$0xff]  ;;  %v484_v63 = vld [vmem:[%s7706_s0 + $0x7b8] sm:$0xff] }
 0x2ae   : > { %v3283_v45 = vmax.f32 %v2971_v11, 0.0  ;;  %v3284_v46 = vmax.f32 %v2972_v29, 0.0  ;;  %v1603_v43 = vmul.f32 %v8018_v35, %v355_v4  ;;  %v1604_v61 = vmul.f32 %v8018_v35, %v356_v59  ;;  %v481_v11 = vld [vmem:[%s7706_s0 + $0x7a0] sm:$0xff]  ;;  %v482_v29 = vld [vmem:[%s7706_s0 + $0x7a8] sm:$0xff] }
 0x2af   : > { %v3281_v30 = vmax.f32 %v2969_v23, 0.0  ;;  %v3282_v39 = vmax.f32 %v2970_v12, 0.0  ;;  %4001 = vmatprep.subr.bf16.mxu1 %v3472_v37  ;;  %v2241_v48 = vpop.permute.xlu1 %2240  ;;  %v1601_v16 = vmul.f32 %v8019_v36, %v353_v53  ;;  %v1602_v58 = vmul.f32 %v8019_v36, %v354_v54 }
 0x2b0   : > { %v2847_v14 = vadd.f32 %v2241_v48, %v1599_v24  ;;  %v2848_v6 = vadd.f32 %v2241_v48, %v1600_v55  ;;  %v2236_v40 = vpop.permute.xlu0 %2235  ;;  %4002 = vmatpush1.bf16.msra.mxu1 %v3471_v33  ;;  %v8020_v55 = vld [vmem:[#allocation86_spill] sm:$0xff] }
 0x2b1   : > { %v3535_v3 = vpack.c.bf16 %v3283_v45, %v3281_v30  ;;  %v2845_v18 = vadd.f32 %v2236_v40, %v1597_v7  ;;  %v2846_v8 = vadd.f32 %v2236_v40, %v1598_v31  ;;  %v3536_v62 = vpack.c.bf16 %v3284_v46, %v3282_v39  ;;  %v359_v31 = vld [vmem:[%s7706_s0 + $0x3d0] sm:$0xff] }
 0x2b2   : > { %v3159_v13 = vmax.f32 %v2847_v14, 0.0  ;;  %v3160_v20 = vmax.f32 %v2848_v6, 0.0  ;;  %v1731_v45 = vmul.f32 %v8020_v55, %v483_v9  ;;  %v1732_v46 = vmul.f32 %v8020_v55, %v484_v63  ;;  %v357_v14 = vld [vmem:[%s7706_s0 + $0x3c0] sm:$0xff]  ;;  %v358_v6 = vld [vmem:[%s7706_s0 + $0x3c8] sm:$0xff]  ;;  %v364_v9 = vld [vmem:[%s7706_s0 + $0x3f8] sm:$0xff] }
 0x2b3   : > { %v3157_v41 = vmax.f32 %v2845_v18, 0.0  ;;  %v3158_v17 = vmax.f32 %v2846_v8, 0.0  ;;  %4187 = vmatprep.subr.bf16.mxu0 %v3536_v62  ;;  %v2561_v27 = vpop.permute.xlu1 %2560  ;;  %v1729_v30 = vmul.f32 %v8021_v47, %v481_v11  ;;  %v1730_v39 = vmul.f32 %v8021_v47, %v482_v29  ;;  %v8025_v63 = vld [vmem:[#allocation89_spill] sm:$0xff]  ;;  %v8027_v47 = vld [vmem:[#allocation34_spill] sm:$0xff] }
 0x2b4   : > { %v2975_v1 = vadd.f32 %v2561_v27, %v1727_v19  ;;  %v2976_v51 = vadd.f32 %v2561_v27, %v1728_v21  ;;  %v2556_v28 = vpop.permute.xlu0 %2555  ;;  %4188 = vmatpush1.bf16.msra.mxu0 %v3535_v3  ;;  %v8022_v21 = vld [vmem:[#allocation31_spill] sm:$0xff] }
 0x2b5   : > { %v3473_v15 = vpack.c.bf16 %v3159_v13, %v3157_v41  ;;  %v2973_v2 = vadd.f32 %v2556_v28, %v1725_v49  ;;  %v2974_v50 = vadd.f32 %v2556_v28, %v1726_v60  ;;  %v3474_v52 = vpack.c.bf16 %v3160_v20, %v3158_v17  ;;  %v487_v41 = vld [vmem:[%s7706_s0 + $0x7d0] sm:$0xff]  ;;  %v488_v17 = vld [vmem:[%s7706_s0 + $0x7d8] sm:$0xff] }
 0x2b6   : > { %v3287_v42 = vmax.f32 %v2975_v1, 0.0  ;;  %v3288_v44 = vmax.f32 %v2976_v51, 0.0  ;;  %v1607_v13 = vmul.f32 %v8022_v21, %v359_v31  ;;  %v1608_v20 = vmul.f32 %v8022_v21, %v360_v38  ;;  %v485_v1 = vld [vmem:[%s7706_s0 + $0x7c0] sm:$0xff]  ;;  %v486_v51 = vld [vmem:[%s7706_s0 + $0x7c8] sm:$0xff] }
 0x2b7   : > { %v3285_v26 = vmax.f32 %v2973_v2, 0.0  ;;  %v3286_v22 = vmax.f32 %v2974_v50, 0.0  ;;  %4003 = vmatprep.subr.bf16.mxu1 %v3474_v52  ;;  %v2251_v0 = vpop.permute.xlu1 %2250  ;;  %v1605_v49 = vmul.f32 %v8023_v25, %v357_v14  ;;  %v1606_v60 = vmul.f32 %v8023_v25, %v358_v6 }
 0x2b8   : > { %v2851_v10 = vadd.f32 %v2251_v0, %v1603_v43  ;;  %v2852_v33 = vadd.f32 %v2251_v0, %v1604_v61  ;;  %v2246_v23 = vpop.permute.xlu0 %2245  ;;  %4004 = vmatpush1.bf16.msra.mxu1 %v3473_v15  ;;  %v8024_v61 = vld [vmem:[#allocation88_spill] sm:$0xff] }
 0x2b9   : > { %v3537_v12 = vpack.c.bf16 %v3287_v42, %v3285_v26  ;;  %v2849_v37 = vadd.f32 %v2246_v23, %v1601_v16  ;;  %v2850_v34 = vadd.f32 %v2246_v23, %v1602_v58  ;;  %v3538_v24 = vpack.c.bf16 %v3288_v44, %v3286_v22  ;;  %v363_v58 = vld [vmem:[%s7706_s0 + $0x3f0] sm:$0xff] }
 0x2ba   : > { %v3163_v56 = vmax.f32 %v2851_v10, 0.0  ;;  %v3164_v7 = vmax.f32 %v2852_v33, 0.0  ;;  %v1735_v42 = vmul.f32 %v8024_v61, %v487_v41  ;;  %v1736_v44 = vmul.f32 %v8024_v61, %v488_v17  ;;  %v361_v10 = vld [vmem:[%s7706_s0 + $0x3e0] sm:$0xff]  ;;  %v362_v33 = vld [vmem:[%s7706_s0 + $0x3e8] sm:$0xff] }
 0x2bb   : > { %v3161_v48 = vmax.f32 %v2849_v37, 0.0  ;;  %v3162_v5 = vmax.f32 %v2850_v34, 0.0  ;;  %4189 = vmatprep.subr.bf16.mxu0 %v3538_v24  ;;  %v2571_v32 = vpop.permute.xlu1 %2570  ;;  %v1733_v26 = vmul.f32 %v8025_v63, %v485_v1  ;;  %v1734_v22 = vmul.f32 %v8025_v63, %v486_v51  ;;  %v8031_v63 = vld [vmem:[#allocation93_spill] sm:$0xff] }
 0x2bc   : > { %v2979_v40 = vadd.f32 %v2571_v32, %v1731_v45  ;;  %v2980_v3 = vadd.f32 %v2571_v32, %v1732_v46  ;;  %v2566_v18 = vpop.permute.xlu0 %2565  ;;  %4190 = vmatpush1.bf16.msra.mxu0 %v3537_v12  ;;  %v8026_v46 = vld [vmem:[#allocation33_spill] sm:$0xff] }
 0x2bd   : > { %v3475_v8 = vpack.c.bf16 %v3163_v56, %v3161_v48  ;;  %v2977_v62 = vadd.f32 %v2566_v18, %v1729_v30  ;;  %v2978_v57 = vadd.f32 %v2566_v18, %v1730_v39  ;;  %v3476_v19 = vpack.c.bf16 %v3164_v7, %v3162_v5  ;;  %v491_v48 = vld [vmem:[%s7706_s0 + $0x7f0] sm:$0xff]  ;;  %v492_v5 = vld [vmem:[%s7706_s0 + $0x7f8] sm:$0xff] }
 0x2be   : > { %v3291_v4 = vmax.f32 %v2979_v40, 0.0  ;;  %v3292_v59 = vmax.f32 %v2980_v3, 0.0  ;;  %v1611_v56 = vmul.f32 %v8026_v46, %v363_v58  ;;  %v1612_v7 = vmul.f32 %v8026_v46, %v364_v9  ;;  %v489_v40 = vld [vmem:[%s7706_s0 + $0x7e0] sm:$0xff]  ;;  %v490_v3 = vld [vmem:[%s7706_s0 + $0x7e8] sm:$0xff] }
 0x2bf   : > { %v3289_v27 = vmax.f32 %v2977_v62, 0.0  ;;  %v3290_v53 = vmax.f32 %v2978_v57, 0.0  ;;  %4005 = vmatprep.subr.bf16.mxu1 %v3476_v19  ;;  %v2261_v54 = vpop.permute.xlu1 %2260  ;;  %v1609_v30 = vmul.f32 %v8027_v47, %v361_v10  ;;  %v1610_v39 = vmul.f32 %v8027_v47, %v362_v33 }
 0x2c0   : > { %v2855_v28 = vadd.f32 %v2261_v54, %v1607_v13  ;;  %v2856_v15 = vadd.f32 %v2261_v54, %v1608_v20  ;;  %v2256_v2 = vpop.permute.xlu0 %2255  ;;  %4006 = vmatpush1.bf16.msra.mxu1 %v3475_v8  ;;  %v8028_v20 = vld [vmem:[#allocation90_spill] sm:$0xff] }
 0x2c1   : > { %v3539_v50 = vpack.c.bf16 %v3291_v4, %v3289_v27  ;;  %v2853_v52 = vadd.f32 %v2256_v2, %v1605_v49  ;;  %v2854_v35 = vadd.f32 %v2256_v2, %v1606_v60  ;;  %v3540_v43 = vpack.c.bf16 %v3292_v59, %v3290_v53  ;;  %v8029_v60 = vld [vmem:[#allocation91_spill] sm:$0xff]  ;;  %v496_v53 = vld [vmem:[%s7706_s0 + $0x818] sm:$0xff] }
 0x2c2   : > { %v3167_v36 = vmax.f32 %v2855_v28, 0.0  ;;  %v3168_v16 = vmax.f32 %v2856_v15, 0.0  ;;  %v1739_v4 = vmul.f32 %v8028_v20, %v491_v48  ;;  %v1740_v59 = vmul.f32 %v8028_v20, %v492_v5  ;;  %v495_v27 = vld [vmem:[%s7706_s0 + $0x810] sm:$0xff]  ;;  %v493_v28 = vld [vmem:[%s7706_s0 + $0x800] sm:$0xff]  ;;  %v494_v15 = vld [vmem:[%s7706_s0 + $0x808] sm:$0xff] }
 0x2c3   : > { %v3165_v0 = vmax.f32 %v2853_v52, 0.0  ;;  %v3166_v11 = vmax.f32 %v2854_v35, 0.0  ;;  %4191 = vmatprep.subr.bf16.mxu0 %v3540_v43  ;;  %v2581_v29 = vpop.permute.xlu1 %2580  ;;  %v1737_v41 = vmul.f32 %v8029_v60, %v489_v40  ;;  %v1738_v17 = vmul.f32 %v8029_v60, %v490_v3  ;;  %v8033_v5 = vld [vmem:[#allocation95_spill] sm:$0xff]  ;;  %v504_v40 = vld [vmem:[%s7706_s0 + $0x858] sm:$0xff] }
 0x2c4   : > { %v2983_v23 = vadd.f32 %v2581_v29, %v1735_v42  ;;  %v2984_v12 = vadd.f32 %v2581_v29, %v1736_v44  ;;  %v2576_v37 = vpop.permute.xlu0 %2575  ;;  %4192 = vmatpush1.bf16.msra.mxu0 %v3539_v50  ;;  %v8030_v44 = vld [vmem:[#allocation92_spill] sm:$0xff] }
 0x2c5   : > { %v3477_v34 = vpack.c.bf16 %v3167_v36, %v3165_v0  ;;  %v2981_v24 = vadd.f32 %v2576_v37, %v1733_v26  ;;  %v2982_v55 = vadd.f32 %v2576_v37, %v1734_v22  ;;  %v3478_v45 = vpack.c.bf16 %v3168_v16, %v3166_v11  ;;  %v499_v0 = vld [vmem:[%s7706_s0 + $0x830] sm:$0xff]  ;;  %v500_v11 = vld [vmem:[%s7706_s0 + $0x838] sm:$0xff]  ;;  %v498_v37 = vld [vmem:[%s7706_s0 + $0x828] sm:$0xff] }
 0x2c6   : > { %v3295_v31 = vmax.f32 %v2983_v23, 0.0  ;;  %v3296_v38 = vmax.f32 %v2984_v12, 0.0  ;;  %v1743_v36 = vmul.f32 %v8030_v44, %v495_v27  ;;  %v1744_v16 = vmul.f32 %v8030_v44, %v496_v53  ;;  %v4783_v23 = vld [vmem:[%s5840_s9 + $0x8] ss:$40 sps:$4 sm:$0xff]   ;;  %v497_v12 = vld [vmem:[%s7706_s0 + $0x820] sm:$0xff]  ;;  %v8034_v60 = vld [vmem:[#allocation96_spill] sm:$0xff] }
 0x2c7   : > { %v3293_v32 = vmax.f32 %v2981_v24, 0.0  ;;  %v3294_v14 = vmax.f32 %v2982_v55, 0.0  ;;  %4007 = vmatprep.subr.bf16.mxu1 %v3478_v45  ;;  %v2271_v6 = vpop.permute.xlu1 %2270  ;;  %v1741_v26 = vmul.f32 %v8031_v63, %v493_v28  ;;  %v1742_v22 = vmul.f32 %v8031_v63, %v494_v15  ;;  %v4789_v45 = vld [vmem:[%s5840_s9 + $0x5c] ss:$40 sps:$4 sm:$0xff]   ;;  %v507_v15 = vld [vmem:[%s7706_s0 + $0x870] sm:$0xff] }
 0x2c8   : > { %v2859_v18 = vadd.f32 %v2271_v6, %v1611_v56  ;;  %v2860_v8 = vadd.f32 %v2271_v6, %v1612_v7  ;;  %v2266_v62 = vpop.permute.xlu0 %2265  ;;  %4008 = vmatpush1.bf16.msra.mxu1 %v3477_v34  ;;  %v503_v6 = vld [vmem:[%s7706_s0 + $0x850] sm:$0xff] }
 0x2c9   : > { %v3541_v57 = vpack.c.bf16 %v3295_v31, %v3293_v32  ;;  %v2857_v19 = vadd.f32 %v2266_v62, %v1609_v30  ;;  %v2858_v21 = vadd.f32 %v2266_v62, %v1610_v39  ;;  %v3542_v13 = vpack.c.bf16 %v3296_v38, %v3294_v14  ;;  %v8032_v38 = vld [vmem:[#allocation94_spill] sm:$0xff]  ;;  %v4786_v62 = vld [vmem:[%s5840_s9 + $0x18] ss:$40 sps:$4 sm:$0xff]  }
 0x2ca   : > { %v3171_v25 = vmax.f32 %v2859_v18, 0.0  ;;  %v3172_v49 = vmax.f32 %v2860_v8, 0.0  ;;  %v1747_v47 = vmul.f32 %v8032_v38, %v499_v0  ;;  %v1748_v30 = vmul.f32 %v8032_v38, %v500_v11 }
 0x2cb   : > { %v3169_v54 = vmax.f32 %v2857_v19, 0.0  ;;  %v3170_v1 = vmax.f32 %v2858_v21, 0.0  ;;  %4193 = vmatprep.subr.bf16.mxu0 %v3542_v13  ;;  %v2591_v51 = vpop.permute.xlu1 %2590  ;;  %v1745_v32 = vmul.f32 %v8033_v5, %v497_v12  ;;  %v1746_v14 = vmul.f32 %v8033_v5, %v498_v37  ;;  %v502_v19 = vld [vmem:[%s7706_s0 + $0x848] sm:$0xff] }
 0x2cc   : > { %v2987_v2 = vadd.f32 %v2591_v51, %v1739_v4  ;;  %v2988_v50 = vadd.f32 %v2591_v51, %v1740_v59  ;;  %v2586_v52 = vpop.permute.xlu0 %2585  ;;  %4194 = vmatpush1.bf16.msra.mxu0 %v3541_v57  ;;  %v501_v57 = vld [vmem:[%s7706_s0 + $0x840] sm:$0xff] }
 0x2cd   : > { %v3479_v35 = vpack.c.bf16 %v3171_v25, %v3169_v54  ;;  %v2985_v43 = vadd.f32 %v2586_v52, %v1737_v41  ;;  %v2986_v61 = vadd.f32 %v2586_v52, %v1738_v17  ;;  %v3480_v42 = vpack.c.bf16 %v3172_v49, %v3170_v1  ;;  %v4792_v54 = vld [vmem:[%s5840_s9 + $0x6c] ss:$40 sps:$4 sm:$0xff]   ;;  %v8035_v1 = vld [vmem:[#allocation97_spill] sm:$0xff] }
 0x2ce   : > { %v3299_v58 = vmax.f32 %v2987_v2, 0.0  ;;  %v3300_v9 = vmax.f32 %v2988_v50, 0.0  ;;  %v1751_v41 = vmul.f32 %v8034_v60, %v503_v6  ;;  %v1752_v17 = vmul.f32 %v8034_v60, %v504_v40  ;;  %v508_v2 = vld [vmem:[%s7706_s0 + $0x878] sm:$0xff]  ;;  %v514_v60 = vld [vmem:[%s7706_s0 + $0x8a8] sm:$0xff] }
 0x2cf   : > { %v3297_v29 = vmax.f32 %v2985_v43, 0.0  ;;  %v3298_v10 = vmax.f32 %v2986_v61, 0.0  ;;  %4009 = vmatprep.subr.bf16.mxu1 %v3480_v42  ;;  %v2601_v33 = vpop.permute.xlu1 %2600  ;;  %v1749_v51 = vmul.f32 %v8035_v1, %v501_v57  ;;  %v1750_v28 = vmul.f32 %v8035_v1, %v502_v19  ;;  %v4791_v43 = vld [vmem:[%s5840_s9 + $0x58] ss:$40 sps:$4 sm:$0xff]   ;;  %v506_v42 = vld [vmem:[%s7706_s0 + $0x868] sm:$0xff] }
 0x2d0   : > { %v2991_v34 = vadd.f32 %v2601_v33, %v1743_v36  ;;  %v2992_v24 = vadd.f32 %v2601_v33, %v1744_v16  ;;  %v2596_v55 = vpop.permute.xlu0 %2595  ;;  %4010 = vmatpush1.bf16.msra.mxu1 %v3479_v35  ;;  %v505_v61 = vld [vmem:[%s7706_s0 + $0x860] sm:$0xff]  ;;  %v4795_v33 = vld [vmem:[%s5840_s9 + $0xac] ss:$40 sps:$4 sm:$0xff]  }
 0x2d1   : > { %v3543_v46 = vpack.c.bf16 %v3299_v58, %v3297_v29  ;;  %v2989_v56 = vadd.f32 %v2596_v55, %v1741_v26  ;;  %v2990_v7 = vadd.f32 %v2596_v55, %v1742_v22  ;;  %v3544_v31 = vpack.c.bf16 %v3300_v9, %v3298_v10  ;;  %v8036_v22 = vld [vmem:[#allocation98_spill] sm:$0xff] }
 0x2d2   : > { %v3303_v39 = vmax.f32 %v2991_v34, 0.0  ;;  %v3304_v48 = vmax.f32 %v2992_v24, 0.0  ;;  %v1755_v0 = vmul.f32 %v8036_v22, %v507_v15  ;;  %v1756_v11 = vmul.f32 %v8036_v22, %v508_v2  ;;  %v511_v34 = vld [vmem:[%s7706_s0 + $0x890] sm:$0xff]  ;;  %v512_v24 = vld [vmem:[%s7706_s0 + $0x898] sm:$0xff]  ;;  %v518_v22 = vld [vmem:[%s7706_s0 + $0x8c8] sm:$0xff] }
 0x2d3   : > { %v3301_v3 = vmax.f32 %v2989_v56, 0.0  ;;  %v3302_v18 = vmax.f32 %v2990_v7, 0.0  ;;  %4012 = vmatmul.mubr.bf16.vlgmr.msra.gmra.mrb[0].mxu1 %v4783_v23  ;;  %4195 = vmatprep.subr.bf16.mxu0 %v3544_v31  ;;  %v2611_v8 = vpop.permute.xlu1 %2610  ;;  %v8037_v23 = vld [vmem:[#allocation99_spill] sm:$0xff]  ;;  %v509_v7 = vld [vmem:[%s7706_s0 + $0x880] sm:$0xff]  ;;  %v510_v31 = vld [vmem:[%s7706_s0 + $0x888] sm:$0xff] }
 0x2d4   : > { %v2995_v21 = vadd.f32 %v2611_v8, %v1747_v47  ;;  %v2996_v13 = vadd.f32 %v2611_v8, %v1748_v30  ;;  %v2606_v20 = vpop.permute.xlu0 %2605  ;;  %4196 = vmatpush1.bf16.msra.mxu0 %v3543_v46  ;;  %4021 = vmatprep.mubr.bf16.mxu1 %v4789_v45  ;;  %v1753_v12 = vmul.f32 %v8037_v23, %v505_v61  ;;  %v4794_v56 = vld [vmem:[%s5840_s9 + $0x68] ss:$40 sps:$4 sm:$0xff]   ;;  %v4798_v8 = vld [vmem:[%s5840_s9 + $0xbc] ss:$40 sps:$4 sm:$0xff]  }
 0x2d5   : > { %v3545_v4 = vpack.c.bf16 %v3303_v39, %v3301_v3  ;;  %v2993_v59 = vadd.f32 %v2606_v20, %v1745_v32  ;;  %v2994_v25 = vadd.f32 %v2606_v20, %v1746_v14  ;;  %v3546_v49 = vpack.c.bf16 %v3304_v48, %v3302_v18  ;;  %v8038_v14 = vld [vmem:[#allocation100_spill] sm:$0xff] }
 0x2d6   : > { %v3307_v27 = vmax.f32 %v2995_v21, 0.0  ;;  %v3308_v53 = vmax.f32 %v2996_v13, 0.0  ;;  %v1754_v37 = vmul.f32 %v8037_v23, %v506_v42  ;;  %v1759_v6 = vmul.f32 %v8038_v14, %v511_v34  ;;  %v515_v21 = vld [vmem:[%s7706_s0 + $0x8b0] sm:$0xff]  ;;  %v516_v13 = vld [vmem:[%s7706_s0 + $0x8b8] sm:$0xff] }
 0x2d7   : > { %v3305_v50 = vmax.f32 %v2993_v59, 0.0  ;;  %v3306_v52 = vmax.f32 %v2994_v25, 0.0  ;;  %4198 = vmatmul.mubr.bf16.vlgmr.msra.gmra.mrb[0].mxu0 %v4786_v62  ;;  %4258 = vmatprep.subr.bf16.mxu0 %v3546_v49  ;;  %v2621_v35 = vpop.permute.xlu1 %2620  ;;  %v1760_v40 = vmul.f32 %v8038_v14, %v512_v24  ;;  %v8039_v62 = vld [vmem:[#allocation101_spill] sm:$0xff]  ;;  %v4797_v25 = vld [vmem:[%s5840_s9 + $0xa8] ss:$40 sps:$4 sm:$0xff]  }
 0x2d8   : > { %4561 = vmatprep.subr.bf16.mxu1 %v3546_v49  ;;  %v2999_v44 = vadd.f32 %v2621_v35, %v1751_v41  ;;  %v3000_v36 = vadd.f32 %v2621_v35, %v1752_v17  ;;  %v2616_v16 = vpop.permute.xlu0 %2615  ;;  %4259 = vmatpush1.bf16.msra.mxu0 %v3545_v4  ;;  %v1757_v57 = vmul.f32 %v8039_v62, %v509_v7  ;;  %v513_v49 = vld [vmem:[%s7706_s0 + $0x8a0] sm:$0xff]  ;;  %v522_v14 = vld [vmem:[%s7706_s0 + $0x8e8] sm:$0xff] }
 0x2d9   : > { %v3547_v58 = vpack.c.bf16 %v3307_v27, %v3305_v50  ;;  %v2997_v9 = vadd.f32 %v2616_v16, %v1749_v51  ;;  %v2998_v63 = vadd.f32 %v2616_v16, %v1750_v28  ;;  %4575 = vmatpush1.bf16.msra.mxu1 %v3545_v4  ;;  %v3548_v26 = vpack.c.bf16 %v3308_v53, %v3306_v52  ;;  %v8040_v28 = vld [vmem:[#allocation102_spill] sm:$0xff]  ;;  %v4801_v35 = vld [vmem:[%s5840_s9 + $0xfc] ss:$40 sps:$4 sm:$0xff]  }
 0x2da   : > { %v3311_v29 = vmax.f32 %v2999_v44, 0.0  ;;  %v3312_v10 = vmax.f32 %v3000_v36, 0.0  ;;  %4207 = vmatprep.mubr.bf16.mxu0 %v4792_v54  ;;  %v1758_v19 = vmul.f32 %v8039_v62, %v510_v31  ;;  %v1763_v15 = vmul.f32 %v8040_v28, %v515_v21  ;;  %v519_v44 = vld [vmem:[%s7706_s0 + $0x8d0] sm:$0xff]  ;;  %v520_v36 = vld [vmem:[%s7706_s0 + $0x8d8] sm:$0xff] }
 0x2db   : > { %v3309_v55 = vmax.f32 %v2997_v9, 0.0  ;;  %v3310_v45 = vmax.f32 %v2998_v63, 0.0  ;;  %4022 = vmatmul.mubr.bf16.gmra.mrb[4].mxu1 %v4791_v43  ;;  %4260 = vmatprep.subr.bf16.mxu0 %v3548_v26  ;;  %v2631_v46 = vpop.permute.xlu1 %2630  ;;  %v1764_v2 = vmul.f32 %v8040_v28, %v516_v13  ;;  %v8041_v43 = vld [vmem:[#allocation103_spill] sm:$0xff]  ;;  %v4800_v63 = vld [vmem:[%s5840_s9 + $0xb8] ss:$40 sps:$4 sm:$0xff]   ;;  %v526_v28 = vld [vmem:[%s7706_s0 + $0x908] sm:$0xff] }
 0x2dc   : > { %4562 = vmatprep.subr.bf16.mxu1 %v3548_v26  ;;  %v3003_v38 = vadd.f32 %v2631_v46, %v1755_v0  ;;  %v3004_v47 = vadd.f32 %v2631_v46, %v1756_v11  ;;  %v2626_v30 = vpop.permute.xlu0 %2625  ;;  %4261 = vmatpush1.bf16.msra.mxu0 %v3547_v58  ;;  %v1761_v61 = vmul.f32 %v8041_v43, %v513_v49  ;;  %v517_v26 = vld [vmem:[%s7706_s0 + $0x8c0] sm:$0xff]  ;;  %v4804_v46 = vld [vmem:[%s5840_s9 + $0x10c] ss:$40 sps:$4 sm:$0xff]  }
 0x2dd   : > { %v3549_v39 = vpack.c.bf16 %v3311_v29, %v3309_v55  ;;  %v3001_v48 = vadd.f32 %v2626_v30, %v1753_v12  ;;  %v3002_v5 = vadd.f32 %v2626_v30, %v1754_v37  ;;  %4576 = vmatpush1.bf16.msra.mxu1 %v3547_v58  ;;  %v3550_v32 = vpack.c.bf16 %v3312_v10, %v3310_v45  ;;  %v8042_v37 = vld [vmem:[#allocation104_spill] sm:$0xff] }
 0x2de   : > { %v3315_v3 = vmax.f32 %v3003_v38, 0.0  ;;  %v3316_v18 = vmax.f32 %v3004_v47, 0.0  ;;  %4031 = vmatprep.mubr.bf16.mxu1 %v4795_v33  ;;  %v1762_v42 = vmul.f32 %v8041_v43, %v514_v60  ;;  %v1767_v34 = vmul.f32 %v8042_v37, %v519_v44  ;;  %v523_v38 = vld [vmem:[%s7706_s0 + $0x8f0] sm:$0xff]  ;;  %v524_v47 = vld [vmem:[%s7706_s0 + $0x8f8] sm:$0xff] }
 0x2df   : > { %v3313_v20 = vmax.f32 %v3001_v48, 0.0  ;;  %v3314_v4 = vmax.f32 %v3002_v5, 0.0  ;;  %4208 = vmatmul.mubr.bf16.gmra.mrb[4].mxu0 %v4794_v56  ;;  %4262 = vmatprep.subr.bf16.mxu0 %v3550_v32  ;;  %v2641_v59 = vpop.permute.xlu1 %2640  ;;  %v1768_v24 = vmul.f32 %v8042_v37, %v520_v36  ;;  %v8043_v56 = vld [vmem:[#allocation105_spill] sm:$0xff]  ;;  %v530_v37 = vld [vmem:[%s7706_s0 + $0x928] sm:$0xff] }
 0x2e0   : > { %4563 = vmatprep.subr.bf16.mxu1 %v3550_v32  ;;  %v3007_v41 = vadd.f32 %v2641_v59, %v1759_v6  ;;  %v3008_v17 = vadd.f32 %v2641_v59, %v1760_v40  ;;  %v2636_v27 = vpop.permute.xlu0 %2635  ;;  %4263 = vmatpush1.bf16.msra.mxu0 %v3549_v39  ;;  %v1765_v7 = vmul.f32 %v8043_v56, %v517_v26  ;;  %v4803_v5 = vld [vmem:[%s5840_s9 + $0xf8] ss:$40 sps:$4 sm:$0xff]   ;;  %v4807_v59 = vld [vmem:[%s5840_s9 + $0x14c] ss:$40 sps:$4 sm:$0xff]  }
 0x2e1   : > { %v3551_v53 = vpack.c.bf16 %v3315_v3, %v3313_v20  ;;  %v3005_v54 = vadd.f32 %v2636_v27, %v1757_v57  ;;  %v3006_v1 = vadd.f32 %v2636_v27, %v1758_v19  ;;  %4577 = vmatpush1.bf16.msra.mxu1 %v3549_v39  ;;  %v3552_v51 = vpack.c.bf16 %v3316_v18, %v3314_v4  ;;  %v521_v32 = vld [vmem:[%s7706_s0 + $0x8e0] sm:$0xff]  ;;  %v8044_v19 = vld [vmem:[#allocation106_spill] sm:$0xff] }
 0x2e2   : > { %v3319_v50 = vmax.f32 %v3007_v41, 0.0  ;;  %v3320_v52 = vmax.f32 %v3008_v17, 0.0  ;;  %4217 = vmatprep.mubr.bf16.mxu0 %v4798_v8  ;;  %v1766_v31 = vmul.f32 %v8043_v56, %v518_v22  ;;  %v1771_v21 = vmul.f32 %v8044_v19, %v523_v38  ;;  %v527_v41 = vld [vmem:[%s7706_s0 + $0x910] sm:$0xff]  ;;  %v528_v17 = vld [vmem:[%s7706_s0 + $0x918] sm:$0xff] }
 0x2e3   : > { %v3317_v16 = vmax.f32 %v3005_v54, 0.0  ;;  %v3318_v58 = vmax.f32 %v3006_v1, 0.0  ;;  %4032 = vmatmul.mubr.bf16.gmra.mrb[8].mxu1 %v4797_v25  ;;  %4264 = vmatprep.subr.bf16.mxu0 %v3552_v51  ;;  %v2651_v9 = vpop.permute.xlu1 %2650  ;;  %v1772_v13 = vmul.f32 %v8044_v19, %v524_v47  ;;  %v8045_v25 = vld [vmem:[#allocation107_spill] sm:$0xff]  ;;  %v534_v19 = vld [vmem:[%s7706_s0 + $0x948] sm:$0xff] }
 0x2e4   : > { %4564 = vmatprep.subr.bf16.mxu1 %v3552_v51  ;;  %v3011_v0 = vadd.f32 %v2651_v9, %v1763_v15  ;;  %v3012_v11 = vadd.f32 %v2651_v9, %v1764_v2  ;;  %v2646_v29 = vpop.permute.xlu0 %2645  ;;  %4265 = vmatpush1.bf16.msra.mxu0 %v3551_v53  ;;  %v1769_v49 = vmul.f32 %v8045_v25, %v521_v32  ;;  %v4806_v1 = vld [vmem:[%s5840_s9 + $0x108] ss:$40 sps:$4 sm:$0xff]   ;;  %v525_v51 = vld [vmem:[%s7706_s0 + $0x900] sm:$0xff] }
 0x2e5   : > { %v3553_v10 = vpack.c.bf16 %v3319_v50, %v3317_v16  ;;  %v3009_v33 = vadd.f32 %v2646_v29, %v1761_v61  ;;  %v3010_v23 = vadd.f32 %v2646_v29, %v1762_v42  ;;  %4578 = vmatpush1.bf16.msra.mxu1 %v3551_v53  ;;  %v3554_v12 = vpack.c.bf16 %v3320_v52, %v3318_v58  ;;  %v8046_v42 = vld [vmem:[#allocation108_spill] sm:$0xff] }
 0x2e6   : > { %v3323_v55 = vmax.f32 %v3011_v0, 0.0  ;;  %v3324_v45 = vmax.f32 %v3012_v11, 0.0  ;;  %4041 = vmatprep.mubr.bf16.mxu1 %v4801_v35  ;;  %v1770_v60 = vmul.f32 %v8045_v25, %v522_v14  ;;  %v1775_v44 = vmul.f32 %v8046_v42, %v527_v41  ;;  %v4810_v9 = vld [vmem:[%s5840_s9 + $0x15c] ss:$40 sps:$4 sm:$0xff]   ;;  %v531_v0 = vld [vmem:[%s7706_s0 + $0x930] sm:$0xff] }
 0x2e7   : > { %v3321_v30 = vmax.f32 %v3009_v33, 0.0  ;;  %v3322_v39 = vmax.f32 %v3010_v23, 0.0  ;;  %4218 = vmatmul.mubr.bf16.gmra.mrb[8].mxu0 %v4800_v63  ;;  %4266 = vmatprep.subr.bf16.mxu0 %v3554_v12  ;;  %v2661_v48 = vpop.permute.xlu1 %2660  ;;  %v1776_v36 = vmul.f32 %v8046_v42, %v528_v17  ;;  %v8047_v63 = vld [vmem:[#allocation109_spill] sm:$0xff]  ;;  %v532_v11 = vld [vmem:[%s7706_s0 + $0x938] sm:$0xff]  ;;  %v4809_v23 = vld [vmem:[%s5840_s9 + $0x148] ss:$40 sps:$4 sm:$0xff]  }
 0x2e8   : > { %4565 = vmatprep.subr.bf16.mxu1 %v3554_v12  ;;  %v3015_v6 = vadd.f32 %v2661_v48, %v1767_v34  ;;  %v3016_v40 = vadd.f32 %v2661_v48, %v1768_v24  ;;  %v2656_v3 = vpop.permute.xlu0 %2655  ;;  %4267 = vmatpush1.bf16.msra.mxu0 %v3553_v10  ;;  %v1773_v26 = vmul.f32 %v8047_v63, %v525_v51  ;;  %v529_v12 = vld [vmem:[%s7706_s0 + $0x920] sm:$0xff]  ;;  %v8050_v41 = vld [vmem:[#allocation112_spill] sm:$0xff]  ;;  %v8052_v42 = vld [vmem:[#allocation114_spill] sm:$0xff] }
 0x2e9   : > { %v3555_v18 = vpack.c.bf16 %v3323_v55, %v3321_v30  ;;  %v3013_v8 = vadd.f32 %v2656_v3, %v1765_v7  ;;  %v3014_v62 = vadd.f32 %v2656_v3, %v1766_v31  ;;  %4579 = vmatpush1.bf16.msra.mxu1 %v3553_v10  ;;  %v3556_v57 = vpack.c.bf16 %v3324_v45, %v3322_v39  ;;  %v8048_v31 = vld [vmem:[#allocation110_spill] sm:$0xff]  ;;  %v4813_v48 = vld [vmem:[%s5840_s9 + $0x19c] ss:$40 sps:$4 sm:$0xff]  }
 0x2ea   : > { %v3327_v20 = vmax.f32 %v3015_v6, 0.0  ;;  %v3328_v4 = vmax.f32 %v3016_v40, 0.0  ;;  %4227 = vmatprep.mubr.bf16.mxu0 %v4804_v46  ;;  %v1774_v22 = vmul.f32 %v8047_v63, %v526_v28  ;;  %v1779_v38 = vmul.f32 %v8048_v31, %v531_v0  ;;  %v535_v6 = vld [vmem:[%s7706_s0 + $0x950] sm:$0xff]  ;;  %v536_v40 = vld [vmem:[%s7706_s0 + $0x958] sm:$0xff]  ;;  %v8051_v51 = vld [vmem:[#allocation113_spill] sm:$0xff] }
 0x2eb   : > { %v3325_v27 = vmax.f32 %v3013_v8, 0.0  ;;  %v3326_v53 = vmax.f32 %v3014_v62, 0.0  ;;  %4042 = vmatmul.mubr.bf16.gmra.mrb[12].mxu1 %v4803_v5  ;;  %4268 = vmatprep.subr.bf16.mxu0 %v3556_v57  ;;  %v2671_v54 = vpop.permute.xlu1 %2670  ;;  %v1780_v47 = vmul.f32 %v8048_v31, %v532_v11  ;;  %v8049_v5 = vld [vmem:[#allocation111_spill] sm:$0xff]  ;;  %v4812_v62 = vld [vmem:[%s5840_s9 + $0x158] ss:$40 sps:$4 sm:$0xff]   ;;  %v1783_v17 = vmul.f32 %v8050_v41, %v535_v6  ;;  %v542_v31 = vld [vmem:[%s7706_s0 + $0x988] sm:$0xff] }
 0x2ec   : > { %4566 = vmatprep.subr.bf16.mxu1 %v3556_v57  ;;  %v3019_v15 = vadd.f32 %v2671_v54, %v1771_v21  ;;  %v3020_v2 = vadd.f32 %v2671_v54, %v1772_v13  ;;  %v2666_v50 = vpop.permute.xlu0 %2665  ;;  %4269 = vmatpush1.bf16.msra.mxu0 %v3555_v18  ;;  %v1777_v32 = vmul.f32 %v8049_v5, %v529_v12  ;;  %v533_v57 = vld [vmem:[%s7706_s0 + $0x940] sm:$0xff] }
 0x2ed   : > { %v3557_v52 = vpack.c.bf16 %v3327_v20, %v3325_v27  ;;  %v3017_v35 = vadd.f32 %v2666_v50, %v1769_v49  ;;  %v3018_v43 = vadd.f32 %v2666_v50, %v1770_v60  ;;  %4580 = vmatpush1.bf16.msra.mxu1 %v3555_v18  ;;  %v3558_v61 = vpack.c.bf16 %v3328_v4, %v3326_v53  ;;  %v539_v4 = vld [vmem:[%s7706_s0 + $0x970] sm:$0xff]  ;;  %v537_v50 = vld [vmem:[%s7706_s0 + $0x960] sm:$0xff] }
 0x2ee   : > { %v3331_v16 = vmax.f32 %v3019_v15, 0.0  ;;  %v3332_v58 = vmax.f32 %v3020_v2, 0.0  ;;  %4051 = vmatprep.mubr.bf16.mxu1 %v4807_v59  ;;  %v1778_v14 = vmul.f32 %v8049_v5, %v530_v37  ;;  %v1784_v27 = vmul.f32 %v8050_v41, %v536_v40  ;;  %v540_v2 = vld [vmem:[%s7706_s0 + $0x978] sm:$0xff]  ;;  %v545_v41 = vld [vmem:[%s7706_s0 + $0x9a0] sm:$0xff] }
 0x2ef   : > { %v3329_v29 = vmax.f32 %v3017_v35, 0.0  ;;  %v3330_v10 = vmax.f32 %v3018_v43, 0.0  ;;  %4228 = vmatmul.mubr.bf16.gmra.mrb[12].mxu0 %v4806_v1  ;;  %4270 = vmatprep.subr.bf16.mxu0 %v3558_v61  ;;  %v2681_v33 = vpop.permute.xlu1 %2680  ;;  %v4816_v1 = vld [vmem:[%s5840_s9 + $0x1ac] ss:$40 sps:$4 sm:$0xff]   ;;  %v1781_v28 = vmul.f32 %v8051_v51, %v533_v57  ;;  %v1782_v15 = vmul.f32 %v8051_v51, %v534_v19 }
 0x2f0   : > { %4567 = vmatprep.subr.bf16.mxu1 %v3558_v61  ;;  %v3023_v34 = vadd.f32 %v2681_v33, %v1775_v44  ;;  %v3024_v24 = vadd.f32 %v2681_v33, %v1776_v36  ;;  %v2676_v55 = vpop.permute.xlu0 %2675  ;;  %4271 = vmatpush1.bf16.msra.mxu0 %v3557_v52  ;;  %v4815_v61 = vld [vmem:[%s5840_s9 + $0x198] ss:$40 sps:$4 sm:$0xff]   ;;  %v1787_v44 = vmul.f32 %v8052_v42, %v539_v4  ;;  %v538_v36 = vld [vmem:[%s7706_s0 + $0x968] sm:$0xff]  ;;  %v543_v33 = vld [vmem:[%s7706_s0 + $0x990] sm:$0xff] }
 0x2f1   : > { %v3559_v45 = vpack.c.bf16 %v3331_v16, %v3329_v29  ;;  %v3021_v46 = vadd.f32 %v2676_v55, %v1773_v26  ;;  %v3022_v56 = vadd.f32 %v2676_v55, %v1774_v22  ;;  %4581 = vmatpush1.bf16.msra.mxu1 %v3557_v52  ;;  %v3560_v7 = vpack.c.bf16 %v3332_v58, %v3330_v10  ;;  %v8053_v29 = vld [vmem:[#allocation115_spill] sm:$0xff] }
 0x2f2   : > { %v3335_v30 = vmax.f32 %v3023_v34, 0.0  ;;  %v3336_v39 = vmax.f32 %v3024_v24, 0.0  ;;  %4237 = vmatprep.mubr.bf16.mxu0 %v4810_v9  ;;  %v1788_v11 = vmul.f32 %v8052_v42, %v540_v2  ;;  %v1785_v10 = vmul.f32 %v8053_v29, %v537_v50  ;;  %v4824_v37 = vld [vmem:[%s5840_s9 + $0x114] ss:$40 sps:$4 sm:$0xff]  }
 0x2f3   : > { %v3333_v3 = vmax.f32 %v3021_v46, 0.0  ;;  %v3334_v18 = vmax.f32 %v3022_v56, 0.0  ;;  %4052 = vmatmul.mubr.bf16.gmra.mrb[16].mxu1 %v4809_v23  ;;  %4272 = vmatprep.subr.bf16.mxu0 %v3560_v7  ;;  %v2691_v8 = vpop.permute.xlu1 %2690  ;;  %v1786_v34 = vmul.f32 %v8053_v29, %v538_v36  ;;  %v544_v24 = vld [vmem:[%s7706_s0 + $0x998] sm:$0xff]  ;;  %v4818_v56 = vld [vmem:[%s5840_s9 + $0x1a8] ss:$40 sps:$4 sm:$0xff]  }
 0x2f4   : > { %4568 = vmatprep.subr.bf16.mxu1 %v3560_v7  ;;  %v3027_v21 = vadd.f32 %v2691_v8, %v1779_v38  ;;  %v3028_v13 = vadd.f32 %v2691_v8, %v1780_v47  ;;  %v2686_v20 = vpop.permute.xlu0 %2685  ;;  %4273 = vmatpush1.bf16.msra.mxu0 %v3559_v45  ;;  %v541_v7 = vld [vmem:[%s7706_s0 + $0x980] sm:$0xff]  ;;  %v547_v4 = vld [vmem:[%s7706_s0 + $0x9b0] sm:$0xff] }
 0x2f5   : > { %v3561_v59 = vpack.c.bf16 %v3335_v30, %v3333_v3  ;;  %v3025_v25 = vadd.f32 %v2686_v20, %v1777_v32  ;;  %v3026_v49 = vadd.f32 %v2686_v20, %v1778_v14  ;;  %4582 = vmatpush1.bf16.msra.mxu1 %v3559_v45  ;;  %v3562_v60 = vpack.c.bf16 %v3336_v39, %v3334_v18  ;;  %v8054_v14 = vld [vmem:[#allocation116_spill] sm:$0xff]  ;;  %v4821_v8 = vld [vmem:[%s5840_s9 + $0x24] ss:$40 sps:$4 sm:$0xff]  }
 0x2f6   : > { %v3339_v53 = vmax.f32 %v3027_v21, 0.0  ;;  %v3340_v54 = vmax.f32 %v3028_v13, 0.0  ;;  %4061 = vmatprep.mubr.bf16.mxu1 %v4813_v48  ;;  %v1791_v6 = vmul.f32 %v8054_v14, %v543_v33  ;;  %v1792_v40 = vmul.f32 %v8054_v14, %v544_v24  ;;  %v4827_v24 = vld [vmem:[%s5840_s9 + $0x164] ss:$40 sps:$4 sm:$0xff]  }
 0x2f7   : > { %v3337_v52 = vmax.f32 %v3025_v25, 0.0  ;;  %v3338_v35 = vmax.f32 %v3026_v49, 0.0  ;;  %4238 = vmatmul.mubr.bf16.gmra.mrb[16].mxu0 %v4812_v62  ;;  %4274 = vmatprep.subr.bf16.mxu0 %v3562_v60  ;;  %v2701_v43 = vpop.permute.xlu1 %2700  ;;  %v8055_v62 = vld [vmem:[#allocation117_spill] sm:$0xff] }
 0x2f8   : > { %4569 = vmatprep.subr.bf16.mxu1 %v3562_v60  ;;  %v3031_v16 = vadd.f32 %v2701_v43, %v1783_v17  ;;  %v3032_v58 = vadd.f32 %v2701_v43, %v1784_v27  ;;  %v2696_v9 = vpop.permute.xlu0 %2695  ;;  %4275 = vmatpush1.bf16.msra.mxu0 %v3561_v59  ;;  %v1789_v57 = vmul.f32 %v8055_v62, %v541_v7  ;;  %v546_v17 = vld [vmem:[%s7706_s0 + $0x9a8] sm:$0xff] }
 0x2f9   : > { %v3563_v63 = vpack.c.bf16 %v3339_v53, %v3337_v52  ;;  %v3029_v26 = vadd.f32 %v2696_v9, %v1781_v28  ;;  %v3030_v22 = vadd.f32 %v2696_v9, %v1782_v15  ;;  %4583 = vmatpush1.bf16.msra.mxu1 %v3561_v59  ;;  %v3564_v0 = vpack.c.bf16 %v3340_v54, %v3338_v35  ;;  %v548_v59 = vld [vmem:[%s7706_s0 + $0x9b8] sm:$0xff]  ;;  %v8056_v15 = vld [vmem:[#allocation118_spill] sm:$0xff] }
 0x2fa   : > { %v3343_v23 = vmax.f32 %v3031_v16, 0.0  ;;  %v3344_v12 = vmax.f32 %v3032_v58, 0.0  ;;  %4247 = vmatprep.mubr.bf16.mxu0 %v4816_v1  ;;  %v1790_v19 = vmul.f32 %v8055_v62, %v542_v31  ;;  %v1795_v2 = vmul.f32 %v8056_v15, %v547_v4  ;;  %v4835_v7 = vld [vmem:[%s5840_s9 + $0xc0] ss:$40 sps:$4 sm:$0xff]   ;;  %v4836_v31 = vld [vmem:[%s5840_s9 + $0x1b0] ss:$40 sps:$4 sm:$0xff]  }
 0x2fb   : > { %v3341_v55 = vmax.f32 %v3029_v26, 0.0  ;;  %v3342_v45 = vmax.f32 %v3030_v22, 0.0  ;;  %4062 = vmatmul.mubr.bf16.gmra.mrb[20].mxu1 %v4815_v61  ;;  %4276 = vmatprep.subr.bf16.mxu0 %v3564_v0  ;;  %v2711_v46 = vpop.permute.xlu1 %2710  ;;  %v1796_v50 = vmul.f32 %v8056_v15, %v548_v59  ;;  %v8057_v61 = vld [vmem:[#allocation119_spill] sm:$0xff] }
 0x2fc   : > { %4570 = vmatprep.subr.bf16.mxu1 %v3564_v0  ;;  %v3035_v38 = vadd.f32 %v2711_v46, %v1787_v44  ;;  %v3036_v47 = vadd.f32 %v2711_v46, %v1788_v11  ;;  %v2706_v30 = vpop.permute.xlu0 %2705  ;;  %4277 = vmatpush1.bf16.msra.mxu0 %v3563_v63  ;;  %v1793_v42 = vmul.f32 %v8057_v61, %v545_v41  ;;  %v4831_v46 = vld [vmem:[%s5840_s9 + $0xc4] ss:$40 sps:$4 sm:$0xff]  }
 0x2fd   : > { %v3565_v39 = vpack.c.bf16 %v3343_v23, %v3341_v55  ;;  %v3033_v48 = vadd.f32 %v2706_v30, %v1785_v10  ;;  %v3034_v5 = vadd.f32 %v2706_v30, %v1786_v34  ;;  %4584 = vmatpush1.bf16.msra.mxu1 %v3563_v63  ;;  %v3566_v32 = vpack.c.bf16 %v3344_v12, %v3342_v45  ;;  %v4819_v12 = vld [vmem:[%s5840_s9 + $0x20] ss:$40 sps:$4 sm:$0xff]   ;;  %v4825_v34 = vld [vmem:[%s5840_s9 + $0x74] ss:$40 sps:$4 sm:$0xff]   ;;  %v4829_v55 = vld [vmem:[%s5840_s9 + $0x70] ss:$40 sps:$4 sm:$0xff]  }
 0x2fe   : > { %v3347_v3 = vmax.f32 %v3035_v38, 0.0  ;;  %v3348_v18 = vmax.f32 %v3036_v47, 0.0  ;;  %4551 = vmatprep.mubr.msk.bf16.mxu1 %vm3867_vm0, %v4824_v37  ;;  %v1794_v44 = vmul.f32 %v8057_v61, %v546_v17  ;;  %v4822_v37 = vld [vmem:[%s5840_s9 + $0x110] ss:$40 sps:$4 sm:$0xff]   ;;  %v4830_v45 = vld [vmem:[%s5840_s9 + $0x160] ss:$40 sps:$4 sm:$0xff]  }
 0x2ff   : > { %v3345_v21 = vmax.f32 %v3033_v48, 0.0  ;;  %v3346_v13 = vmax.f32 %v3034_v5, 0.0  ;;  %4248 = vmatmul.mubr.bf16.gmra.mrb[20].mxu0 %v4818_v56  ;;  %4278 = vmatprep.subr.bf16.mxu0 %v3566_v32  ;;  %v2721_v20 = vpop.permute.xlu1 %2720  ;;  %v4833_v56 = vld [vmem:[%s5840_s9 + $0x1b4] ss:$40 sps:$4 sm:$0xff]   ;;  %s220_s9 = sand.u32 1, %s4899_s16  }
 0x300   : > { %4571 = vmatprep.subr.bf16.mxu1 %v3566_v32  ;;  %v3039_v25 = vadd.f32 %v2721_v20, %v1791_v6  ;;  %v3040_v49 = vadd.f32 %v2721_v20, %v1792_v40  ;;  %v2716_v60 = vpop.permute.xlu0 %2715  ;;  %4279 = vmatpush1.bf16.msra.mxu0 %v3565_v39  ;;  %s4685_s24 = smul.u32 192, %s220_s9  ;;  %s7660_s7 = scalar_lea.sflag [#allocation3], %s220_s9 }
 0x301   : > { %v3567_v27 = vpack.c.bf16 %v3347_v3, %v3345_v21  ;;  %v3037_v53 = vadd.f32 %v2716_v60, %v1789_v57  ;;  %v3038_v54 = vadd.f32 %v2716_v60, %v1790_v19  ;;  %4585 = vmatpush1.bf16.msra.mxu1 %v3565_v39  ;;  %v3568_v1 = vpack.c.bf16 %v3348_v18, %v3346_v13 }
 0x302   : > { %v3351_v51 = vmax.f32 %v3039_v25, 0.0  ;;  %v3352_v28 = vmax.f32 %v3040_v49, 0.0  ;;  %4548 = vmatprep.mubr.msk.bf16.mxu0 %vm3867_vm0, %v4821_v8  ;;  %s7598_s26 = scalar_lea.vmem [#allocation2], %s4685_s24 }
 0x303   : > { %v3349_v52 = vmax.f32 %v3037_v53, 0.0  ;;  %v3350_v35 = vmax.f32 %v3038_v54, 0.0  ;;  %4280 = vmatprep.subr.bf16.mxu0 %v3568_v1  ;;  %4572 = vmatprep.subr.bf16.mxu1 %v3568_v1  ;;  %v2731_v43 = vpop.permute.xlu1 %2730  ;;  %s4393_s30 = sshll.u32 %s7598_s26, 4  ;;  %s7647_s30 = int_to_ptr.vmem [resolvable:$true] %s4393_s30 }
 0x304   : > { %v3043_v36 = vadd.f32 %v2731_v43, %v1795_v2  ;;  %v3044_v16 = vadd.f32 %v2731_v43, %v1796_v50  ;;  %v2726_v58 = vpop.permute.xlu0 %2725  ;;  %4281 = vmatpush1.bf16.msra.mxu0 %v3567_v27  ;;  %s4837_s8 = scalar_lea.vmem %s7647_s30, 3072  ;;  %p4844_p1 = scmp.lt.s32.totalorder %s7647_s30, %s4842_s12 }
 0x305   : > { %v3569_v9 = vpack.c.bf16 %v3351_v51, %v3349_v52  ;;  %v3041_v63 = vadd.f32 %v2726_v58, %v1793_v42  ;;  %v3042_v26 = vadd.f32 %v2726_v58, %v1794_v44  ;;  %4586 = vmatpush1.bf16.msra.mxu1 %v3567_v27  ;;  %v3570_v22 = vpack.c.bf16 %v3352_v28, %v3350_v35  ;;  %p4838_p12 = scmp.ne.s32.totalorder %s7647_s30, %s4837_s8  ;;  %p4845_p2 = scmp.lt.s32.totalorder %s4843_s11, %s4837_s8 }
 0x306   : > { %v3355_v0 = vmax.f32 %v3043_v36, 0.0  ;;  %v3356_v11 = vmax.f32 %v3044_v16, 0.0 }
 0x307   : > { %v3353_v29 = vmax.f32 %v3041_v63, 0.0  ;;  %v3354_v10 = vmax.f32 %v3042_v26, 0.0  ;;  %4282 = vmatprep.subr.bf16.mxu0 %v3570_v22  ;;  %4573 = vmatprep.subr.bf16.mxu1 %v3570_v22  ;;  %p4839_p13 = pnand %p4838_p12, %p4986_p4  ;;  %p4846_p3 = por %p4845_p2, %p4844_p1 }
 0x308   : > { %4283 = vmatpush1.bf16.msra.mxu0 %v3569_v9 }
 0x309   : > { %v3571_v33 = vpack.c.bf16 %v3355_v0, %v3353_v29  ;;  %v3572_v23 = vpack.c.bf16 %v3356_v11, %v3354_v10  ;;  %4587 = vmatpush1.bf16.msra.mxu1 %v3569_v9  ;;  %p4840_p0 = pneg %p4839_p13 }
 0x30b   : > { %4284 = vmatprep.subr.bf16.mxu0 %v3572_v23  ;;  %4574 = vmatprep.subr.bf16.mxu1 %v3572_v23  ;;  %p4847_p5 = pnand %p4846_p3, %p4840_p0 }
 0x30c   : > { %4285 = vmatpush1.bf16.msra.mxu0 %v3571_v33 }
 0x30d   : > { %4588 = vmatpush1.bf16.msra.mxu1 %v3571_v33 }
 0x30f   : > { %4291 = vmatmul.mubr.bf16.vlgmr.msra.gmra.mrb[0].mxu0 %v4819_v12 }
 0x310   : > { %4321 = vmatmul.mubr.bf16.vlgmr.msra.gmra.mrb[24].mxu1 %v4822_v37  ;;  %4549 = vmatprep.mubr.msk.bf16.mxu0 %vm3867_vm0, %v4825_v34 }
 0x311   : > { %4552 = vmatprep.mubr.msk.bf16.mxu1 %vm3867_vm0, %v4827_v24 }
 0x317   : > { %4301 = vmatmul.mubr.bf16.gmra.mrb[4].mxu0 %v4829_v55 }
 0x318   : > { %4331 = vmatmul.mubr.bf16.gmra.mrb[28].mxu1 %v4830_v45  ;;  %4550 = vmatprep.mubr.msk.bf16.mxu0 %vm3867_vm0, %v4831_v46 }
 0x319   : > { %4553 = vmatprep.mubr.msk.bf16.mxu1 %vm3867_vm0, %v4833_v56 }
 0x31f   : > { %4311 = vmatmul.mubr.bf16.gmra.mrb[8].mxu0 %v4835_v7 }
 0x320   : > { %4341 = vmatmul.mubr.bf16.gmra.mrb[32].mxu1 %v4836_v31 }
 0x3a6   : > { %v4013_v38 = vpop.f32.mrb[0].mxu1 }
 0x3a7   : > { %v4015_v47 = vpop.f32.mrb[1].mxu1 }
 0x3a8   : > { %v4017_v30 = vpop.f32.mrb[2].mxu1 }
 0x3a9   : > { %v7569_v39 = vpop.f32.mrb[3].mxu1 }
 0x3ae   : > { %v7571_v48 = vpop.f32.mrb[4].mxu1 }
 0x3af   : > { %v7573_v5 = vpop.f32.mrb[5].mxu1 }
 0x3b0   : > { %v7575_v32 = vpop.f32.mrb[6].mxu1 }
 0x3b1   : > { %v7577_v14 = vpop.f32.mrb[7].mxu1 }
 0x3b6   : > { %v7579_v6 = vpop.f32.mrb[8].mxu1 }
 0x3b7   : > { %v7581_v40 = vpop.f32.mrb[9].mxu1 }
 0x3b8   : > { %v7583_v3 = vpop.f32.mrb[10].mxu1 }
 0x3b9   : > { %v7585_v18 = vpop.f32.mrb[11].mxu1 }
 0x3be   : > { %v4043_v8 = vpop.f32.mrb[12].mxu1 }
 0x3bf   : > { %v4045_v62 = vpop.f32.mrb[13].mxu1 }
 0x3c0   : > { %v4047_v57 = vpop.f32.mrb[14].mxu1 }
 0x3c1   : > { %v4049_v19 = vpop.f32.mrb[15].mxu1 }
 0x3c2   : > { %v4229_v21 = vpop.f32.mrb[12].mxu0 }
 0x3c3   : > { %v4601_v13 = vadd.f32 %v4229_v21, %v4043_v8  ;;  %v4231_v20 = vpop.f32.mrb[13].mxu0 }
 0x3c4   : > { %v4603_v4 = vadd.f32 %v4231_v20, %v4045_v62  ;;  %v4233_v59 = vpop.f32.mrb[14].mxu0 }
 0x3c5   : > { %v4605_v25 = vadd.f32 %v4233_v59, %v4047_v57  ;;  %v4235_v49 = vpop.f32.mrb[15].mxu0 }
 0x3c6   : > { %v4607_v60 = vadd.f32 %v4235_v49, %v4049_v19  ;;  %v4053_v41 = vpop.f32.mrb[16].mxu1 }
 0x3c7   : > { %v4055_v17 = vpop.f32.mrb[17].mxu1 }
 0x3c8   : > { %v4057_v27 = vpop.f32.mrb[18].mxu1 }
 0x3c9   : > { %v4059_v53 = vpop.f32.mrb[19].mxu1 }
 0x3ca   : > { %v4239_v54 = vpop.f32.mrb[16].mxu0 }
 0x3cb   : > { %v4609_v1 = vadd.f32 %v4239_v54, %v4053_v41  ;;  %v4241_v51 = vpop.f32.mrb[17].mxu0 }
 0x3cc   : > { %v4611_v28 = vadd.f32 %v4241_v51, %v4055_v17  ;;  %v4243_v15 = vpop.f32.mrb[18].mxu0 }
 0x3cd   : > { %v4613_v2 = vadd.f32 %v4243_v15, %v4057_v27  ;;  %v4245_v50 = vpop.f32.mrb[19].mxu0 }
 0x3ce   : > { %v4615_v52 = vadd.f32 %v4245_v50, %v4059_v53  ;;  %v4063_v35 = vpop.f32.mrb[20].mxu1 }
 0x3cf   : > { %v4065_v43 = vpop.f32.mrb[21].mxu1 }
 0x3d0   : > { %v4067_v61 = vpop.f32.mrb[22].mxu1 }
 0x3d1   : > { %v4069_v42 = vpop.f32.mrb[23].mxu1 }
 0x3d2   : > { %v4249_v44 = vpop.f32.mrb[20].mxu0 }
 0x3d3   : > { %v7587_v36 = vadd.f32 %v4249_v44, %v4063_v35  ;;  %v4251_v16 = vpop.f32.mrb[21].mxu0 }
 0x3d4   : > { %v7589_v58 = vadd.f32 %v4251_v16, %v4065_v43  ;;  %v4253_v9 = vpop.f32.mrb[22].mxu0 }
 0x3d5   : > { %v7591_v63 = vadd.f32 %v4253_v9, %v4067_v61  ;;  %v4255_v26 = vpop.f32.mrb[23].mxu0 }
 0x3d6   : > { %v7593_v22 = vadd.f32 %v4255_v26, %v4069_v42 }
 0x3e2   : > { %v4292_v0 = vpop.f32.mrb[0].mxu0 }
 0x3e3   : > { %v4589_v11 = vadd.f32 %v4292_v0, %v4013_v38  ;;  %v4322_v29 = vpop.f32.mrb[24].mxu1  ;;  %v4294_v10 = vpop.f32.mrb[1].mxu0 }
 0x3e4   : > { %v4602_v33 = vadd.f32 %v4601_v13, %v4322_v29  ;;  %v4590_v23 = vadd.f32 %v4294_v10, %v4015_v47  ;;  %v4324_v12 = vpop.f32.mrb[25].mxu1  ;;  %v4296_v37 = vpop.f32.mrb[2].mxu0 }
 0x3e5   : > { %4351 = vst [vmem:[%s7598_s26] sm:$0xff] %v4589_v11  ;;  %v4604_v34 = vadd.f32 %v4603_v4, %v4324_v12  ;;  %v4591_v24 = vadd.f32 %v4296_v37, %v4017_v30  ;;  %v4326_v55 = vpop.f32.mrb[26].mxu1  ;;  %v4298_v45 = vpop.f32.mrb[3].mxu0 }
 0x3e6   : > { %4364 = vst [vmem:[%s7598_s26 + $0x60] sm:$0xff] %v4602_v33  ;;  %4353 = vst.msk [vmem:[%s7598_s26 + $0x8] sm:$0xff] %vm4352_vm1, %v4590_v23  ;;  %v4606_v46 = vadd.f32 %v4605_v25, %v4326_v55  ;;  %v4592_v56 = vadd.f32 %v4298_v45, %v7569_v39  ;;  %v4328_v7 = vpop.f32.mrb[27].mxu1 }
 0x3e7   : > { %4365 = vst.msk [vmem:[%s7598_s26 + $0x68] sm:$0xff] %vm4352_vm1, %v4604_v34  ;;  %4354 = vst [vmem:[%s7598_s26 + $0x10] sm:$0xff] %v4591_v24  ;;  %v4608_v31 = vadd.f32 %v4607_v60, %v4328_v7 }
 0x3e8   : > { %4366 = vst [vmem:[%s7598_s26 + $0x70] sm:$0xff] %v4606_v46  ;;  %4355 = vst.msk [vmem:[%s7598_s26 + $0x18] sm:$0xff] %vm4352_vm1, %v4592_v56 }
 0x3e9   : > { %4367 = vst.msk [vmem:[%s7598_s26 + $0x78] sm:$0xff] %vm4352_vm1, %v4608_v31 }
 0x3ea   : > { %v4302_v38 = vpop.f32.mrb[4].mxu0 }
 0x3eb   : > { %v4593_v47 = vadd.f32 %v4302_v38, %v7571_v48  ;;  %v4332_v30 = vpop.f32.mrb[28].mxu1  ;;  %v4304_v8 = vpop.f32.mrb[5].mxu0 }
 0x3ec   : > { %v4610_v39 = vadd.f32 %v4609_v1, %v4332_v30  ;;  %v4594_v62 = vadd.f32 %v4304_v8, %v7573_v5  ;;  %v4334_v57 = vpop.f32.mrb[29].mxu1  ;;  %v4306_v19 = vpop.f32.mrb[6].mxu0 }
 0x3ed   : > { %4356 = vst [vmem:[%s7598_s26 + $0x20] sm:$0xff] %v4593_v47  ;;  %v4612_v21 = vadd.f32 %v4611_v28, %v4334_v57  ;;  %v4595_v13 = vadd.f32 %v4306_v19, %v7575_v32  ;;  %v4336_v20 = vpop.f32.mrb[30].mxu1  ;;  %v4308_v4 = vpop.f32.mrb[7].mxu0 }
 0x3ee   : > { %4368 = vst [vmem:[%s7598_s26 + $0x80] sm:$0xff] %v4610_v39  ;;  %4357 = vst.msk [vmem:[%s7598_s26 + $0x28] sm:$0xff] %vm4352_vm1, %v4594_v62  ;;  %v4614_v48 = vadd.f32 %v4613_v2, %v4336_v20  ;;  %v4596_v59 = vadd.f32 %v4308_v4, %v7577_v14  ;;  %v4338_v5 = vpop.f32.mrb[31].mxu1 }
 0x3ef   : > { %4369 = vst.msk [vmem:[%s7598_s26 + $0x88] sm:$0xff] %vm4352_vm1, %v4612_v21  ;;  %4358 = vst [vmem:[%s7598_s26 + $0x30] sm:$0xff] %v4595_v13  ;;  %v4616_v25 = vadd.f32 %v4615_v52, %v4338_v5 }
 0x3f0   : > { %4370 = vst [vmem:[%s7598_s26 + $0x90] sm:$0xff] %v4614_v48  ;;  %4359 = vst.msk [vmem:[%s7598_s26 + $0x38] sm:$0xff] %vm4352_vm1, %v4596_v59 }
 0x3f1   : > { %4371 = vst.msk [vmem:[%s7598_s26 + $0x98] sm:$0xff] %vm4352_vm1, %v4616_v25 }
 0x3f2   : > { %v4312_v32 = vpop.f32.mrb[8].mxu0 }
 0x3f3   : > { %v4597_v49 = vadd.f32 %v4312_v32, %v7579_v6  ;;  %v4342_v60 = vpop.f32.mrb[32].mxu1  ;;  %v4314_v41 = vpop.f32.mrb[9].mxu0 }
 0x3f4   : > { %v4618_v14 = vadd.f32 %v7587_v36, %v4342_v60  ;;  %v4598_v17 = vadd.f32 %v4314_v41, %v7581_v40  ;;  %v4344_v27 = vpop.f32.mrb[33].mxu1  ;;  %v4316_v53 = vpop.f32.mrb[10].mxu0 }
 0x3f5   : > { %4360 = vst [vmem:[%s7598_s26 + $0x40] sm:$0xff] %v4597_v49  ;;  %v4620_v54 = vadd.f32 %v7589_v58, %v4344_v27  ;;  %v4599_v1 = vadd.f32 %v4316_v53, %v7583_v3  ;;  %v4346_v6 = vpop.f32.mrb[34].mxu1  ;;  %v4318_v51 = vpop.f32.mrb[11].mxu0 }
 0x3f6   : > { %4372 = vst [vmem:[%s7598_s26 + $0xa0] sm:$0xff] %v4618_v14  ;;  %4361 = vst.msk [vmem:[%s7598_s26 + $0x48] sm:$0xff] %vm4352_vm1, %v4598_v17  ;;  %v4622_v40 = vadd.f32 %v7591_v63, %v4346_v6  ;;  %v4600_v28 = vadd.f32 %v4318_v51, %v7585_v18  ;;  %v4348_v15 = vpop.f32.mrb[35].mxu1 }
 0x3f7   : > { %4373 = vst.msk [vmem:[%s7598_s26 + $0xa8] sm:$0xff] %vm4352_vm1, %v4620_v54  ;;  %4362 = vst [vmem:[%s7598_s26 + $0x50] sm:$0xff] %v4599_v1  ;;  %v4624_v3 = vadd.f32 %v7593_v22, %v4348_v15 }
 0x3f8   : > { %4374 = vst [vmem:[%s7598_s26 + $0xb0] sm:$0xff] %v4622_v40  ;;  %4363 = vst.msk [vmem:[%s7598_s26 + $0x58] sm:$0xff] %vm4352_vm1, %v4600_v28 }
 0x3f9   : > { %4375 = vst.msk [vmem:[%s7598_s26 + $0xb8] sm:$0xff] %vm4352_vm1, %v4624_v3 }
 0x3fa   : > { %4850 = shalt.err (!%p4847_p5)
}
 0x3fb   : > { %s4851_s13 = scalar_lea.hbm %s7645_s6, 3072  ;;  %s4855_s22 = scalar_lea.hbm %s7710_s4, 6144 }
 0x3fc   : > { %p4852_p6 = scmp.ne.s32.totalorder %s7645_s6, %s4851_s13  ;;  %p4856_p10 = scmp.lt.u32.totalorder %s7645_s6, %s7710_s4 }
 0x3fd   : > { %p4857_p11 = scmp.lt.u32.totalorder %s4855_s22, %s4851_s13  ;;  %p4859_p13 = scmp.lt.u32.totalorder %s4851_s13, %s7645_s6 }
 0x3fe   : > { %p4853_p7 = pnand %p4852_p6, %p4986_p4 }
 0x3ff   : > { %p4858_p12 = por %p4857_p11, %p4856_p10 }
 0x400   : > { %p4854_p9 = pneg %p4853_p7 }
 0x401   : > { %p4860_p0 = por %p4859_p13, %p4858_p12 }
 0x403   : > { %p4861_p1 = pnand %p4860_p0, %p4854_p9 }
 0x405   : > { %4864 = shalt.err (!%p4861_p1)
}
 0x406   : > { %s4919_s26 = smov 256   ;;  %s4920_s29 = smov 16  }
 0x407   : > { %4687 = dma.vmem_to_hbm [thread:$0]  (%p4986_p4), %s7647_s30, 3072, %s7645_s6, %s7660_s7, %s4919_s26, %s4919_s26, %s4920_s29  }
 0x408 PF: > { %p4693_p2 = scmp.ge.s32.totalorder %s4915_s20, 2  ;;  %s4408_s18 = sand.u32 1, %s4895_s15  }
 0x409   : > { %s4409_s5 = scalar_lea.sflag [#allocation3], %s4408_s18 }
 0x40a   : > { %p4690_p3 = pnand %p4693_p2, %p4993_p8 }
 0x40c   : > { %4890 = dma.done.wait (!%p4690_p3), %s4409_s5, 3072  }
 0x40d   : > { %4892 = vsyncadd (!%p4690_p3), %s4409_s5, 4294964224  ;;  %s17_s20 = sadd.s32 1, %s4915_s20   ;;  %s8058_s15 = smov %s4899_s16 }
 0x40e   : > { %p14_p5 = scmp.ge.s32.totalorder %s17_s20, 4   ;;  %s8059_s16 = smov %s4903_s17 }
 0x40f   : > { %s8060_s17 = smov %s4999_s28  ;;  %s8061_s18 = smov %s4911_s19 }
 0x410   : > { %s8062_s19 = smov %s8064_s23  ;;  %16 = sbr.rel (!%p14_p5) target bundleno = 4 (0x4), region = 74 }
 0x417   :  { %4414 = vsyncpa [#allocation3], 1 }
 0x418   :  { %4416 = vsyncpa [#allocation3 + $0x1], 1 }

</bundles_post_ra>
